<compile_context>
chip_gen: v5e
topology: v5e:2x2
jax: 0.10.0
libtpu: 0.0.40
codegen_flags: <defaults>
</compile_context>

<pallas_src>
import functools

import jax
import jax.numpy as jnp
from jax import lax
from jax.experimental import pallas as pl
from jax.experimental.pallas import tpu as pltpu


def _d2d_kernel(x_ref, *refs, layer_dims, chunk_rows):
    """All-VPU D2DNet body.

    x_ref:   (C_in, r_blk, 128) pixel block (one image, one pixel tile).
    refs:    (w0, b0, w1, b1, ..., w_dec, b_dec, out_ref); weights/biases are
             SMEM refs, out_ref is the (C_out, r_blk, 128) output block.
    Every layer is an unrolled scalar-broadcast FMA: out_o = sum_c w[o,c]*h_c + b[o].
    """
    out_ref = refs[-1]
    params = refs[:-1]
    num_layers = len(layer_dims) - 1
    c_in = layer_dims[0]
    r_blk = x_ref.shape[1]
    num_chunks = max(1, r_blk // chunk_rows)

    def compute_rows(rows):
        # One (chunk_rows, 128) slab per input channel -- full vregs, f32 accum.
        chans = [x_ref[c, rows, :].astype(jnp.float32) for c in range(c_in)]

        # Encoder layers: h_o = relu(sum_c w[o,c] * h_c + b[o]), pure VPU.
        for li in range(num_layers - 1):
            w_ref = params[2 * li]
            b_ref = params[2 * li + 1]
            c_out = layer_dims[li + 1]
            nxt = []
            for o in range(c_out):
                acc = chans[0] * w_ref[o, 0] + b_ref[o]
                for c in range(1, len(chans)):
                    acc = acc + chans[c] * w_ref[o, c]
                nxt.append(jnp.maximum(acc, 0.0))
            chans = nxt

        # Decoder layer (no activation): write straight to the output block.
        w_ref = params[-2]
        b_ref = params[-1]
        for o in range(layer_dims[-1]):
            acc = chans[0] * w_ref[o, 0] + b_ref[o]
            for c in range(1, len(chans)):
                acc = acc + chans[c] * w_ref[o, c]
            out_ref[o, rows, :] = acc.astype(out_ref.dtype)

    if num_chunks == 1:
        compute_rows(slice(None))
    else:
        # fori_loop (not a Python for) bounds vreg live ranges: only one
        # 8-row chunk of the 16-channel intermediates is live at a time.
        def chunk(ci, carry):
            r0 = pl.multiple_of(ci * chunk_rows, chunk_rows)
            compute_rows(pl.ds(r0, chunk_rows))
            return carry

        lax.fori_loop(0, num_chunks, chunk, 0)


def d2dnet_forward(x_nchw, params, *, tile_px=None, max_tile_px=65536,
                   vmem_limit_bytes=None):
    """D2DNet forward.

    x_nchw: (N, C_in, H, W), any float dtype (f32 or bf16; accumulation is f32,
            output dtype matches the input dtype).
    params: list of (weight(C_out, C_in), bias(C_out,)) per layer -- PyTorch
            Conv2d (out, in, 1, 1) weights squeezed to (out, in).
    tile_px: pixels per grid step (rounded to a multiple of 1024).
    """
    N, c_in, H, Wsp = x_nchw.shape
    HW = H * Wsp
    layer_dims = [c_in] + [w.shape[0] for (w, _) in params]
    out_ch = layer_dims[-1]
    out_dtype = x_nchw.dtype

    # Lane-dense pixel layout: NCHW -> (N, C, R, 128).  Row-major metadata
    # reshape only; the pad (one extra HBM pass) happens only when HW % 128 != 0.
    hw_pad = ((HW + 127) // 128) * 128
    x_flat = x_nchw.reshape(N, c_in, HW)
    if hw_pad != HW:
        x_flat = jnp.pad(x_flat, ((0, 0), (0, 0), (0, hw_pad - HW)))
    r_total = hw_pad // 128
    x4 = x_flat.reshape(N, c_in, r_total, 128)

    # Rows (of 128 pixels) handled per grid step.  The kernel is VPU-bound
    # (~0.16 cycles/pixel), so big tiles just amortize the ~0.35us/step
    # pipeline overhead; VMEM stays tiny (channel slabs have no sublane pad).
    want_px = tile_px if tile_px is not None else max_tile_px
    max_rows = max(8, (want_px // 128 // 8) * 8)
    if r_total <= 8:
        r_blk = r_total            # full-extent block (< one vreg of rows)
        chunk_rows = r_total
    else:
        r_blk = min(max_rows, (r_total // 8) * 8)
        # v7x shards "parallel" grid axes across its 2 TensorCores: for a
        # single image, split the pixel axis so there are >= 2 grid steps.
        if N == 1:
            r_blk = min(r_blk, max(8, ((r_total + 1) // 2 // 8) * 8))
        chunk_rows = 8
    # Boundary blocks (r_total % r_blk != 0) are masked by Pallas: stale rows
    # only flow through per-pixel FMAs/ReLU and are discarded on writeback.
    grid = (N, pl.cdiv(r_total, r_blk))

    in_specs = [pl.BlockSpec((None, c_in, r_blk, 128),
                             lambda n, p: (n, 0, p, 0))]
    flat_params = []
    for (w, b) in params:
        # Tiny weights/biases resident in SMEM; read as scalars in-kernel
        # (scalar loads co-issue with the VALU FMAs).
        in_specs.append(pl.BlockSpec(memory_space=pltpu.MemorySpace.SMEM))
        in_specs.append(pl.BlockSpec(memory_space=pltpu.MemorySpace.SMEM))
        flat_params.append(w.astype(jnp.float32))
        flat_params.append(b.reshape(-1).astype(jnp.float32))

    out_spec = pl.BlockSpec((None, out_ch, r_blk, 128),
                            lambda n, p: (n, 0, p, 0))

    kernel = functools.partial(_d2d_kernel,
                               layer_dims=tuple(layer_dims),
                               chunk_rows=chunk_rows)

    out4 = pl.pallas_call(
        kernel,
        out_shape=jax.ShapeDtypeStruct((N, out_ch, r_total, 128), out_dtype),
        grid_spec=pltpu.PrefetchScalarGridSpec(
            num_scalar_prefetch=0,
            grid=grid,
            in_specs=in_specs,
            out_specs=out_spec,
        ),
        compiler_params=pltpu.CompilerParams(
            dimension_semantics=("parallel", "parallel"),
            vmem_limit_bytes=vmem_limit_bytes,
        ),
    )(x4, *flat_params)

    # (N, out_ch, R, 128) -> NCHW: metadata reshape (plus a slice iff padded).
    out = out4.reshape(N, out_ch, hw_pad)
    if hw_pad != HW:
        out = out[:, :, :HW]
    return out.reshape(N, out_ch, H, Wsp)


def init_d2dnet_params(key, input_ch=2, output_ch=1, D=2, W=16):
    """Deterministic params mirroring D2DNet.__init__ (1x1 convs).

    PyTorch Conv2d weight is (out, in, 1, 1); the kernel uses the (out, in)
    matrix directly plus a (out,) bias."""
    dims = [input_ch] + [W] * D + [output_ch]
    params = []
    for li in range(len(dims) - 1):
        cin, cout = dims[li], dims[li + 1]
        key, kw, kb = jax.random.split(key, 3)
        bound = 1.0 / jnp.sqrt(cin)  # fan_in for a 1x1 kernel
        w = jax.random.uniform(kw, (cout, cin), jnp.float32, -bound, bound)
        b = jax.random.uniform(kb, (cout,), jnp.float32, -bound, bound)
        params.append((w, b))
    return params


def d2dnet_reference(x_nchw, params):
    """Plain-JAX reference of the PyTorch forward (for a sanity check)."""
    N, C, H, Wsp = x_nchw.shape
    h = x_nchw.reshape(N, C, H * Wsp)
    for (w, b) in params[:-1]:
        h = jnp.maximum(
            jnp.einsum('oc,ncp->nop', w, h,
                       precision=lax.Precision.HIGHEST) + b[None, :, None],
            0.0)
    w, b = params[-1]
    o = jnp.einsum('oc,ncp->nop', w, h,
                   precision=lax.Precision.HIGHEST) + b[None, :, None]
    return o.reshape(N, -1, H, Wsp)


if __name__ == "__main__":
    key = jax.random.PRNGKey(0)
    key, kx = jax.random.split(key)

    # Small shapes consistent with the module defaults: input_ch=2, D=2, W=16.
    # (HW=256 -> two 128-pixel rows per image, one tile per image; production
    #  image sizes use multi-thousand-pixel tiles through the same code path.)
    N, C_in, H, Wsp = 2, 2, 16, 16
    x = jax.random.normal(kx, (N, C_in, H, Wsp), jnp.float32)

    params = init_d2dnet_params(key, input_ch=C_in, output_ch=1, D=2, W=16)

    out = d2dnet_forward(x, params)
    out = jax.block_until_ready(out)

    ref = d2dnet_reference(x, params)
    assert out.shape == (N, 1, H, Wsp)
    assert jnp.allclose(out, ref, atol=1e-5, rtol=1e-4), \
        float(jnp.max(jnp.abs(out - ref)))

    print("KERNEL_OK")
</pallas_src>

<mosaic_0001>
module attributes {stable_mosaic.version = 11 : i64} {
  func.func @_d2d_kernel(%arg0: i32, %arg1: i32, %arg2: memref<1x2x2x128xf32, #tpu.memory_space<vmem>>, %arg3: memref<16x2xf32, #tpu.memory_space<smem>>, %arg4: memref<16xf32, #tpu.memory_space<smem>>, %arg5: memref<16x16xf32, #tpu.memory_space<smem>>, %arg6: memref<16xf32, #tpu.memory_space<smem>>, %arg7: memref<1x16xf32, #tpu.memory_space<smem>>, %arg8: memref<1xf32, #tpu.memory_space<smem>>, %arg9: memref<1x1x2x128xf32, #tpu.memory_space<vmem>>) attributes {dimension_semantics = [#tpu.dimension_semantics<parallel>, #tpu.dimension_semantics<parallel>], iteration_bounds = array<i64: 2, 1>, scalar_prefetch = 0 : i64, scratch_operands = 0 : i64, tpu.core_type = #tpu.core_type<tc>, window_params = [{transform_indices = @transform_0, window_bounds = array<i64: 1, 2, 2, 128>}, {transform_indices = @transform_1, window_bounds = array<i64: 16, 2>}, {transform_indices = @transform_2, window_bounds = array<i64: 16>}, {transform_indices = @transform_3, window_bounds = array<i64: 16, 16>}, {transform_indices = @transform_4, window_bounds = array<i64: 16>}, {transform_indices = @transform_5, window_bounds = array<i64: 1, 16>}, {transform_indices = @transform_6, window_bounds = array<i64: 1>}, {transform_indices = @transform_7, window_bounds = array<i64: 1, 1, 2, 128>}]} {
    %c0 = arith.constant 0 : index
    %c0_0 = arith.constant 0 : index
    %c0_1 = arith.constant 0 : index
    %c0_2 = arith.constant 0 : index
    %0 = vector.load %arg2[%c0, %c0_0, %c0_1, %c0_2] : memref<1x2x2x128xf32, #tpu.memory_space<vmem>>, vector<1x1x2x128xf32>
    %1 = vector.shape_cast %0 : vector<1x1x2x128xf32> to vector<2x128xf32>
    %c0_3 = arith.constant 0 : index
    %c1 = arith.constant 1 : index
    %c0_4 = arith.constant 0 : index
    %c0_5 = arith.constant 0 : index
    %2 = vector.load %arg2[%c0_3, %c1, %c0_4, %c0_5] : memref<1x2x2x128xf32, #tpu.memory_space<vmem>>, vector<1x1x2x128xf32>
    %3 = vector.shape_cast %2 : vector<1x1x2x128xf32> to vector<2x128xf32>
    %c0_6 = arith.constant 0 : index
    %c0_7 = arith.constant 0 : index
    %4 = memref.load %arg3[%c0_6, %c0_7] : memref<16x2xf32, #tpu.memory_space<smem>>
    %5 = vector.broadcast %4 : f32 to vector<2x128xf32>
    %6 = arith.mulf %1, %5 : vector<2x128xf32>
    %c0_8 = arith.constant 0 : index
    %7 = memref.load %arg4[%c0_8] : memref<16xf32, #tpu.memory_space<smem>>
    %8 = vector.broadcast %7 : f32 to vector<2x128xf32>
    %9 = arith.addf %6, %8 : vector<2x128xf32>
    %c0_9 = arith.constant 0 : index
    %c1_10 = arith.constant 1 : index
    %10 = memref.load %arg3[%c0_9, %c1_10] : memref<16x2xf32, #tpu.memory_space<smem>>
    %11 = vector.broadcast %10 : f32 to vector<2x128xf32>
    %12 = arith.mulf %3, %11 : vector<2x128xf32>
    %13 = arith.addf %9, %12 : vector<2x128xf32>
    %cst = arith.constant 0.000000e+00 : f32
    %14 = vector.broadcast %cst : f32 to vector<2x128xf32>
    %15 = arith.maximumf %13, %14 : vector<2x128xf32>
    %c1_11 = arith.constant 1 : index
    %c0_12 = arith.constant 0 : index
    %16 = memref.load %arg3[%c1_11, %c0_12] : memref<16x2xf32, #tpu.memory_space<smem>>
    %17 = vector.broadcast %16 : f32 to vector<2x128xf32>
    %18 = arith.mulf %1, %17 : vector<2x128xf32>
    %c1_13 = arith.constant 1 : index
    %19 = memref.load %arg4[%c1_13] : memref<16xf32, #tpu.memory_space<smem>>
    %20 = vector.broadcast %19 : f32 to vector<2x128xf32>
    %21 = arith.addf %18, %20 : vector<2x128xf32>
    %c1_14 = arith.constant 1 : index
    %c1_15 = arith.constant 1 : index
    %22 = memref.load %arg3[%c1_14, %c1_15] : memref<16x2xf32, #tpu.memory_space<smem>>
    %23 = vector.broadcast %22 : f32 to vector<2x128xf32>
    %24 = arith.mulf %3, %23 : vector<2x128xf32>
    %25 = arith.addf %21, %24 : vector<2x128xf32>
    %cst_16 = arith.constant 0.000000e+00 : f32
    %26 = vector.broadcast %cst_16 : f32 to vector<2x128xf32>
    %27 = arith.maximumf %25, %26 : vector<2x128xf32>
    %c2 = arith.constant 2 : index
    %c0_17 = arith.constant 0 : index
    %28 = memref.load %arg3[%c2, %c0_17] : memref<16x2xf32, #tpu.memory_space<smem>>
    %29 = vector.broadcast %28 : f32 to vector<2x128xf32>
    %30 = arith.mulf %1, %29 : vector<2x128xf32>
    %c2_18 = arith.constant 2 : index
    %31 = memref.load %arg4[%c2_18] : memref<16xf32, #tpu.memory_space<smem>>
    %32 = vector.broadcast %31 : f32 to vector<2x128xf32>
    %33 = arith.addf %30, %32 : vector<2x128xf32>
    %c2_19 = arith.constant 2 : index
    %c1_20 = arith.constant 1 : index
    %34 = memref.load %arg3[%c2_19, %c1_20] : memref<16x2xf32, #tpu.memory_space<smem>>
    %35 = vector.broadcast %34 : f32 to vector<2x128xf32>
    %36 = arith.mulf %3, %35 : vector<2x128xf32>
    %37 = arith.addf %33, %36 : vector<2x128xf32>
    %cst_21 = arith.constant 0.000000e+00 : f32
    %38 = vector.broadcast %cst_21 : f32 to vector<2x128xf32>
    %39 = arith.maximumf %37, %38 : vector<2x128xf32>
    %c3 = arith.constant 3 : index
    %c0_22 = arith.constant 0 : index
    %40 = memref.load %arg3[%c3, %c0_22] : memref<16x2xf32, #tpu.memory_space<smem>>
    %41 = vector.broadcast %40 : f32 to vector<2x128xf32>
    %42 = arith.mulf %1, %41 : vector<2x128xf32>
    %c3_23 = arith.constant 3 : index
    %43 = memref.load %arg4[%c3_23] : memref<16xf32, #tpu.memory_space<smem>>
    %44 = vector.broadcast %43 : f32 to vector<2x128xf32>
    %45 = arith.addf %42, %44 : vector<2x128xf32>
    %c3_24 = arith.constant 3 : index
    %c1_25 = arith.constant 1 : index
    %46 = memref.load %arg3[%c3_24, %c1_25] : memref<16x2xf32, #tpu.memory_space<smem>>
    %47 = vector.broadcast %46 : f32 to vector<2x128xf32>
    %48 = arith.mulf %3, %47 : vector<2x128xf32>
    %49 = arith.addf %45, %48 : vector<2x128xf32>
    %cst_26 = arith.constant 0.000000e+00 : f32
    %50 = vector.broadcast %cst_26 : f32 to vector<2x128xf32>
    %51 = arith.maximumf %49, %50 : vector<2x128xf32>
    %c4 = arith.constant 4 : index
    %c0_27 = arith.constant 0 : index
    %52 = memref.load %arg3[%c4, %c0_27] : memref<16x2xf32, #tpu.memory_space<smem>>
    %53 = vector.broadcast %52 : f32 to vector<2x128xf32>
    %54 = arith.mulf %1, %53 : vector<2x128xf32>
    %c4_28 = arith.constant 4 : index
    %55 = memref.load %arg4[%c4_28] : memref<16xf32, #tpu.memory_space<smem>>
    %56 = vector.broadcast %55 : f32 to vector<2x128xf32>
    %57 = arith.addf %54, %56 : vector<2x128xf32>
    %c4_29 = arith.constant 4 : index
    %c1_30 = arith.constant 1 : index
    %58 = memref.load %arg3[%c4_29, %c1_30] : memref<16x2xf32, #tpu.memory_space<smem>>
    %59 = vector.broadcast %58 : f32 to vector<2x128xf32>
    %60 = arith.mulf %3, %59 : vector<2x128xf32>
    %61 = arith.addf %57, %60 : vector<2x128xf32>
    %cst_31 = arith.constant 0.000000e+00 : f32
    %62 = vector.broadcast %cst_31 : f32 to vector<2x128xf32>
    %63 = arith.maximumf %61, %62 : vector<2x128xf32>
    %c5 = arith.constant 5 : index
    %c0_32 = arith.constant 0 : index
    %64 = memref.load %arg3[%c5, %c0_32] : memref<16x2xf32, #tpu.memory_space<smem>>
    %65 = vector.broadcast %64 : f32 to vector<2x128xf32>
    %66 = arith.mulf %1, %65 : vector<2x128xf32>
    %c5_33 = arith.constant 5 : index
    %67 = memref.load %arg4[%c5_33] : memref<16xf32, #tpu.memory_space<smem>>
    %68 = vector.broadcast %67 : f32 to vector<2x128xf32>
    %69 = arith.addf %66, %68 : vector<2x128xf32>
    %c5_34 = arith.constant 5 : index
    %c1_35 = arith.constant 1 : index
    %70 = memref.load %arg3[%c5_34, %c1_35] : memref<16x2xf32, #tpu.memory_space<smem>>
    %71 = vector.broadcast %70 : f32 to vector<2x128xf32>
    %72 = arith.mulf %3, %71 : vector<2x128xf32>
    %73 = arith.addf %69, %72 : vector<2x128xf32>
    %cst_36 = arith.constant 0.000000e+00 : f32
    %74 = vector.broadcast %cst_36 : f32 to vector<2x128xf32>
    %75 = arith.maximumf %73, %74 : vector<2x128xf32>
    %c6 = arith.constant 6 : index
    %c0_37 = arith.constant 0 : index
    %76 = memref.load %arg3[%c6, %c0_37] : memref<16x2xf32, #tpu.memory_space<smem>>
    %77 = vector.broadcast %76 : f32 to vector<2x128xf32>
    %78 = arith.mulf %1, %77 : vector<2x128xf32>
    %c6_38 = arith.constant 6 : index
    %79 = memref.load %arg4[%c6_38] : memref<16xf32, #tpu.memory_space<smem>>
    %80 = vector.broadcast %79 : f32 to vector<2x128xf32>
    %81 = arith.addf %78, %80 : vector<2x128xf32>
    %c6_39 = arith.constant 6 : index
    %c1_40 = arith.constant 1 : index
    %82 = memref.load %arg3[%c6_39, %c1_40] : memref<16x2xf32, #tpu.memory_space<smem>>
    %83 = vector.broadcast %82 : f32 to vector<2x128xf32>
    %84 = arith.mulf %3, %83 : vector<2x128xf32>
    %85 = arith.addf %81, %84 : vector<2x128xf32>
    %cst_41 = arith.constant 0.000000e+00 : f32
    %86 = vector.broadcast %cst_41 : f32 to vector<2x128xf32>
    %87 = arith.maximumf %85, %86 : vector<2x128xf32>
    %c7 = arith.constant 7 : index
    %c0_42 = arith.constant 0 : index
    %88 = memref.load %arg3[%c7, %c0_42] : memref<16x2xf32, #tpu.memory_space<smem>>
    %89 = vector.broadcast %88 : f32 to vector<2x128xf32>
    %90 = arith.mulf %1, %89 : vector<2x128xf32>
    %c7_43 = arith.constant 7 : index
    %91 = memref.load %arg4[%c7_43] : memref<16xf32, #tpu.memory_space<smem>>
    %92 = vector.broadcast %91 : f32 to vector<2x128xf32>
    %93 = arith.addf %90, %92 : vector<2x128xf32>
    %c7_44 = arith.constant 7 : index
    %c1_45 = arith.constant 1 : index
    %94 = memref.load %arg3[%c7_44, %c1_45] : memref<16x2xf32, #tpu.memory_space<smem>>
    %95 = vector.broadcast %94 : f32 to vector<2x128xf32>
    %96 = arith.mulf %3, %95 : vector<2x128xf32>
    %97 = arith.addf %93, %96 : vector<2x128xf32>
    %cst_46 = arith.constant 0.000000e+00 : f32
    %98 = vector.broadcast %cst_46 : f32 to vector<2x128xf32>
    %99 = arith.maximumf %97, %98 : vector<2x128xf32>
    %c8 = arith.constant 8 : index
    %c0_47 = arith.constant 0 : index
    %100 = memref.load %arg3[%c8, %c0_47] : memref<16x2xf32, #tpu.memory_space<smem>>
    %101 = vector.broadcast %100 : f32 to vector<2x128xf32>
    %102 = arith.mulf %1, %101 : vector<2x128xf32>
    %c8_48 = arith.constant 8 : index
    %103 = memref.load %arg4[%c8_48] : memref<16xf32, #tpu.memory_space<smem>>
    %104 = vector.broadcast %103 : f32 to vector<2x128xf32>
    %105 = arith.addf %102, %104 : vector<2x128xf32>
    %c8_49 = arith.constant 8 : index
    %c1_50 = arith.constant 1 : index
    %106 = memref.load %arg3[%c8_49, %c1_50] : memref<16x2xf32, #tpu.memory_space<smem>>
    %107 = vector.broadcast %106 : f32 to vector<2x128xf32>
    %108 = arith.mulf %3, %107 : vector<2x128xf32>
    %109 = arith.addf %105, %108 : vector<2x128xf32>
    %cst_51 = arith.constant 0.000000e+00 : f32
    %110 = vector.broadcast %cst_51 : f32 to vector<2x128xf32>
    %111 = arith.maximumf %109, %110 : vector<2x128xf32>
    %c9 = arith.constant 9 : index
    %c0_52 = arith.constant 0 : index
    %112 = memref.load %arg3[%c9, %c0_52] : memref<16x2xf32, #tpu.memory_space<smem>>
    %113 = vector.broadcast %112 : f32 to vector<2x128xf32>
    %114 = arith.mulf %1, %113 : vector<2x128xf32>
    %c9_53 = arith.constant 9 : index
    %115 = memref.load %arg4[%c9_53] : memref<16xf32, #tpu.memory_space<smem>>
    %116 = vector.broadcast %115 : f32 to vector<2x128xf32>
    %117 = arith.addf %114, %116 : vector<2x128xf32>
    %c9_54 = arith.constant 9 : index
    %c1_55 = arith.constant 1 : index
    %118 = memref.load %arg3[%c9_54, %c1_55] : memref<16x2xf32, #tpu.memory_space<smem>>
    %119 = vector.broadcast %118 : f32 to vector<2x128xf32>
    %120 = arith.mulf %3, %119 : vector<2x128xf32>
    %121 = arith.addf %117, %120 : vector<2x128xf32>
    %cst_56 = arith.constant 0.000000e+00 : f32
    %122 = vector.broadcast %cst_56 : f32 to vector<2x128xf32>
    %123 = arith.maximumf %121, %122 : vector<2x128xf32>
    %c10 = arith.constant 10 : index
    %c0_57 = arith.constant 0 : index
    %124 = memref.load %arg3[%c10, %c0_57] : memref<16x2xf32, #tpu.memory_space<smem>>
    %125 = vector.broadcast %124 : f32 to vector<2x128xf32>
    %126 = arith.mulf %1, %125 : vector<2x128xf32>
    %c10_58 = arith.constant 10 : index
    %127 = memref.load %arg4[%c10_58] : memref<16xf32, #tpu.memory_space<smem>>
    %128 = vector.broadcast %127 : f32 to vector<2x128xf32>
    %129 = arith.addf %126, %128 : vector<2x128xf32>
    %c10_59 = arith.constant 10 : index
    %c1_60 = arith.constant 1 : index
    %130 = memref.load %arg3[%c10_59, %c1_60] : memref<16x2xf32, #tpu.memory_space<smem>>
    %131 = vector.broadcast %130 : f32 to vector<2x128xf32>
    %132 = arith.mulf %3, %131 : vector<2x128xf32>
    %133 = arith.addf %129, %132 : vector<2x128xf32>
    %cst_61 = arith.constant 0.000000e+00 : f32
    %134 = vector.broadcast %cst_61 : f32 to vector<2x128xf32>
    %135 = arith.maximumf %133, %134 : vector<2x128xf32>
    %c11 = arith.constant 11 : index
    %c0_62 = arith.constant 0 : index
    %136 = memref.load %arg3[%c11, %c0_62] : memref<16x2xf32, #tpu.memory_space<smem>>
    %137 = vector.broadcast %136 : f32 to vector<2x128xf32>
    %138 = arith.mulf %1, %137 : vector<2x128xf32>
    %c11_63 = arith.constant 11 : index
    %139 = memref.load %arg4[%c11_63] : memref<16xf32, #tpu.memory_space<smem>>
    %140 = vector.broadcast %139 : f32 to vector<2x128xf32>
    %141 = arith.addf %138, %140 : vector<2x128xf32>
    %c11_64 = arith.constant 11 : index
    %c1_65 = arith.constant 1 : index
    %142 = memref.load %arg3[%c11_64, %c1_65] : memref<16x2xf32, #tpu.memory_space<smem>>
    %143 = vector.broadcast %142 : f32 to vector<2x128xf32>
    %144 = arith.mulf %3, %143 : vector<2x128xf32>
    %145 = arith.addf %141, %144 : vector<2x128xf32>
    %cst_66 = arith.constant 0.000000e+00 : f32
    %146 = vector.broadcast %cst_66 : f32 to vector<2x128xf32>
    %147 = arith.maximumf %145, %146 : vector<2x128xf32>
    %c12 = arith.constant 12 : index
    %c0_67 = arith.constant 0 : index
    %148 = memref.load %arg3[%c12, %c0_67] : memref<16x2xf32, #tpu.memory_space<smem>>
    %149 = vector.broadcast %148 : f32 to vector<2x128xf32>
    %150 = arith.mulf %1, %149 : vector<2x128xf32>
    %c12_68 = arith.constant 12 : index
    %151 = memref.load %arg4[%c12_68] : memref<16xf32, #tpu.memory_space<smem>>
    %152 = vector.broadcast %151 : f32 to vector<2x128xf32>
    %153 = arith.addf %150, %152 : vector<2x128xf32>
    %c12_69 = arith.constant 12 : index
    %c1_70 = arith.constant 1 : index
    %154 = memref.load %arg3[%c12_69, %c1_70] : memref<16x2xf32, #tpu.memory_space<smem>>
    %155 = vector.broadcast %154 : f32 to vector<2x128xf32>
    %156 = arith.mulf %3, %155 : vector<2x128xf32>
    %157 = arith.addf %153, %156 : vector<2x128xf32>
    %cst_71 = arith.constant 0.000000e+00 : f32
    %158 = vector.broadcast %cst_71 : f32 to vector<2x128xf32>
    %159 = arith.maximumf %157, %158 : vector<2x128xf32>
    %c13 = arith.constant 13 : index
    %c0_72 = arith.constant 0 : index
    %160 = memref.load %arg3[%c13, %c0_72] : memref<16x2xf32, #tpu.memory_space<smem>>
    %161 = vector.broadcast %160 : f32 to vector<2x128xf32>
    %162 = arith.mulf %1, %161 : vector<2x128xf32>
    %c13_73 = arith.constant 13 : index
    %163 = memref.load %arg4[%c13_73] : memref<16xf32, #tpu.memory_space<smem>>
    %164 = vector.broadcast %163 : f32 to vector<2x128xf32>
    %165 = arith.addf %162, %164 : vector<2x128xf32>
    %c13_74 = arith.constant 13 : index
    %c1_75 = arith.constant 1 : index
    %166 = memref.load %arg3[%c13_74, %c1_75] : memref<16x2xf32, #tpu.memory_space<smem>>
    %167 = vector.broadcast %166 : f32 to vector<2x128xf32>
    %168 = arith.mulf %3, %167 : vector<2x128xf32>
    %169 = arith.addf %165, %168 : vector<2x128xf32>
    %cst_76 = arith.constant 0.000000e+00 : f32
    %170 = vector.broadcast %cst_76 : f32 to vector<2x128xf32>
    %171 = arith.maximumf %169, %170 : vector<2x128xf32>
    %c14 = arith.constant 14 : index
    %c0_77 = arith.constant 0 : index
    %172 = memref.load %arg3[%c14, %c0_77] : memref<16x2xf32, #tpu.memory_space<smem>>
    %173 = vector.broadcast %172 : f32 to vector<2x128xf32>
    %174 = arith.mulf %1, %173 : vector<2x128xf32>
    %c14_78 = arith.constant 14 : index
    %175 = memref.load %arg4[%c14_78] : memref<16xf32, #tpu.memory_space<smem>>
    %176 = vector.broadcast %175 : f32 to vector<2x128xf32>
    %177 = arith.addf %174, %176 : vector<2x128xf32>
    %c14_79 = arith.constant 14 : index
    %c1_80 = arith.constant 1 : index
    %178 = memref.load %arg3[%c14_79, %c1_80] : memref<16x2xf32, #tpu.memory_space<smem>>
    %179 = vector.broadcast %178 : f32 to vector<2x128xf32>
    %180 = arith.mulf %3, %179 : vector<2x128xf32>
    %181 = arith.addf %177, %180 : vector<2x128xf32>
    %cst_81 = arith.constant 0.000000e+00 : f32
    %182 = vector.broadcast %cst_81 : f32 to vector<2x128xf32>
    %183 = arith.maximumf %181, %182 : vector<2x128xf32>
    %c15 = arith.constant 15 : index
    %c0_82 = arith.constant 0 : index
    %184 = memref.load %arg3[%c15, %c0_82] : memref<16x2xf32, #tpu.memory_space<smem>>
    %185 = vector.broadcast %184 : f32 to vector<2x128xf32>
    %186 = arith.mulf %1, %185 : vector<2x128xf32>
    %c15_83 = arith.constant 15 : index
    %187 = memref.load %arg4[%c15_83] : memref<16xf32, #tpu.memory_space<smem>>
    %188 = vector.broadcast %187 : f32 to vector<2x128xf32>
    %189 = arith.addf %186, %188 : vector<2x128xf32>
    %c15_84 = arith.constant 15 : index
    %c1_85 = arith.constant 1 : index
    %190 = memref.load %arg3[%c15_84, %c1_85] : memref<16x2xf32, #tpu.memory_space<smem>>
    %191 = vector.broadcast %190 : f32 to vector<2x128xf32>
    %192 = arith.mulf %3, %191 : vector<2x128xf32>
    %193 = arith.addf %189, %192 : vector<2x128xf32>
    %cst_86 = arith.constant 0.000000e+00 : f32
    %194 = vector.broadcast %cst_86 : f32 to vector<2x128xf32>
    %195 = arith.maximumf %193, %194 : vector<2x128xf32>
    %c0_87 = arith.constant 0 : index
    %c0_88 = arith.constant 0 : index
    %196 = memref.load %arg5[%c0_87, %c0_88] : memref<16x16xf32, #tpu.memory_space<smem>>
    %197 = vector.broadcast %196 : f32 to vector<2x128xf32>
    %198 = arith.mulf %15, %197 : vector<2x128xf32>
    %c0_89 = arith.constant 0 : index
    %199 = memref.load %arg6[%c0_89] : memref<16xf32, #tpu.memory_space<smem>>
    %200 = vector.broadcast %199 : f32 to vector<2x128xf32>
    %201 = arith.addf %198, %200 : vector<2x128xf32>
    %c0_90 = arith.constant 0 : index
    %c1_91 = arith.constant 1 : index
    %202 = memref.load %arg5[%c0_90, %c1_91] : memref<16x16xf32, #tpu.memory_space<smem>>
    %203 = vector.broadcast %202 : f32 to vector<2x128xf32>
    %204 = arith.mulf %27, %203 : vector<2x128xf32>
    %205 = arith.addf %201, %204 : vector<2x128xf32>
    %c0_92 = arith.constant 0 : index
    %c2_93 = arith.constant 2 : index
    %206 = memref.load %arg5[%c0_92, %c2_93] : memref<16x16xf32, #tpu.memory_space<smem>>
    %207 = vector.broadcast %206 : f32 to vector<2x128xf32>
    %208 = arith.mulf %39, %207 : vector<2x128xf32>
    %209 = arith.addf %205, %208 : vector<2x128xf32>
    %c0_94 = arith.constant 0 : index
    %c3_95 = arith.constant 3 : index
    %210 = memref.load %arg5[%c0_94, %c3_95] : memref<16x16xf32, #tpu.memory_space<smem>>
    %211 = vector.broadcast %210 : f32 to vector<2x128xf32>
    %212 = arith.mulf %51, %211 : vector<2x128xf32>
    %213 = arith.addf %209, %212 : vector<2x128xf32>
    %c0_96 = arith.constant 0 : index
    %c4_97 = arith.constant 4 : index
    %214 = memref.load %arg5[%c0_96, %c4_97] : memref<16x16xf32, #tpu.memory_space<smem>>
    %215 = vector.broadcast %214 : f32 to vector<2x128xf32>
    %216 = arith.mulf %63, %215 : vector<2x128xf32>
    %217 = arith.addf %213, %216 : vector<2x128xf32>
    %c0_98 = arith.constant 0 : index
    %c5_99 = arith.constant 5 : index
    %218 = memref.load %arg5[%c0_98, %c5_99] : memref<16x16xf32, #tpu.memory_space<smem>>
    %219 = vector.broadcast %218 : f32 to vector<2x128xf32>
    %220 = arith.mulf %75, %219 : vector<2x128xf32>
    %221 = arith.addf %217, %220 : vector<2x128xf32>
    %c0_100 = arith.constant 0 : index
    %c6_101 = arith.constant 6 : index
    %222 = memref.load %arg5[%c0_100, %c6_101] : memref<16x16xf32, #tpu.memory_space<smem>>
    %223 = vector.broadcast %222 : f32 to vector<2x128xf32>
    %224 = arith.mulf %87, %223 : vector<2x128xf32>
    %225 = arith.addf %221, %224 : vector<2x128xf32>
    %c0_102 = arith.constant 0 : index
    %c7_103 = arith.constant 7 : index
    %226 = memref.load %arg5[%c0_102, %c7_103] : memref<16x16xf32, #tpu.memory_space<smem>>
    %227 = vector.broadcast %226 : f32 to vector<2x128xf32>
    %228 = arith.mulf %99, %227 : vector<2x128xf32>
    %229 = arith.addf %225, %228 : vector<2x128xf32>
    %c0_104 = arith.constant 0 : index
    %c8_105 = arith.constant 8 : index
    %230 = memref.load %arg5[%c0_104, %c8_105] : memref<16x16xf32, #tpu.memory_space<smem>>
    %231 = vector.broadcast %230 : f32 to vector<2x128xf32>
    %232 = arith.mulf %111, %231 : vector<2x128xf32>
    %233 = arith.addf %229, %232 : vector<2x128xf32>
    %c0_106 = arith.constant 0 : index
    %c9_107 = arith.constant 9 : index
    %234 = memref.load %arg5[%c0_106, %c9_107] : memref<16x16xf32, #tpu.memory_space<smem>>
    %235 = vector.broadcast %234 : f32 to vector<2x128xf32>
    %236 = arith.mulf %123, %235 : vector<2x128xf32>
    %237 = arith.addf %233, %236 : vector<2x128xf32>
    %c0_108 = arith.constant 0 : index
    %c10_109 = arith.constant 10 : index
    %238 = memref.load %arg5[%c0_108, %c10_109] : memref<16x16xf32, #tpu.memory_space<smem>>
    %239 = vector.broadcast %238 : f32 to vector<2x128xf32>
    %240 = arith.mulf %135, %239 : vector<2x128xf32>
    %241 = arith.addf %237, %240 : vector<2x128xf32>
    %c0_110 = arith.constant 0 : index
    %c11_111 = arith.constant 11 : index
    %242 = memref.load %arg5[%c0_110, %c11_111] : memref<16x16xf32, #tpu.memory_space<smem>>
    %243 = vector.broadcast %242 : f32 to vector<2x128xf32>
    %244 = arith.mulf %147, %243 : vector<2x128xf32>
    %245 = arith.addf %241, %244 : vector<2x128xf32>
    %c0_112 = arith.constant 0 : index
    %c12_113 = arith.constant 12 : index
    %246 = memref.load %arg5[%c0_112, %c12_113] : memref<16x16xf32, #tpu.memory_space<smem>>
    %247 = vector.broadcast %246 : f32 to vector<2x128xf32>
    %248 = arith.mulf %159, %247 : vector<2x128xf32>
    %249 = arith.addf %245, %248 : vector<2x128xf32>
    %c0_114 = arith.constant 0 : index
    %c13_115 = arith.constant 13 : index
    %250 = memref.load %arg5[%c0_114, %c13_115] : memref<16x16xf32, #tpu.memory_space<smem>>
    %251 = vector.broadcast %250 : f32 to vector<2x128xf32>
    %252 = arith.mulf %171, %251 : vector<2x128xf32>
    %253 = arith.addf %249, %252 : vector<2x128xf32>
    %c0_116 = arith.constant 0 : index
    %c14_117 = arith.constant 14 : index
    %254 = memref.load %arg5[%c0_116, %c14_117] : memref<16x16xf32, #tpu.memory_space<smem>>
    %255 = vector.broadcast %254 : f32 to vector<2x128xf32>
    %256 = arith.mulf %183, %255 : vector<2x128xf32>
    %257 = arith.addf %253, %256 : vector<2x128xf32>
    %c0_118 = arith.constant 0 : index
    %c15_119 = arith.constant 15 : index
    %258 = memref.load %arg5[%c0_118, %c15_119] : memref<16x16xf32, #tpu.memory_space<smem>>
    %259 = vector.broadcast %258 : f32 to vector<2x128xf32>
    %260 = arith.mulf %195, %259 : vector<2x128xf32>
    %261 = arith.addf %257, %260 : vector<2x128xf32>
    %cst_120 = arith.constant 0.000000e+00 : f32
    %262 = vector.broadcast %cst_120 : f32 to vector<2x128xf32>
    %263 = arith.maximumf %261, %262 : vector<2x128xf32>
    %c1_121 = arith.constant 1 : index
    %c0_122 = arith.constant 0 : index
    %264 = memref.load %arg5[%c1_121, %c0_122] : memref<16x16xf32, #tpu.memory_space<smem>>
    %265 = vector.broadcast %264 : f32 to vector<2x128xf32>
    %266 = arith.mulf %15, %265 : vector<2x128xf32>
    %c1_123 = arith.constant 1 : index
    %267 = memref.load %arg6[%c1_123] : memref<16xf32, #tpu.memory_space<smem>>
    %268 = vector.broadcast %267 : f32 to vector<2x128xf32>
    %269 = arith.addf %266, %268 : vector<2x128xf32>
    %c1_124 = arith.constant 1 : index
    %c1_125 = arith.constant 1 : index
    %270 = memref.load %arg5[%c1_124, %c1_125] : memref<16x16xf32, #tpu.memory_space<smem>>
    %271 = vector.broadcast %270 : f32 to vector<2x128xf32>
    %272 = arith.mulf %27, %271 : vector<2x128xf32>
    %273 = arith.addf %269, %272 : vector<2x128xf32>
    %c1_126 = arith.constant 1 : index
    %c2_127 = arith.constant 2 : index
    %274 = memref.load %arg5[%c1_126, %c2_127] : memref<16x16xf32, #tpu.memory_space<smem>>
    %275 = vector.broadcast %274 : f32 to vector<2x128xf32>
    %276 = arith.mulf %39, %275 : vector<2x128xf32>
    %277 = arith.addf %273, %276 : vector<2x128xf32>
    %c1_128 = arith.constant 1 : index
    %c3_129 = arith.constant 3 : index
    %278 = memref.load %arg5[%c1_128, %c3_129] : memref<16x16xf32, #tpu.memory_space<smem>>
    %279 = vector.broadcast %278 : f32 to vector<2x128xf32>
    %280 = arith.mulf %51, %279 : vector<2x128xf32>
    %281 = arith.addf %277, %280 : vector<2x128xf32>
    %c1_130 = arith.constant 1 : index
    %c4_131 = arith.constant 4 : index
    %282 = memref.load %arg5[%c1_130, %c4_131] : memref<16x16xf32, #tpu.memory_space<smem>>
    %283 = vector.broadcast %282 : f32 to vector<2x128xf32>
    %284 = arith.mulf %63, %283 : vector<2x128xf32>
    %285 = arith.addf %281, %284 : vector<2x128xf32>
    %c1_132 = arith.constant 1 : index
    %c5_133 = arith.constant 5 : index
    %286 = memref.load %arg5[%c1_132, %c5_133] : memref<16x16xf32, #tpu.memory_space<smem>>
    %287 = vector.broadcast %286 : f32 to vector<2x128xf32>
    %288 = arith.mulf %75, %287 : vector<2x128xf32>
    %289 = arith.addf %285, %288 : vector<2x128xf32>
    %c1_134 = arith.constant 1 : index
    %c6_135 = arith.constant 6 : index
    %290 = memref.load %arg5[%c1_134, %c6_135] : memref<16x16xf32, #tpu.memory_space<smem>>
    %291 = vector.broadcast %290 : f32 to vector<2x128xf32>
    %292 = arith.mulf %87, %291 : vector<2x128xf32>
    %293 = arith.addf %289, %292 : vector<2x128xf32>
    %c1_136 = arith.constant 1 : index
    %c7_137 = arith.constant 7 : index
    %294 = memref.load %arg5[%c1_136, %c7_137] : memref<16x16xf32, #tpu.memory_space<smem>>
    %295 = vector.broadcast %294 : f32 to vector<2x128xf32>
    %296 = arith.mulf %99, %295 : vector<2x128xf32>
    %297 = arith.addf %293, %296 : vector<2x128xf32>
    %c1_138 = arith.constant 1 : index
    %c8_139 = arith.constant 8 : index
    %298 = memref.load %arg5[%c1_138, %c8_139] : memref<16x16xf32, #tpu.memory_space<smem>>
    %299 = vector.broadcast %298 : f32 to vector<2x128xf32>
    %300 = arith.mulf %111, %299 : vector<2x128xf32>
    %301 = arith.addf %297, %300 : vector<2x128xf32>
    %c1_140 = arith.constant 1 : index
    %c9_141 = arith.constant 9 : index
    %302 = memref.load %arg5[%c1_140, %c9_141] : memref<16x16xf32, #tpu.memory_space<smem>>
    %303 = vector.broadcast %302 : f32 to vector<2x128xf32>
    %304 = arith.mulf %123, %303 : vector<2x128xf32>
    %305 = arith.addf %301, %304 : vector<2x128xf32>
    %c1_142 = arith.constant 1 : index
    %c10_143 = arith.constant 10 : index
    %306 = memref.load %arg5[%c1_142, %c10_143] : memref<16x16xf32, #tpu.memory_space<smem>>
    %307 = vector.broadcast %306 : f32 to vector<2x128xf32>
    %308 = arith.mulf %135, %307 : vector<2x128xf32>
    %309 = arith.addf %305, %308 : vector<2x128xf32>
    %c1_144 = arith.constant 1 : index
    %c11_145 = arith.constant 11 : index
    %310 = memref.load %arg5[%c1_144, %c11_145] : memref<16x16xf32, #tpu.memory_space<smem>>
    %311 = vector.broadcast %310 : f32 to vector<2x128xf32>
    %312 = arith.mulf %147, %311 : vector<2x128xf32>
    %313 = arith.addf %309, %312 : vector<2x128xf32>
    %c1_146 = arith.constant 1 : index
    %c12_147 = arith.constant 12 : index
    %314 = memref.load %arg5[%c1_146, %c12_147] : memref<16x16xf32, #tpu.memory_space<smem>>
    %315 = vector.broadcast %314 : f32 to vector<2x128xf32>
    %316 = arith.mulf %159, %315 : vector<2x128xf32>
    %317 = arith.addf %313, %316 : vector<2x128xf32>
    %c1_148 = arith.constant 1 : index
    %c13_149 = arith.constant 13 : index
    %318 = memref.load %arg5[%c1_148, %c13_149] : memref<16x16xf32, #tpu.memory_space<smem>>
    %319 = vector.broadcast %318 : f32 to vector<2x128xf32>
    %320 = arith.mulf %171, %319 : vector<2x128xf32>
    %321 = arith.addf %317, %320 : vector<2x128xf32>
    %c1_150 = arith.constant 1 : index
    %c14_151 = arith.constant 14 : index
    %322 = memref.load %arg5[%c1_150, %c14_151] : memref<16x16xf32, #tpu.memory_space<smem>>
    %323 = vector.broadcast %322 : f32 to vector<2x128xf32>
    %324 = arith.mulf %183, %323 : vector<2x128xf32>
    %325 = arith.addf %321, %324 : vector<2x128xf32>
    %c1_152 = arith.constant 1 : index
    %c15_153 = arith.constant 15 : index
    %326 = memref.load %arg5[%c1_152, %c15_153] : memref<16x16xf32, #tpu.memory_space<smem>>
    %327 = vector.broadcast %326 : f32 to vector<2x128xf32>
    %328 = arith.mulf %195, %327 : vector<2x128xf32>
    %329 = arith.addf %325, %328 : vector<2x128xf32>
    %cst_154 = arith.constant 0.000000e+00 : f32
    %330 = vector.broadcast %cst_154 : f32 to vector<2x128xf32>
    %331 = arith.maximumf %329, %330 : vector<2x128xf32>
    %c2_155 = arith.constant 2 : index
    %c0_156 = arith.constant 0 : index
    %332 = memref.load %arg5[%c2_155, %c0_156] : memref<16x16xf32, #tpu.memory_space<smem>>
    %333 = vector.broadcast %332 : f32 to vector<2x128xf32>
    %334 = arith.mulf %15, %333 : vector<2x128xf32>
    %c2_157 = arith.constant 2 : index
    %335 = memref.load %arg6[%c2_157] : memref<16xf32, #tpu.memory_space<smem>>
    %336 = vector.broadcast %335 : f32 to vector<2x128xf32>
    %337 = arith.addf %334, %336 : vector<2x128xf32>
    %c2_158 = arith.constant 2 : index
    %c1_159 = arith.constant 1 : index
    %338 = memref.load %arg5[%c2_158, %c1_159] : memref<16x16xf32, #tpu.memory_space<smem>>
    %339 = vector.broadcast %338 : f32 to vector<2x128xf32>
    %340 = arith.mulf %27, %339 : vector<2x128xf32>
    %341 = arith.addf %337, %340 : vector<2x128xf32>
    %c2_160 = arith.constant 2 : index
    %c2_161 = arith.constant 2 : index
    %342 = memref.load %arg5[%c2_160, %c2_161] : memref<16x16xf32, #tpu.memory_space<smem>>
    %343 = vector.broadcast %342 : f32 to vector<2x128xf32>
    %344 = arith.mulf %39, %343 : vector<2x128xf32>
    %345 = arith.addf %341, %344 : vector<2x128xf32>
    %c2_162 = arith.constant 2 : index
    %c3_163 = arith.constant 3 : index
    %346 = memref.load %arg5[%c2_162, %c3_163] : memref<16x16xf32, #tpu.memory_space<smem>>
    %347 = vector.broadcast %346 : f32 to vector<2x128xf32>
    %348 = arith.mulf %51, %347 : vector<2x128xf32>
    %349 = arith.addf %345, %348 : vector<2x128xf32>
    %c2_164 = arith.constant 2 : index
    %c4_165 = arith.constant 4 : index
    %350 = memref.load %arg5[%c2_164, %c4_165] : memref<16x16xf32, #tpu.memory_space<smem>>
    %351 = vector.broadcast %350 : f32 to vector<2x128xf32>
    %352 = arith.mulf %63, %351 : vector<2x128xf32>
    %353 = arith.addf %349, %352 : vector<2x128xf32>
    %c2_166 = arith.constant 2 : index
    %c5_167 = arith.constant 5 : index
    %354 = memref.load %arg5[%c2_166, %c5_167] : memref<16x16xf32, #tpu.memory_space<smem>>
    %355 = vector.broadcast %354 : f32 to vector<2x128xf32>
    %356 = arith.mulf %75, %355 : vector<2x128xf32>
    %357 = arith.addf %353, %356 : vector<2x128xf32>
    %c2_168 = arith.constant 2 : index
    %c6_169 = arith.constant 6 : index
    %358 = memref.load %arg5[%c2_168, %c6_169] : memref<16x16xf32, #tpu.memory_space<smem>>
    %359 = vector.broadcast %358 : f32 to vector<2x128xf32>
    %360 = arith.mulf %87, %359 : vector<2x128xf32>
    %361 = arith.addf %357, %360 : vector<2x128xf32>
    %c2_170 = arith.constant 2 : index
    %c7_171 = arith.constant 7 : index
    %362 = memref.load %arg5[%c2_170, %c7_171] : memref<16x16xf32, #tpu.memory_space<smem>>
    %363 = vector.broadcast %362 : f32 to vector<2x128xf32>
    %364 = arith.mulf %99, %363 : vector<2x128xf32>
    %365 = arith.addf %361, %364 : vector<2x128xf32>
    %c2_172 = arith.constant 2 : index
    %c8_173 = arith.constant 8 : index
    %366 = memref.load %arg5[%c2_172, %c8_173] : memref<16x16xf32, #tpu.memory_space<smem>>
    %367 = vector.broadcast %366 : f32 to vector<2x128xf32>
    %368 = arith.mulf %111, %367 : vector<2x128xf32>
    %369 = arith.addf %365, %368 : vector<2x128xf32>
    %c2_174 = arith.constant 2 : index
    %c9_175 = arith.constant 9 : index
    %370 = memref.load %arg5[%c2_174, %c9_175] : memref<16x16xf32, #tpu.memory_space<smem>>
    %371 = vector.broadcast %370 : f32 to vector<2x128xf32>
    %372 = arith.mulf %123, %371 : vector<2x128xf32>
    %373 = arith.addf %369, %372 : vector<2x128xf32>
    %c2_176 = arith.constant 2 : index
    %c10_177 = arith.constant 10 : index
    %374 = memref.load %arg5[%c2_176, %c10_177] : memref<16x16xf32, #tpu.memory_space<smem>>
    %375 = vector.broadcast %374 : f32 to vector<2x128xf32>
    %376 = arith.mulf %135, %375 : vector<2x128xf32>
    %377 = arith.addf %373, %376 : vector<2x128xf32>
    %c2_178 = arith.constant 2 : index
    %c11_179 = arith.constant 11 : index
    %378 = memref.load %arg5[%c2_178, %c11_179] : memref<16x16xf32, #tpu.memory_space<smem>>
    %379 = vector.broadcast %378 : f32 to vector<2x128xf32>
    %380 = arith.mulf %147, %379 : vector<2x128xf32>
    %381 = arith.addf %377, %380 : vector<2x128xf32>
    %c2_180 = arith.constant 2 : index
    %c12_181 = arith.constant 12 : index
    %382 = memref.load %arg5[%c2_180, %c12_181] : memref<16x16xf32, #tpu.memory_space<smem>>
    %383 = vector.broadcast %382 : f32 to vector<2x128xf32>
    %384 = arith.mulf %159, %383 : vector<2x128xf32>
    %385 = arith.addf %381, %384 : vector<2x128xf32>
    %c2_182 = arith.constant 2 : index
    %c13_183 = arith.constant 13 : index
    %386 = memref.load %arg5[%c2_182, %c13_183] : memref<16x16xf32, #tpu.memory_space<smem>>
    %387 = vector.broadcast %386 : f32 to vector<2x128xf32>
    %388 = arith.mulf %171, %387 : vector<2x128xf32>
    %389 = arith.addf %385, %388 : vector<2x128xf32>
    %c2_184 = arith.constant 2 : index
    %c14_185 = arith.constant 14 : index
    %390 = memref.load %arg5[%c2_184, %c14_185] : memref<16x16xf32, #tpu.memory_space<smem>>
    %391 = vector.broadcast %390 : f32 to vector<2x128xf32>
    %392 = arith.mulf %183, %391 : vector<2x128xf32>
    %393 = arith.addf %389, %392 : vector<2x128xf32>
    %c2_186 = arith.constant 2 : index
    %c15_187 = arith.constant 15 : index
    %394 = memref.load %arg5[%c2_186, %c15_187] : memref<16x16xf32, #tpu.memory_space<smem>>
    %395 = vector.broadcast %394 : f32 to vector<2x128xf32>
    %396 = arith.mulf %195, %395 : vector<2x128xf32>
    %397 = arith.addf %393, %396 : vector<2x128xf32>
    %cst_188 = arith.constant 0.000000e+00 : f32
    %398 = vector.broadcast %cst_188 : f32 to vector<2x128xf32>
    %399 = arith.maximumf %397, %398 : vector<2x128xf32>
    %c3_189 = arith.constant 3 : index
    %c0_190 = arith.constant 0 : index
    %400 = memref.load %arg5[%c3_189, %c0_190] : memref<16x16xf32, #tpu.memory_space<smem>>
    %401 = vector.broadcast %400 : f32 to vector<2x128xf32>
    %402 = arith.mulf %15, %401 : vector<2x128xf32>
    %c3_191 = arith.constant 3 : index
    %403 = memref.load %arg6[%c3_191] : memref<16xf32, #tpu.memory_space<smem>>
    %404 = vector.broadcast %403 : f32 to vector<2x128xf32>
    %405 = arith.addf %402, %404 : vector<2x128xf32>
    %c3_192 = arith.constant 3 : index
    %c1_193 = arith.constant 1 : index
    %406 = memref.load %arg5[%c3_192, %c1_193] : memref<16x16xf32, #tpu.memory_space<smem>>
    %407 = vector.broadcast %406 : f32 to vector<2x128xf32>
    %408 = arith.mulf %27, %407 : vector<2x128xf32>
    %409 = arith.addf %405, %408 : vector<2x128xf32>
    %c3_194 = arith.constant 3 : index
    %c2_195 = arith.constant 2 : index
    %410 = memref.load %arg5[%c3_194, %c2_195] : memref<16x16xf32, #tpu.memory_space<smem>>
    %411 = vector.broadcast %410 : f32 to vector<2x128xf32>
    %412 = arith.mulf %39, %411 : vector<2x128xf32>
    %413 = arith.addf %409, %412 : vector<2x128xf32>
    %c3_196 = arith.constant 3 : index
    %c3_197 = arith.constant 3 : index
    %414 = memref.load %arg5[%c3_196, %c3_197] : memref<16x16xf32, #tpu.memory_space<smem>>
    %415 = vector.broadcast %414 : f32 to vector<2x128xf32>
    %416 = arith.mulf %51, %415 : vector<2x128xf32>
    %417 = arith.addf %413, %416 : vector<2x128xf32>
    %c3_198 = arith.constant 3 : index
    %c4_199 = arith.constant 4 : index
    %418 = memref.load %arg5[%c3_198, %c4_199] : memref<16x16xf32, #tpu.memory_space<smem>>
    %419 = vector.broadcast %418 : f32 to vector<2x128xf32>
    %420 = arith.mulf %63, %419 : vector<2x128xf32>
    %421 = arith.addf %417, %420 : vector<2x128xf32>
    %c3_200 = arith.constant 3 : index
    %c5_201 = arith.constant 5 : index
    %422 = memref.load %arg5[%c3_200, %c5_201] : memref<16x16xf32, #tpu.memory_space<smem>>
    %423 = vector.broadcast %422 : f32 to vector<2x128xf32>
    %424 = arith.mulf %75, %423 : vector<2x128xf32>
    %425 = arith.addf %421, %424 : vector<2x128xf32>
    %c3_202 = arith.constant 3 : index
    %c6_203 = arith.constant 6 : index
    %426 = memref.load %arg5[%c3_202, %c6_203] : memref<16x16xf32, #tpu.memory_space<smem>>
    %427 = vector.broadcast %426 : f32 to vector<2x128xf32>
    %428 = arith.mulf %87, %427 : vector<2x128xf32>
    %429 = arith.addf %425, %428 : vector<2x128xf32>
    %c3_204 = arith.constant 3 : index
    %c7_205 = arith.constant 7 : index
    %430 = memref.load %arg5[%c3_204, %c7_205] : memref<16x16xf32, #tpu.memory_space<smem>>
    %431 = vector.broadcast %430 : f32 to vector<2x128xf32>
    %432 = arith.mulf %99, %431 : vector<2x128xf32>
    %433 = arith.addf %429, %432 : vector<2x128xf32>
    %c3_206 = arith.constant 3 : index
    %c8_207 = arith.constant 8 : index
    %434 = memref.load %arg5[%c3_206, %c8_207] : memref<16x16xf32, #tpu.memory_space<smem>>
    %435 = vector.broadcast %434 : f32 to vector<2x128xf32>
    %436 = arith.mulf %111, %435 : vector<2x128xf32>
    %437 = arith.addf %433, %436 : vector<2x128xf32>
    %c3_208 = arith.constant 3 : index
    %c9_209 = arith.constant 9 : index
    %438 = memref.load %arg5[%c3_208, %c9_209] : memref<16x16xf32, #tpu.memory_space<smem>>
    %439 = vector.broadcast %438 : f32 to vector<2x128xf32>
    %440 = arith.mulf %123, %439 : vector<2x128xf32>
    %441 = arith.addf %437, %440 : vector<2x128xf32>
    %c3_210 = arith.constant 3 : index
    %c10_211 = arith.constant 10 : index
    %442 = memref.load %arg5[%c3_210, %c10_211] : memref<16x16xf32, #tpu.memory_space<smem>>
    %443 = vector.broadcast %442 : f32 to vector<2x128xf32>
    %444 = arith.mulf %135, %443 : vector<2x128xf32>
    %445 = arith.addf %441, %444 : vector<2x128xf32>
    %c3_212 = arith.constant 3 : index
    %c11_213 = arith.constant 11 : index
    %446 = memref.load %arg5[%c3_212, %c11_213] : memref<16x16xf32, #tpu.memory_space<smem>>
    %447 = vector.broadcast %446 : f32 to vector<2x128xf32>
    %448 = arith.mulf %147, %447 : vector<2x128xf32>
    %449 = arith.addf %445, %448 : vector<2x128xf32>
    %c3_214 = arith.constant 3 : index
    %c12_215 = arith.constant 12 : index
    %450 = memref.load %arg5[%c3_214, %c12_215] : memref<16x16xf32, #tpu.memory_space<smem>>
    %451 = vector.broadcast %450 : f32 to vector<2x128xf32>
    %452 = arith.mulf %159, %451 : vector<2x128xf32>
    %453 = arith.addf %449, %452 : vector<2x128xf32>
    %c3_216 = arith.constant 3 : index
    %c13_217 = arith.constant 13 : index
    %454 = memref.load %arg5[%c3_216, %c13_217] : memref<16x16xf32, #tpu.memory_space<smem>>
    %455 = vector.broadcast %454 : f32 to vector<2x128xf32>
    %456 = arith.mulf %171, %455 : vector<2x128xf32>
    %457 = arith.addf %453, %456 : vector<2x128xf32>
    %c3_218 = arith.constant 3 : index
    %c14_219 = arith.constant 14 : index
    %458 = memref.load %arg5[%c3_218, %c14_219] : memref<16x16xf32, #tpu.memory_space<smem>>
    %459 = vector.broadcast %458 : f32 to vector<2x128xf32>
    %460 = arith.mulf %183, %459 : vector<2x128xf32>
    %461 = arith.addf %457, %460 : vector<2x128xf32>
    %c3_220 = arith.constant 3 : index
    %c15_221 = arith.constant 15 : index
    %462 = memref.load %arg5[%c3_220, %c15_221] : memref<16x16xf32, #tpu.memory_space<smem>>
    %463 = vector.broadcast %462 : f32 to vector<2x128xf32>
    %464 = arith.mulf %195, %463 : vector<2x128xf32>
    %465 = arith.addf %461, %464 : vector<2x128xf32>
    %cst_222 = arith.constant 0.000000e+00 : f32
    %466 = vector.broadcast %cst_222 : f32 to vector<2x128xf32>
    %467 = arith.maximumf %465, %466 : vector<2x128xf32>
    %c4_223 = arith.constant 4 : index
    %c0_224 = arith.constant 0 : index
    %468 = memref.load %arg5[%c4_223, %c0_224] : memref<16x16xf32, #tpu.memory_space<smem>>
    %469 = vector.broadcast %468 : f32 to vector<2x128xf32>
    %470 = arith.mulf %15, %469 : vector<2x128xf32>
    %c4_225 = arith.constant 4 : index
    %471 = memref.load %arg6[%c4_225] : memref<16xf32, #tpu.memory_space<smem>>
    %472 = vector.broadcast %471 : f32 to vector<2x128xf32>
    %473 = arith.addf %470, %472 : vector<2x128xf32>
    %c4_226 = arith.constant 4 : index
    %c1_227 = arith.constant 1 : index
    %474 = memref.load %arg5[%c4_226, %c1_227] : memref<16x16xf32, #tpu.memory_space<smem>>
    %475 = vector.broadcast %474 : f32 to vector<2x128xf32>
    %476 = arith.mulf %27, %475 : vector<2x128xf32>
    %477 = arith.addf %473, %476 : vector<2x128xf32>
    %c4_228 = arith.constant 4 : index
    %c2_229 = arith.constant 2 : index
    %478 = memref.load %arg5[%c4_228, %c2_229] : memref<16x16xf32, #tpu.memory_space<smem>>
    %479 = vector.broadcast %478 : f32 to vector<2x128xf32>
    %480 = arith.mulf %39, %479 : vector<2x128xf32>
    %481 = arith.addf %477, %480 : vector<2x128xf32>
    %c4_230 = arith.constant 4 : index
    %c3_231 = arith.constant 3 : index
    %482 = memref.load %arg5[%c4_230, %c3_231] : memref<16x16xf32, #tpu.memory_space<smem>>
    %483 = vector.broadcast %482 : f32 to vector<2x128xf32>
    %484 = arith.mulf %51, %483 : vector<2x128xf32>
    %485 = arith.addf %481, %484 : vector<2x128xf32>
    %c4_232 = arith.constant 4 : index
    %c4_233 = arith.constant 4 : index
    %486 = memref.load %arg5[%c4_232, %c4_233] : memref<16x16xf32, #tpu.memory_space<smem>>
    %487 = vector.broadcast %486 : f32 to vector<2x128xf32>
    %488 = arith.mulf %63, %487 : vector<2x128xf32>
    %489 = arith.addf %485, %488 : vector<2x128xf32>
    %c4_234 = arith.constant 4 : index
    %c5_235 = arith.constant 5 : index
    %490 = memref.load %arg5[%c4_234, %c5_235] : memref<16x16xf32, #tpu.memory_space<smem>>
    %491 = vector.broadcast %490 : f32 to vector<2x128xf32>
    %492 = arith.mulf %75, %491 : vector<2x128xf32>
    %493 = arith.addf %489, %492 : vector<2x128xf32>
    %c4_236 = arith.constant 4 : index
    %c6_237 = arith.constant 6 : index
    %494 = memref.load %arg5[%c4_236, %c6_237] : memref<16x16xf32, #tpu.memory_space<smem>>
    %495 = vector.broadcast %494 : f32 to vector<2x128xf32>
    %496 = arith.mulf %87, %495 : vector<2x128xf32>
    %497 = arith.addf %493, %496 : vector<2x128xf32>
    %c4_238 = arith.constant 4 : index
    %c7_239 = arith.constant 7 : index
    %498 = memref.load %arg5[%c4_238, %c7_239] : memref<16x16xf32, #tpu.memory_space<smem>>
    %499 = vector.broadcast %498 : f32 to vector<2x128xf32>
    %500 = arith.mulf %99, %499 : vector<2x128xf32>
    %501 = arith.addf %497, %500 : vector<2x128xf32>
    %c4_240 = arith.constant 4 : index
    %c8_241 = arith.constant 8 : index
    %502 = memref.load %arg5[%c4_240, %c8_241] : memref<16x16xf32, #tpu.memory_space<smem>>
    %503 = vector.broadcast %502 : f32 to vector<2x128xf32>
    %504 = arith.mulf %111, %503 : vector<2x128xf32>
    %505 = arith.addf %501, %504 : vector<2x128xf32>
    %c4_242 = arith.constant 4 : index
    %c9_243 = arith.constant 9 : index
    %506 = memref.load %arg5[%c4_242, %c9_243] : memref<16x16xf32, #tpu.memory_space<smem>>
    %507 = vector.broadcast %506 : f32 to vector<2x128xf32>
    %508 = arith.mulf %123, %507 : vector<2x128xf32>
    %509 = arith.addf %505, %508 : vector<2x128xf32>
    %c4_244 = arith.constant 4 : index
    %c10_245 = arith.constant 10 : index
    %510 = memref.load %arg5[%c4_244, %c10_245] : memref<16x16xf32, #tpu.memory_space<smem>>
    %511 = vector.broadcast %510 : f32 to vector<2x128xf32>
    %512 = arith.mulf %135, %511 : vector<2x128xf32>
    %513 = arith.addf %509, %512 : vector<2x128xf32>
    %c4_246 = arith.constant 4 : index
    %c11_247 = arith.constant 11 : index
    %514 = memref.load %arg5[%c4_246, %c11_247] : memref<16x16xf32, #tpu.memory_space<smem>>
    %515 = vector.broadcast %514 : f32 to vector<2x128xf32>
    %516 = arith.mulf %147, %515 : vector<2x128xf32>
    %517 = arith.addf %513, %516 : vector<2x128xf32>
    %c4_248 = arith.constant 4 : index
    %c12_249 = arith.constant 12 : index
    %518 = memref.load %arg5[%c4_248, %c12_249] : memref<16x16xf32, #tpu.memory_space<smem>>
    %519 = vector.broadcast %518 : f32 to vector<2x128xf32>
    %520 = arith.mulf %159, %519 : vector<2x128xf32>
    %521 = arith.addf %517, %520 : vector<2x128xf32>
    %c4_250 = arith.constant 4 : index
    %c13_251 = arith.constant 13 : index
    %522 = memref.load %arg5[%c4_250, %c13_251] : memref<16x16xf32, #tpu.memory_space<smem>>
    %523 = vector.broadcast %522 : f32 to vector<2x128xf32>
    %524 = arith.mulf %171, %523 : vector<2x128xf32>
    %525 = arith.addf %521, %524 : vector<2x128xf32>
    %c4_252 = arith.constant 4 : index
    %c14_253 = arith.constant 14 : index
    %526 = memref.load %arg5[%c4_252, %c14_253] : memref<16x16xf32, #tpu.memory_space<smem>>
    %527 = vector.broadcast %526 : f32 to vector<2x128xf32>
    %528 = arith.mulf %183, %527 : vector<2x128xf32>
    %529 = arith.addf %525, %528 : vector<2x128xf32>
    %c4_254 = arith.constant 4 : index
    %c15_255 = arith.constant 15 : index
    %530 = memref.load %arg5[%c4_254, %c15_255] : memref<16x16xf32, #tpu.memory_space<smem>>
    %531 = vector.broadcast %530 : f32 to vector<2x128xf32>
    %532 = arith.mulf %195, %531 : vector<2x128xf32>
    %533 = arith.addf %529, %532 : vector<2x128xf32>
    %cst_256 = arith.constant 0.000000e+00 : f32
    %534 = vector.broadcast %cst_256 : f32 to vector<2x128xf32>
    %535 = arith.maximumf %533, %534 : vector<2x128xf32>
    %c5_257 = arith.constant 5 : index
    %c0_258 = arith.constant 0 : index
    %536 = memref.load %arg5[%c5_257, %c0_258] : memref<16x16xf32, #tpu.memory_space<smem>>
    %537 = vector.broadcast %536 : f32 to vector<2x128xf32>
    %538 = arith.mulf %15, %537 : vector<2x128xf32>
    %c5_259 = arith.constant 5 : index
    %539 = memref.load %arg6[%c5_259] : memref<16xf32, #tpu.memory_space<smem>>
    %540 = vector.broadcast %539 : f32 to vector<2x128xf32>
    %541 = arith.addf %538, %540 : vector<2x128xf32>
    %c5_260 = arith.constant 5 : index
    %c1_261 = arith.constant 1 : index
    %542 = memref.load %arg5[%c5_260, %c1_261] : memref<16x16xf32, #tpu.memory_space<smem>>
    %543 = vector.broadcast %542 : f32 to vector<2x128xf32>
    %544 = arith.mulf %27, %543 : vector<2x128xf32>
    %545 = arith.addf %541, %544 : vector<2x128xf32>
    %c5_262 = arith.constant 5 : index
    %c2_263 = arith.constant 2 : index
    %546 = memref.load %arg5[%c5_262, %c2_263] : memref<16x16xf32, #tpu.memory_space<smem>>
    %547 = vector.broadcast %546 : f32 to vector<2x128xf32>
    %548 = arith.mulf %39, %547 : vector<2x128xf32>
    %549 = arith.addf %545, %548 : vector<2x128xf32>
    %c5_264 = arith.constant 5 : index
    %c3_265 = arith.constant 3 : index
    %550 = memref.load %arg5[%c5_264, %c3_265] : memref<16x16xf32, #tpu.memory_space<smem>>
    %551 = vector.broadcast %550 : f32 to vector<2x128xf32>
    %552 = arith.mulf %51, %551 : vector<2x128xf32>
    %553 = arith.addf %549, %552 : vector<2x128xf32>
    %c5_266 = arith.constant 5 : index
    %c4_267 = arith.constant 4 : index
    %554 = memref.load %arg5[%c5_266, %c4_267] : memref<16x16xf32, #tpu.memory_space<smem>>
    %555 = vector.broadcast %554 : f32 to vector<2x128xf32>
    %556 = arith.mulf %63, %555 : vector<2x128xf32>
    %557 = arith.addf %553, %556 : vector<2x128xf32>
    %c5_268 = arith.constant 5 : index
    %c5_269 = arith.constant 5 : index
    %558 = memref.load %arg5[%c5_268, %c5_269] : memref<16x16xf32, #tpu.memory_space<smem>>
    %559 = vector.broadcast %558 : f32 to vector<2x128xf32>
    %560 = arith.mulf %75, %559 : vector<2x128xf32>
    %561 = arith.addf %557, %560 : vector<2x128xf32>
    %c5_270 = arith.constant 5 : index
    %c6_271 = arith.constant 6 : index
    %562 = memref.load %arg5[%c5_270, %c6_271] : memref<16x16xf32, #tpu.memory_space<smem>>
    %563 = vector.broadcast %562 : f32 to vector<2x128xf32>
    %564 = arith.mulf %87, %563 : vector<2x128xf32>
    %565 = arith.addf %561, %564 : vector<2x128xf32>
    %c5_272 = arith.constant 5 : index
    %c7_273 = arith.constant 7 : index
    %566 = memref.load %arg5[%c5_272, %c7_273] : memref<16x16xf32, #tpu.memory_space<smem>>
    %567 = vector.broadcast %566 : f32 to vector<2x128xf32>
    %568 = arith.mulf %99, %567 : vector<2x128xf32>
    %569 = arith.addf %565, %568 : vector<2x128xf32>
    %c5_274 = arith.constant 5 : index
    %c8_275 = arith.constant 8 : index
    %570 = memref.load %arg5[%c5_274, %c8_275] : memref<16x16xf32, #tpu.memory_space<smem>>
    %571 = vector.broadcast %570 : f32 to vector<2x128xf32>
    %572 = arith.mulf %111, %571 : vector<2x128xf32>
    %573 = arith.addf %569, %572 : vector<2x128xf32>
    %c5_276 = arith.constant 5 : index
    %c9_277 = arith.constant 9 : index
    %574 = memref.load %arg5[%c5_276, %c9_277] : memref<16x16xf32, #tpu.memory_space<smem>>
    %575 = vector.broadcast %574 : f32 to vector<2x128xf32>
    %576 = arith.mulf %123, %575 : vector<2x128xf32>
    %577 = arith.addf %573, %576 : vector<2x128xf32>
    %c5_278 = arith.constant 5 : index
    %c10_279 = arith.constant 10 : index
    %578 = memref.load %arg5[%c5_278, %c10_279] : memref<16x16xf32, #tpu.memory_space<smem>>
    %579 = vector.broadcast %578 : f32 to vector<2x128xf32>
    %580 = arith.mulf %135, %579 : vector<2x128xf32>
    %581 = arith.addf %577, %580 : vector<2x128xf32>
    %c5_280 = arith.constant 5 : index
    %c11_281 = arith.constant 11 : index
    %582 = memref.load %arg5[%c5_280, %c11_281] : memref<16x16xf32, #tpu.memory_space<smem>>
    %583 = vector.broadcast %582 : f32 to vector<2x128xf32>
    %584 = arith.mulf %147, %583 : vector<2x128xf32>
    %585 = arith.addf %581, %584 : vector<2x128xf32>
    %c5_282 = arith.constant 5 : index
    %c12_283 = arith.constant 12 : index
    %586 = memref.load %arg5[%c5_282, %c12_283] : memref<16x16xf32, #tpu.memory_space<smem>>
    %587 = vector.broadcast %586 : f32 to vector<2x128xf32>
    %588 = arith.mulf %159, %587 : vector<2x128xf32>
    %589 = arith.addf %585, %588 : vector<2x128xf32>
    %c5_284 = arith.constant 5 : index
    %c13_285 = arith.constant 13 : index
    %590 = memref.load %arg5[%c5_284, %c13_285] : memref<16x16xf32, #tpu.memory_space<smem>>
    %591 = vector.broadcast %590 : f32 to vector<2x128xf32>
    %592 = arith.mulf %171, %591 : vector<2x128xf32>
    %593 = arith.addf %589, %592 : vector<2x128xf32>
    %c5_286 = arith.constant 5 : index
    %c14_287 = arith.constant 14 : index
    %594 = memref.load %arg5[%c5_286, %c14_287] : memref<16x16xf32, #tpu.memory_space<smem>>
    %595 = vector.broadcast %594 : f32 to vector<2x128xf32>
    %596 = arith.mulf %183, %595 : vector<2x128xf32>
    %597 = arith.addf %593, %596 : vector<2x128xf32>
    %c5_288 = arith.constant 5 : index
    %c15_289 = arith.constant 15 : index
    %598 = memref.load %arg5[%c5_288, %c15_289] : memref<16x16xf32, #tpu.memory_space<smem>>
    %599 = vector.broadcast %598 : f32 to vector<2x128xf32>
    %600 = arith.mulf %195, %599 : vector<2x128xf32>
    %601 = arith.addf %597, %600 : vector<2x128xf32>
    %cst_290 = arith.constant 0.000000e+00 : f32
    %602 = vector.broadcast %cst_290 : f32 to vector<2x128xf32>
    %603 = arith.maximumf %601, %602 : vector<2x128xf32>
    %c6_291 = arith.constant 6 : index
    %c0_292 = arith.constant 0 : index
    %604 = memref.load %arg5[%c6_291, %c0_292] : memref<16x16xf32, #tpu.memory_space<smem>>
    %605 = vector.broadcast %604 : f32 to vector<2x128xf32>
    %606 = arith.mulf %15, %605 : vector<2x128xf32>
    %c6_293 = arith.constant 6 : index
    %607 = memref.load %arg6[%c6_293] : memref<16xf32, #tpu.memory_space<smem>>
    %608 = vector.broadcast %607 : f32 to vector<2x128xf32>
    %609 = arith.addf %606, %608 : vector<2x128xf32>
    %c6_294 = arith.constant 6 : index
    %c1_295 = arith.constant 1 : index
    %610 = memref.load %arg5[%c6_294, %c1_295] : memref<16x16xf32, #tpu.memory_space<smem>>
    %611 = vector.broadcast %610 : f32 to vector<2x128xf32>
    %612 = arith.mulf %27, %611 : vector<2x128xf32>
    %613 = arith.addf %609, %612 : vector<2x128xf32>
    %c6_296 = arith.constant 6 : index
    %c2_297 = arith.constant 2 : index
    %614 = memref.load %arg5[%c6_296, %c2_297] : memref<16x16xf32, #tpu.memory_space<smem>>
    %615 = vector.broadcast %614 : f32 to vector<2x128xf32>
    %616 = arith.mulf %39, %615 : vector<2x128xf32>
    %617 = arith.addf %613, %616 : vector<2x128xf32>
    %c6_298 = arith.constant 6 : index
    %c3_299 = arith.constant 3 : index
    %618 = memref.load %arg5[%c6_298, %c3_299] : memref<16x16xf32, #tpu.memory_space<smem>>
    %619 = vector.broadcast %618 : f32 to vector<2x128xf32>
    %620 = arith.mulf %51, %619 : vector<2x128xf32>
    %621 = arith.addf %617, %620 : vector<2x128xf32>
    %c6_300 = arith.constant 6 : index
    %c4_301 = arith.constant 4 : index
    %622 = memref.load %arg5[%c6_300, %c4_301] : memref<16x16xf32, #tpu.memory_space<smem>>
    %623 = vector.broadcast %622 : f32 to vector<2x128xf32>
    %624 = arith.mulf %63, %623 : vector<2x128xf32>
    %625 = arith.addf %621, %624 : vector<2x128xf32>
    %c6_302 = arith.constant 6 : index
    %c5_303 = arith.constant 5 : index
    %626 = memref.load %arg5[%c6_302, %c5_303] : memref<16x16xf32, #tpu.memory_space<smem>>
    %627 = vector.broadcast %626 : f32 to vector<2x128xf32>
    %628 = arith.mulf %75, %627 : vector<2x128xf32>
    %629 = arith.addf %625, %628 : vector<2x128xf32>
    %c6_304 = arith.constant 6 : index
    %c6_305 = arith.constant 6 : index
    %630 = memref.load %arg5[%c6_304, %c6_305] : memref<16x16xf32, #tpu.memory_space<smem>>
    %631 = vector.broadcast %630 : f32 to vector<2x128xf32>
    %632 = arith.mulf %87, %631 : vector<2x128xf32>
    %633 = arith.addf %629, %632 : vector<2x128xf32>
    %c6_306 = arith.constant 6 : index
    %c7_307 = arith.constant 7 : index
    %634 = memref.load %arg5[%c6_306, %c7_307] : memref<16x16xf32, #tpu.memory_space<smem>>
    %635 = vector.broadcast %634 : f32 to vector<2x128xf32>
    %636 = arith.mulf %99, %635 : vector<2x128xf32>
    %637 = arith.addf %633, %636 : vector<2x128xf32>
    %c6_308 = arith.constant 6 : index
    %c8_309 = arith.constant 8 : index
    %638 = memref.load %arg5[%c6_308, %c8_309] : memref<16x16xf32, #tpu.memory_space<smem>>
    %639 = vector.broadcast %638 : f32 to vector<2x128xf32>
    %640 = arith.mulf %111, %639 : vector<2x128xf32>
    %641 = arith.addf %637, %640 : vector<2x128xf32>
    %c6_310 = arith.constant 6 : index
    %c9_311 = arith.constant 9 : index
    %642 = memref.load %arg5[%c6_310, %c9_311] : memref<16x16xf32, #tpu.memory_space<smem>>
    %643 = vector.broadcast %642 : f32 to vector<2x128xf32>
    %644 = arith.mulf %123, %643 : vector<2x128xf32>
    %645 = arith.addf %641, %644 : vector<2x128xf32>
    %c6_312 = arith.constant 6 : index
    %c10_313 = arith.constant 10 : index
    %646 = memref.load %arg5[%c6_312, %c10_313] : memref<16x16xf32, #tpu.memory_space<smem>>
    %647 = vector.broadcast %646 : f32 to vector<2x128xf32>
    %648 = arith.mulf %135, %647 : vector<2x128xf32>
    %649 = arith.addf %645, %648 : vector<2x128xf32>
    %c6_314 = arith.constant 6 : index
    %c11_315 = arith.constant 11 : index
    %650 = memref.load %arg5[%c6_314, %c11_315] : memref<16x16xf32, #tpu.memory_space<smem>>
    %651 = vector.broadcast %650 : f32 to vector<2x128xf32>
    %652 = arith.mulf %147, %651 : vector<2x128xf32>
    %653 = arith.addf %649, %652 : vector<2x128xf32>
    %c6_316 = arith.constant 6 : index
    %c12_317 = arith.constant 12 : index
    %654 = memref.load %arg5[%c6_316, %c12_317] : memref<16x16xf32, #tpu.memory_space<smem>>
    %655 = vector.broadcast %654 : f32 to vector<2x128xf32>
    %656 = arith.mulf %159, %655 : vector<2x128xf32>
    %657 = arith.addf %653, %656 : vector<2x128xf32>
    %c6_318 = arith.constant 6 : index
    %c13_319 = arith.constant 13 : index
    %658 = memref.load %arg5[%c6_318, %c13_319] : memref<16x16xf32, #tpu.memory_space<smem>>
    %659 = vector.broadcast %658 : f32 to vector<2x128xf32>
    %660 = arith.mulf %171, %659 : vector<2x128xf32>
    %661 = arith.addf %657, %660 : vector<2x128xf32>
    %c6_320 = arith.constant 6 : index
    %c14_321 = arith.constant 14 : index
    %662 = memref.load %arg5[%c6_320, %c14_321] : memref<16x16xf32, #tpu.memory_space<smem>>
    %663 = vector.broadcast %662 : f32 to vector<2x128xf32>
    %664 = arith.mulf %183, %663 : vector<2x128xf32>
    %665 = arith.addf %661, %664 : vector<2x128xf32>
    %c6_322 = arith.constant 6 : index
    %c15_323 = arith.constant 15 : index
    %666 = memref.load %arg5[%c6_322, %c15_323] : memref<16x16xf32, #tpu.memory_space<smem>>
    %667 = vector.broadcast %666 : f32 to vector<2x128xf32>
    %668 = arith.mulf %195, %667 : vector<2x128xf32>
    %669 = arith.addf %665, %668 : vector<2x128xf32>
    %cst_324 = arith.constant 0.000000e+00 : f32
    %670 = vector.broadcast %cst_324 : f32 to vector<2x128xf32>
    %671 = arith.maximumf %669, %670 : vector<2x128xf32>
    %c7_325 = arith.constant 7 : index
    %c0_326 = arith.constant 0 : index
    %672 = memref.load %arg5[%c7_325, %c0_326] : memref<16x16xf32, #tpu.memory_space<smem>>
    %673 = vector.broadcast %672 : f32 to vector<2x128xf32>
    %674 = arith.mulf %15, %673 : vector<2x128xf32>
    %c7_327 = arith.constant 7 : index
    %675 = memref.load %arg6[%c7_327] : memref<16xf32, #tpu.memory_space<smem>>
    %676 = vector.broadcast %675 : f32 to vector<2x128xf32>
    %677 = arith.addf %674, %676 : vector<2x128xf32>
    %c7_328 = arith.constant 7 : index
    %c1_329 = arith.constant 1 : index
    %678 = memref.load %arg5[%c7_328, %c1_329] : memref<16x16xf32, #tpu.memory_space<smem>>
    %679 = vector.broadcast %678 : f32 to vector<2x128xf32>
    %680 = arith.mulf %27, %679 : vector<2x128xf32>
    %681 = arith.addf %677, %680 : vector<2x128xf32>
    %c7_330 = arith.constant 7 : index
    %c2_331 = arith.constant 2 : index
    %682 = memref.load %arg5[%c7_330, %c2_331] : memref<16x16xf32, #tpu.memory_space<smem>>
    %683 = vector.broadcast %682 : f32 to vector<2x128xf32>
    %684 = arith.mulf %39, %683 : vector<2x128xf32>
    %685 = arith.addf %681, %684 : vector<2x128xf32>
    %c7_332 = arith.constant 7 : index
    %c3_333 = arith.constant 3 : index
    %686 = memref.load %arg5[%c7_332, %c3_333] : memref<16x16xf32, #tpu.memory_space<smem>>
    %687 = vector.broadcast %686 : f32 to vector<2x128xf32>
    %688 = arith.mulf %51, %687 : vector<2x128xf32>
    %689 = arith.addf %685, %688 : vector<2x128xf32>
    %c7_334 = arith.constant 7 : index
    %c4_335 = arith.constant 4 : index
    %690 = memref.load %arg5[%c7_334, %c4_335] : memref<16x16xf32, #tpu.memory_space<smem>>
    %691 = vector.broadcast %690 : f32 to vector<2x128xf32>
    %692 = arith.mulf %63, %691 : vector<2x128xf32>
    %693 = arith.addf %689, %692 : vector<2x128xf32>
    %c7_336 = arith.constant 7 : index
    %c5_337 = arith.constant 5 : index
    %694 = memref.load %arg5[%c7_336, %c5_337] : memref<16x16xf32, #tpu.memory_space<smem>>
    %695 = vector.broadcast %694 : f32 to vector<2x128xf32>
    %696 = arith.mulf %75, %695 : vector<2x128xf32>
    %697 = arith.addf %693, %696 : vector<2x128xf32>
    %c7_338 = arith.constant 7 : index
    %c6_339 = arith.constant 6 : index
    %698 = memref.load %arg5[%c7_338, %c6_339] : memref<16x16xf32, #tpu.memory_space<smem>>
    %699 = vector.broadcast %698 : f32 to vector<2x128xf32>
    %700 = arith.mulf %87, %699 : vector<2x128xf32>
    %701 = arith.addf %697, %700 : vector<2x128xf32>
    %c7_340 = arith.constant 7 : index
    %c7_341 = arith.constant 7 : index
    %702 = memref.load %arg5[%c7_340, %c7_341] : memref<16x16xf32, #tpu.memory_space<smem>>
    %703 = vector.broadcast %702 : f32 to vector<2x128xf32>
    %704 = arith.mulf %99, %703 : vector<2x128xf32>
    %705 = arith.addf %701, %704 : vector<2x128xf32>
    %c7_342 = arith.constant 7 : index
    %c8_343 = arith.constant 8 : index
    %706 = memref.load %arg5[%c7_342, %c8_343] : memref<16x16xf32, #tpu.memory_space<smem>>
    %707 = vector.broadcast %706 : f32 to vector<2x128xf32>
    %708 = arith.mulf %111, %707 : vector<2x128xf32>
    %709 = arith.addf %705, %708 : vector<2x128xf32>
    %c7_344 = arith.constant 7 : index
    %c9_345 = arith.constant 9 : index
    %710 = memref.load %arg5[%c7_344, %c9_345] : memref<16x16xf32, #tpu.memory_space<smem>>
    %711 = vector.broadcast %710 : f32 to vector<2x128xf32>
    %712 = arith.mulf %123, %711 : vector<2x128xf32>
    %713 = arith.addf %709, %712 : vector<2x128xf32>
    %c7_346 = arith.constant 7 : index
    %c10_347 = arith.constant 10 : index
    %714 = memref.load %arg5[%c7_346, %c10_347] : memref<16x16xf32, #tpu.memory_space<smem>>
    %715 = vector.broadcast %714 : f32 to vector<2x128xf32>
    %716 = arith.mulf %135, %715 : vector<2x128xf32>
    %717 = arith.addf %713, %716 : vector<2x128xf32>
    %c7_348 = arith.constant 7 : index
    %c11_349 = arith.constant 11 : index
    %718 = memref.load %arg5[%c7_348, %c11_349] : memref<16x16xf32, #tpu.memory_space<smem>>
    %719 = vector.broadcast %718 : f32 to vector<2x128xf32>
    %720 = arith.mulf %147, %719 : vector<2x128xf32>
    %721 = arith.addf %717, %720 : vector<2x128xf32>
    %c7_350 = arith.constant 7 : index
    %c12_351 = arith.constant 12 : index
    %722 = memref.load %arg5[%c7_350, %c12_351] : memref<16x16xf32, #tpu.memory_space<smem>>
    %723 = vector.broadcast %722 : f32 to vector<2x128xf32>
    %724 = arith.mulf %159, %723 : vector<2x128xf32>
    %725 = arith.addf %721, %724 : vector<2x128xf32>
    %c7_352 = arith.constant 7 : index
    %c13_353 = arith.constant 13 : index
    %726 = memref.load %arg5[%c7_352, %c13_353] : memref<16x16xf32, #tpu.memory_space<smem>>
    %727 = vector.broadcast %726 : f32 to vector<2x128xf32>
    %728 = arith.mulf %171, %727 : vector<2x128xf32>
    %729 = arith.addf %725, %728 : vector<2x128xf32>
    %c7_354 = arith.constant 7 : index
    %c14_355 = arith.constant 14 : index
    %730 = memref.load %arg5[%c7_354, %c14_355] : memref<16x16xf32, #tpu.memory_space<smem>>
    %731 = vector.broadcast %730 : f32 to vector<2x128xf32>
    %732 = arith.mulf %183, %731 : vector<2x128xf32>
    %733 = arith.addf %729, %732 : vector<2x128xf32>
    %c7_356 = arith.constant 7 : index
    %c15_357 = arith.constant 15 : index
    %734 = memref.load %arg5[%c7_356, %c15_357] : memref<16x16xf32, #tpu.memory_space<smem>>
    %735 = vector.broadcast %734 : f32 to vector<2x128xf32>
    %736 = arith.mulf %195, %735 : vector<2x128xf32>
    %737 = arith.addf %733, %736 : vector<2x128xf32>
    %cst_358 = arith.constant 0.000000e+00 : f32
    %738 = vector.broadcast %cst_358 : f32 to vector<2x128xf32>
    %739 = arith.maximumf %737, %738 : vector<2x128xf32>
    %c8_359 = arith.constant 8 : index
    %c0_360 = arith.constant 0 : index
    %740 = memref.load %arg5[%c8_359, %c0_360] : memref<16x16xf32, #tpu.memory_space<smem>>
    %741 = vector.broadcast %740 : f32 to vector<2x128xf32>
    %742 = arith.mulf %15, %741 : vector<2x128xf32>
    %c8_361 = arith.constant 8 : index
    %743 = memref.load %arg6[%c8_361] : memref<16xf32, #tpu.memory_space<smem>>
    %744 = vector.broadcast %743 : f32 to vector<2x128xf32>
    %745 = arith.addf %742, %744 : vector<2x128xf32>
    %c8_362 = arith.constant 8 : index
    %c1_363 = arith.constant 1 : index
    %746 = memref.load %arg5[%c8_362, %c1_363] : memref<16x16xf32, #tpu.memory_space<smem>>
    %747 = vector.broadcast %746 : f32 to vector<2x128xf32>
    %748 = arith.mulf %27, %747 : vector<2x128xf32>
    %749 = arith.addf %745, %748 : vector<2x128xf32>
    %c8_364 = arith.constant 8 : index
    %c2_365 = arith.constant 2 : index
    %750 = memref.load %arg5[%c8_364, %c2_365] : memref<16x16xf32, #tpu.memory_space<smem>>
    %751 = vector.broadcast %750 : f32 to vector<2x128xf32>
    %752 = arith.mulf %39, %751 : vector<2x128xf32>
    %753 = arith.addf %749, %752 : vector<2x128xf32>
    %c8_366 = arith.constant 8 : index
    %c3_367 = arith.constant 3 : index
    %754 = memref.load %arg5[%c8_366, %c3_367] : memref<16x16xf32, #tpu.memory_space<smem>>
    %755 = vector.broadcast %754 : f32 to vector<2x128xf32>
    %756 = arith.mulf %51, %755 : vector<2x128xf32>
    %757 = arith.addf %753, %756 : vector<2x128xf32>
    %c8_368 = arith.constant 8 : index
    %c4_369 = arith.constant 4 : index
    %758 = memref.load %arg5[%c8_368, %c4_369] : memref<16x16xf32, #tpu.memory_space<smem>>
    %759 = vector.broadcast %758 : f32 to vector<2x128xf32>
    %760 = arith.mulf %63, %759 : vector<2x128xf32>
    %761 = arith.addf %757, %760 : vector<2x128xf32>
    %c8_370 = arith.constant 8 : index
    %c5_371 = arith.constant 5 : index
    %762 = memref.load %arg5[%c8_370, %c5_371] : memref<16x16xf32, #tpu.memory_space<smem>>
    %763 = vector.broadcast %762 : f32 to vector<2x128xf32>
    %764 = arith.mulf %75, %763 : vector<2x128xf32>
    %765 = arith.addf %761, %764 : vector<2x128xf32>
    %c8_372 = arith.constant 8 : index
    %c6_373 = arith.constant 6 : index
    %766 = memref.load %arg5[%c8_372, %c6_373] : memref<16x16xf32, #tpu.memory_space<smem>>
    %767 = vector.broadcast %766 : f32 to vector<2x128xf32>
    %768 = arith.mulf %87, %767 : vector<2x128xf32>
    %769 = arith.addf %765, %768 : vector<2x128xf32>
    %c8_374 = arith.constant 8 : index
    %c7_375 = arith.constant 7 : index
    %770 = memref.load %arg5[%c8_374, %c7_375] : memref<16x16xf32, #tpu.memory_space<smem>>
    %771 = vector.broadcast %770 : f32 to vector<2x128xf32>
    %772 = arith.mulf %99, %771 : vector<2x128xf32>
    %773 = arith.addf %769, %772 : vector<2x128xf32>
    %c8_376 = arith.constant 8 : index
    %c8_377 = arith.constant 8 : index
    %774 = memref.load %arg5[%c8_376, %c8_377] : memref<16x16xf32, #tpu.memory_space<smem>>
    %775 = vector.broadcast %774 : f32 to vector<2x128xf32>
    %776 = arith.mulf %111, %775 : vector<2x128xf32>
    %777 = arith.addf %773, %776 : vector<2x128xf32>
    %c8_378 = arith.constant 8 : index
    %c9_379 = arith.constant 9 : index
    %778 = memref.load %arg5[%c8_378, %c9_379] : memref<16x16xf32, #tpu.memory_space<smem>>
    %779 = vector.broadcast %778 : f32 to vector<2x128xf32>
    %780 = arith.mulf %123, %779 : vector<2x128xf32>
    %781 = arith.addf %777, %780 : vector<2x128xf32>
    %c8_380 = arith.constant 8 : index
    %c10_381 = arith.constant 10 : index
    %782 = memref.load %arg5[%c8_380, %c10_381] : memref<16x16xf32, #tpu.memory_space<smem>>
    %783 = vector.broadcast %782 : f32 to vector<2x128xf32>
    %784 = arith.mulf %135, %783 : vector<2x128xf32>
    %785 = arith.addf %781, %784 : vector<2x128xf32>
    %c8_382 = arith.constant 8 : index
    %c11_383 = arith.constant 11 : index
    %786 = memref.load %arg5[%c8_382, %c11_383] : memref<16x16xf32, #tpu.memory_space<smem>>
    %787 = vector.broadcast %786 : f32 to vector<2x128xf32>
    %788 = arith.mulf %147, %787 : vector<2x128xf32>
    %789 = arith.addf %785, %788 : vector<2x128xf32>
    %c8_384 = arith.constant 8 : index
    %c12_385 = arith.constant 12 : index
    %790 = memref.load %arg5[%c8_384, %c12_385] : memref<16x16xf32, #tpu.memory_space<smem>>
    %791 = vector.broadcast %790 : f32 to vector<2x128xf32>
    %792 = arith.mulf %159, %791 : vector<2x128xf32>
    %793 = arith.addf %789, %792 : vector<2x128xf32>
    %c8_386 = arith.constant 8 : index
    %c13_387 = arith.constant 13 : index
    %794 = memref.load %arg5[%c8_386, %c13_387] : memref<16x16xf32, #tpu.memory_space<smem>>
    %795 = vector.broadcast %794 : f32 to vector<2x128xf32>
    %796 = arith.mulf %171, %795 : vector<2x128xf32>
    %797 = arith.addf %793, %796 : vector<2x128xf32>
    %c8_388 = arith.constant 8 : index
    %c14_389 = arith.constant 14 : index
    %798 = memref.load %arg5[%c8_388, %c14_389] : memref<16x16xf32, #tpu.memory_space<smem>>
    %799 = vector.broadcast %798 : f32 to vector<2x128xf32>
    %800 = arith.mulf %183, %799 : vector<2x128xf32>
    %801 = arith.addf %797, %800 : vector<2x128xf32>
    %c8_390 = arith.constant 8 : index
    %c15_391 = arith.constant 15 : index
    %802 = memref.load %arg5[%c8_390, %c15_391] : memref<16x16xf32, #tpu.memory_space<smem>>
    %803 = vector.broadcast %802 : f32 to vector<2x128xf32>
    %804 = arith.mulf %195, %803 : vector<2x128xf32>
    %805 = arith.addf %801, %804 : vector<2x128xf32>
    %cst_392 = arith.constant 0.000000e+00 : f32
    %806 = vector.broadcast %cst_392 : f32 to vector<2x128xf32>
    %807 = arith.maximumf %805, %806 : vector<2x128xf32>
    %c9_393 = arith.constant 9 : index
    %c0_394 = arith.constant 0 : index
    %808 = memref.load %arg5[%c9_393, %c0_394] : memref<16x16xf32, #tpu.memory_space<smem>>
    %809 = vector.broadcast %808 : f32 to vector<2x128xf32>
    %810 = arith.mulf %15, %809 : vector<2x128xf32>
    %c9_395 = arith.constant 9 : index
    %811 = memref.load %arg6[%c9_395] : memref<16xf32, #tpu.memory_space<smem>>
    %812 = vector.broadcast %811 : f32 to vector<2x128xf32>
    %813 = arith.addf %810, %812 : vector<2x128xf32>
    %c9_396 = arith.constant 9 : index
    %c1_397 = arith.constant 1 : index
    %814 = memref.load %arg5[%c9_396, %c1_397] : memref<16x16xf32, #tpu.memory_space<smem>>
    %815 = vector.broadcast %814 : f32 to vector<2x128xf32>
    %816 = arith.mulf %27, %815 : vector<2x128xf32>
    %817 = arith.addf %813, %816 : vector<2x128xf32>
    %c9_398 = arith.constant 9 : index
    %c2_399 = arith.constant 2 : index
    %818 = memref.load %arg5[%c9_398, %c2_399] : memref<16x16xf32, #tpu.memory_space<smem>>
    %819 = vector.broadcast %818 : f32 to vector<2x128xf32>
    %820 = arith.mulf %39, %819 : vector<2x128xf32>
    %821 = arith.addf %817, %820 : vector<2x128xf32>
    %c9_400 = arith.constant 9 : index
    %c3_401 = arith.constant 3 : index
    %822 = memref.load %arg5[%c9_400, %c3_401] : memref<16x16xf32, #tpu.memory_space<smem>>
    %823 = vector.broadcast %822 : f32 to vector<2x128xf32>
    %824 = arith.mulf %51, %823 : vector<2x128xf32>
    %825 = arith.addf %821, %824 : vector<2x128xf32>
    %c9_402 = arith.constant 9 : index
    %c4_403 = arith.constant 4 : index
    %826 = memref.load %arg5[%c9_402, %c4_403] : memref<16x16xf32, #tpu.memory_space<smem>>
    %827 = vector.broadcast %826 : f32 to vector<2x128xf32>
    %828 = arith.mulf %63, %827 : vector<2x128xf32>
    %829 = arith.addf %825, %828 : vector<2x128xf32>
    %c9_404 = arith.constant 9 : index
    %c5_405 = arith.constant 5 : index
    %830 = memref.load %arg5[%c9_404, %c5_405] : memref<16x16xf32, #tpu.memory_space<smem>>
    %831 = vector.broadcast %830 : f32 to vector<2x128xf32>
    %832 = arith.mulf %75, %831 : vector<2x128xf32>
    %833 = arith.addf %829, %832 : vector<2x128xf32>
    %c9_406 = arith.constant 9 : index
    %c6_407 = arith.constant 6 : index
    %834 = memref.load %arg5[%c9_406, %c6_407] : memref<16x16xf32, #tpu.memory_space<smem>>
    %835 = vector.broadcast %834 : f32 to vector<2x128xf32>
    %836 = arith.mulf %87, %835 : vector<2x128xf32>
    %837 = arith.addf %833, %836 : vector<2x128xf32>
    %c9_408 = arith.constant 9 : index
    %c7_409 = arith.constant 7 : index
    %838 = memref.load %arg5[%c9_408, %c7_409] : memref<16x16xf32, #tpu.memory_space<smem>>
    %839 = vector.broadcast %838 : f32 to vector<2x128xf32>
    %840 = arith.mulf %99, %839 : vector<2x128xf32>
    %841 = arith.addf %837, %840 : vector<2x128xf32>
    %c9_410 = arith.constant 9 : index
    %c8_411 = arith.constant 8 : index
    %842 = memref.load %arg5[%c9_410, %c8_411] : memref<16x16xf32, #tpu.memory_space<smem>>
    %843 = vector.broadcast %842 : f32 to vector<2x128xf32>
    %844 = arith.mulf %111, %843 : vector<2x128xf32>
    %845 = arith.addf %841, %844 : vector<2x128xf32>
    %c9_412 = arith.constant 9 : index
    %c9_413 = arith.constant 9 : index
    %846 = memref.load %arg5[%c9_412, %c9_413] : memref<16x16xf32, #tpu.memory_space<smem>>
    %847 = vector.broadcast %846 : f32 to vector<2x128xf32>
    %848 = arith.mulf %123, %847 : vector<2x128xf32>
    %849 = arith.addf %845, %848 : vector<2x128xf32>
    %c9_414 = arith.constant 9 : index
    %c10_415 = arith.constant 10 : index
    %850 = memref.load %arg5[%c9_414, %c10_415] : memref<16x16xf32, #tpu.memory_space<smem>>
    %851 = vector.broadcast %850 : f32 to vector<2x128xf32>
    %852 = arith.mulf %135, %851 : vector<2x128xf32>
    %853 = arith.addf %849, %852 : vector<2x128xf32>
    %c9_416 = arith.constant 9 : index
    %c11_417 = arith.constant 11 : index
    %854 = memref.load %arg5[%c9_416, %c11_417] : memref<16x16xf32, #tpu.memory_space<smem>>
    %855 = vector.broadcast %854 : f32 to vector<2x128xf32>
    %856 = arith.mulf %147, %855 : vector<2x128xf32>
    %857 = arith.addf %853, %856 : vector<2x128xf32>
    %c9_418 = arith.constant 9 : index
    %c12_419 = arith.constant 12 : index
    %858 = memref.load %arg5[%c9_418, %c12_419] : memref<16x16xf32, #tpu.memory_space<smem>>
    %859 = vector.broadcast %858 : f32 to vector<2x128xf32>
    %860 = arith.mulf %159, %859 : vector<2x128xf32>
    %861 = arith.addf %857, %860 : vector<2x128xf32>
    %c9_420 = arith.constant 9 : index
    %c13_421 = arith.constant 13 : index
    %862 = memref.load %arg5[%c9_420, %c13_421] : memref<16x16xf32, #tpu.memory_space<smem>>
    %863 = vector.broadcast %862 : f32 to vector<2x128xf32>
    %864 = arith.mulf %171, %863 : vector<2x128xf32>
    %865 = arith.addf %861, %864 : vector<2x128xf32>
    %c9_422 = arith.constant 9 : index
    %c14_423 = arith.constant 14 : index
    %866 = memref.load %arg5[%c9_422, %c14_423] : memref<16x16xf32, #tpu.memory_space<smem>>
    %867 = vector.broadcast %866 : f32 to vector<2x128xf32>
    %868 = arith.mulf %183, %867 : vector<2x128xf32>
    %869 = arith.addf %865, %868 : vector<2x128xf32>
    %c9_424 = arith.constant 9 : index
    %c15_425 = arith.constant 15 : index
    %870 = memref.load %arg5[%c9_424, %c15_425] : memref<16x16xf32, #tpu.memory_space<smem>>
    %871 = vector.broadcast %870 : f32 to vector<2x128xf32>
    %872 = arith.mulf %195, %871 : vector<2x128xf32>
    %873 = arith.addf %869, %872 : vector<2x128xf32>
    %cst_426 = arith.constant 0.000000e+00 : f32
    %874 = vector.broadcast %cst_426 : f32 to vector<2x128xf32>
    %875 = arith.maximumf %873, %874 : vector<2x128xf32>
    %c10_427 = arith.constant 10 : index
    %c0_428 = arith.constant 0 : index
    %876 = memref.load %arg5[%c10_427, %c0_428] : memref<16x16xf32, #tpu.memory_space<smem>>
    %877 = vector.broadcast %876 : f32 to vector<2x128xf32>
    %878 = arith.mulf %15, %877 : vector<2x128xf32>
    %c10_429 = arith.constant 10 : index
    %879 = memref.load %arg6[%c10_429] : memref<16xf32, #tpu.memory_space<smem>>
    %880 = vector.broadcast %879 : f32 to vector<2x128xf32>
    %881 = arith.addf %878, %880 : vector<2x128xf32>
    %c10_430 = arith.constant 10 : index
    %c1_431 = arith.constant 1 : index
    %882 = memref.load %arg5[%c10_430, %c1_431] : memref<16x16xf32, #tpu.memory_space<smem>>
    %883 = vector.broadcast %882 : f32 to vector<2x128xf32>
    %884 = arith.mulf %27, %883 : vector<2x128xf32>
    %885 = arith.addf %881, %884 : vector<2x128xf32>
    %c10_432 = arith.constant 10 : index
    %c2_433 = arith.constant 2 : index
    %886 = memref.load %arg5[%c10_432, %c2_433] : memref<16x16xf32, #tpu.memory_space<smem>>
    %887 = vector.broadcast %886 : f32 to vector<2x128xf32>
    %888 = arith.mulf %39, %887 : vector<2x128xf32>
    %889 = arith.addf %885, %888 : vector<2x128xf32>
    %c10_434 = arith.constant 10 : index
    %c3_435 = arith.constant 3 : index
    %890 = memref.load %arg5[%c10_434, %c3_435] : memref<16x16xf32, #tpu.memory_space<smem>>
    %891 = vector.broadcast %890 : f32 to vector<2x128xf32>
    %892 = arith.mulf %51, %891 : vector<2x128xf32>
    %893 = arith.addf %889, %892 : vector<2x128xf32>
    %c10_436 = arith.constant 10 : index
    %c4_437 = arith.constant 4 : index
    %894 = memref.load %arg5[%c10_436, %c4_437] : memref<16x16xf32, #tpu.memory_space<smem>>
    %895 = vector.broadcast %894 : f32 to vector<2x128xf32>
    %896 = arith.mulf %63, %895 : vector<2x128xf32>
    %897 = arith.addf %893, %896 : vector<2x128xf32>
    %c10_438 = arith.constant 10 : index
    %c5_439 = arith.constant 5 : index
    %898 = memref.load %arg5[%c10_438, %c5_439] : memref<16x16xf32, #tpu.memory_space<smem>>
    %899 = vector.broadcast %898 : f32 to vector<2x128xf32>
    %900 = arith.mulf %75, %899 : vector<2x128xf32>
    %901 = arith.addf %897, %900 : vector<2x128xf32>
    %c10_440 = arith.constant 10 : index
    %c6_441 = arith.constant 6 : index
    %902 = memref.load %arg5[%c10_440, %c6_441] : memref<16x16xf32, #tpu.memory_space<smem>>
    %903 = vector.broadcast %902 : f32 to vector<2x128xf32>
    %904 = arith.mulf %87, %903 : vector<2x128xf32>
    %905 = arith.addf %901, %904 : vector<2x128xf32>
    %c10_442 = arith.constant 10 : index
    %c7_443 = arith.constant 7 : index
    %906 = memref.load %arg5[%c10_442, %c7_443] : memref<16x16xf32, #tpu.memory_space<smem>>
    %907 = vector.broadcast %906 : f32 to vector<2x128xf32>
    %908 = arith.mulf %99, %907 : vector<2x128xf32>
    %909 = arith.addf %905, %908 : vector<2x128xf32>
    %c10_444 = arith.constant 10 : index
    %c8_445 = arith.constant 8 : index
    %910 = memref.load %arg5[%c10_444, %c8_445] : memref<16x16xf32, #tpu.memory_space<smem>>
    %911 = vector.broadcast %910 : f32 to vector<2x128xf32>
    %912 = arith.mulf %111, %911 : vector<2x128xf32>
    %913 = arith.addf %909, %912 : vector<2x128xf32>
    %c10_446 = arith.constant 10 : index
    %c9_447 = arith.constant 9 : index
    %914 = memref.load %arg5[%c10_446, %c9_447] : memref<16x16xf32, #tpu.memory_space<smem>>
    %915 = vector.broadcast %914 : f32 to vector<2x128xf32>
    %916 = arith.mulf %123, %915 : vector<2x128xf32>
    %917 = arith.addf %913, %916 : vector<2x128xf32>
    %c10_448 = arith.constant 10 : index
    %c10_449 = arith.constant 10 : index
    %918 = memref.load %arg5[%c10_448, %c10_449] : memref<16x16xf32, #tpu.memory_space<smem>>
    %919 = vector.broadcast %918 : f32 to vector<2x128xf32>
    %920 = arith.mulf %135, %919 : vector<2x128xf32>
    %921 = arith.addf %917, %920 : vector<2x128xf32>
    %c10_450 = arith.constant 10 : index
    %c11_451 = arith.constant 11 : index
    %922 = memref.load %arg5[%c10_450, %c11_451] : memref<16x16xf32, #tpu.memory_space<smem>>
    %923 = vector.broadcast %922 : f32 to vector<2x128xf32>
    %924 = arith.mulf %147, %923 : vector<2x128xf32>
    %925 = arith.addf %921, %924 : vector<2x128xf32>
    %c10_452 = arith.constant 10 : index
    %c12_453 = arith.constant 12 : index
    %926 = memref.load %arg5[%c10_452, %c12_453] : memref<16x16xf32, #tpu.memory_space<smem>>
    %927 = vector.broadcast %926 : f32 to vector<2x128xf32>
    %928 = arith.mulf %159, %927 : vector<2x128xf32>
    %929 = arith.addf %925, %928 : vector<2x128xf32>
    %c10_454 = arith.constant 10 : index
    %c13_455 = arith.constant 13 : index
    %930 = memref.load %arg5[%c10_454, %c13_455] : memref<16x16xf32, #tpu.memory_space<smem>>
    %931 = vector.broadcast %930 : f32 to vector<2x128xf32>
    %932 = arith.mulf %171, %931 : vector<2x128xf32>
    %933 = arith.addf %929, %932 : vector<2x128xf32>
    %c10_456 = arith.constant 10 : index
    %c14_457 = arith.constant 14 : index
    %934 = memref.load %arg5[%c10_456, %c14_457] : memref<16x16xf32, #tpu.memory_space<smem>>
    %935 = vector.broadcast %934 : f32 to vector<2x128xf32>
    %936 = arith.mulf %183, %935 : vector<2x128xf32>
    %937 = arith.addf %933, %936 : vector<2x128xf32>
    %c10_458 = arith.constant 10 : index
    %c15_459 = arith.constant 15 : index
    %938 = memref.load %arg5[%c10_458, %c15_459] : memref<16x16xf32, #tpu.memory_space<smem>>
    %939 = vector.broadcast %938 : f32 to vector<2x128xf32>
    %940 = arith.mulf %195, %939 : vector<2x128xf32>
    %941 = arith.addf %937, %940 : vector<2x128xf32>
    %cst_460 = arith.constant 0.000000e+00 : f32
    %942 = vector.broadcast %cst_460 : f32 to vector<2x128xf32>
    %943 = arith.maximumf %941, %942 : vector<2x128xf32>
    %c11_461 = arith.constant 11 : index
    %c0_462 = arith.constant 0 : index
    %944 = memref.load %arg5[%c11_461, %c0_462] : memref<16x16xf32, #tpu.memory_space<smem>>
    %945 = vector.broadcast %944 : f32 to vector<2x128xf32>
    %946 = arith.mulf %15, %945 : vector<2x128xf32>
    %c11_463 = arith.constant 11 : index
    %947 = memref.load %arg6[%c11_463] : memref<16xf32, #tpu.memory_space<smem>>
    %948 = vector.broadcast %947 : f32 to vector<2x128xf32>
    %949 = arith.addf %946, %948 : vector<2x128xf32>
    %c11_464 = arith.constant 11 : index
    %c1_465 = arith.constant 1 : index
    %950 = memref.load %arg5[%c11_464, %c1_465] : memref<16x16xf32, #tpu.memory_space<smem>>
    %951 = vector.broadcast %950 : f32 to vector<2x128xf32>
    %952 = arith.mulf %27, %951 : vector<2x128xf32>
    %953 = arith.addf %949, %952 : vector<2x128xf32>
    %c11_466 = arith.constant 11 : index
    %c2_467 = arith.constant 2 : index
    %954 = memref.load %arg5[%c11_466, %c2_467] : memref<16x16xf32, #tpu.memory_space<smem>>
    %955 = vector.broadcast %954 : f32 to vector<2x128xf32>
    %956 = arith.mulf %39, %955 : vector<2x128xf32>
    %957 = arith.addf %953, %956 : vector<2x128xf32>
    %c11_468 = arith.constant 11 : index
    %c3_469 = arith.constant 3 : index
    %958 = memref.load %arg5[%c11_468, %c3_469] : memref<16x16xf32, #tpu.memory_space<smem>>
    %959 = vector.broadcast %958 : f32 to vector<2x128xf32>
    %960 = arith.mulf %51, %959 : vector<2x128xf32>
    %961 = arith.addf %957, %960 : vector<2x128xf32>
    %c11_470 = arith.constant 11 : index
    %c4_471 = arith.constant 4 : index
    %962 = memref.load %arg5[%c11_470, %c4_471] : memref<16x16xf32, #tpu.memory_space<smem>>
    %963 = vector.broadcast %962 : f32 to vector<2x128xf32>
    %964 = arith.mulf %63, %963 : vector<2x128xf32>
    %965 = arith.addf %961, %964 : vector<2x128xf32>
    %c11_472 = arith.constant 11 : index
    %c5_473 = arith.constant 5 : index
    %966 = memref.load %arg5[%c11_472, %c5_473] : memref<16x16xf32, #tpu.memory_space<smem>>
    %967 = vector.broadcast %966 : f32 to vector<2x128xf32>
    %968 = arith.mulf %75, %967 : vector<2x128xf32>
    %969 = arith.addf %965, %968 : vector<2x128xf32>
    %c11_474 = arith.constant 11 : index
    %c6_475 = arith.constant 6 : index
    %970 = memref.load %arg5[%c11_474, %c6_475] : memref<16x16xf32, #tpu.memory_space<smem>>
    %971 = vector.broadcast %970 : f32 to vector<2x128xf32>
    %972 = arith.mulf %87, %971 : vector<2x128xf32>
    %973 = arith.addf %969, %972 : vector<2x128xf32>
    %c11_476 = arith.constant 11 : index
    %c7_477 = arith.constant 7 : index
    %974 = memref.load %arg5[%c11_476, %c7_477] : memref<16x16xf32, #tpu.memory_space<smem>>
    %975 = vector.broadcast %974 : f32 to vector<2x128xf32>
    %976 = arith.mulf %99, %975 : vector<2x128xf32>
    %977 = arith.addf %973, %976 : vector<2x128xf32>
    %c11_478 = arith.constant 11 : index
    %c8_479 = arith.constant 8 : index
    %978 = memref.load %arg5[%c11_478, %c8_479] : memref<16x16xf32, #tpu.memory_space<smem>>
    %979 = vector.broadcast %978 : f32 to vector<2x128xf32>
    %980 = arith.mulf %111, %979 : vector<2x128xf32>
    %981 = arith.addf %977, %980 : vector<2x128xf32>
    %c11_480 = arith.constant 11 : index
    %c9_481 = arith.constant 9 : index
    %982 = memref.load %arg5[%c11_480, %c9_481] : memref<16x16xf32, #tpu.memory_space<smem>>
    %983 = vector.broadcast %982 : f32 to vector<2x128xf32>
    %984 = arith.mulf %123, %983 : vector<2x128xf32>
    %985 = arith.addf %981, %984 : vector<2x128xf32>
    %c11_482 = arith.constant 11 : index
    %c10_483 = arith.constant 10 : index
    %986 = memref.load %arg5[%c11_482, %c10_483] : memref<16x16xf32, #tpu.memory_space<smem>>
    %987 = vector.broadcast %986 : f32 to vector<2x128xf32>
    %988 = arith.mulf %135, %987 : vector<2x128xf32>
    %989 = arith.addf %985, %988 : vector<2x128xf32>
    %c11_484 = arith.constant 11 : index
    %c11_485 = arith.constant 11 : index
    %990 = memref.load %arg5[%c11_484, %c11_485] : memref<16x16xf32, #tpu.memory_space<smem>>
    %991 = vector.broadcast %990 : f32 to vector<2x128xf32>
    %992 = arith.mulf %147, %991 : vector<2x128xf32>
    %993 = arith.addf %989, %992 : vector<2x128xf32>
    %c11_486 = arith.constant 11 : index
    %c12_487 = arith.constant 12 : index
    %994 = memref.load %arg5[%c11_486, %c12_487] : memref<16x16xf32, #tpu.memory_space<smem>>
    %995 = vector.broadcast %994 : f32 to vector<2x128xf32>
    %996 = arith.mulf %159, %995 : vector<2x128xf32>
    %997 = arith.addf %993, %996 : vector<2x128xf32>
    %c11_488 = arith.constant 11 : index
    %c13_489 = arith.constant 13 : index
    %998 = memref.load %arg5[%c11_488, %c13_489] : memref<16x16xf32, #tpu.memory_space<smem>>
    %999 = vector.broadcast %998 : f32 to vector<2x128xf32>
    %1000 = arith.mulf %171, %999 : vector<2x128xf32>
    %1001 = arith.addf %997, %1000 : vector<2x128xf32>
    %c11_490 = arith.constant 11 : index
    %c14_491 = arith.constant 14 : index
    %1002 = memref.load %arg5[%c11_490, %c14_491] : memref<16x16xf32, #tpu.memory_space<smem>>
    %1003 = vector.broadcast %1002 : f32 to vector<2x128xf32>
    %1004 = arith.mulf %183, %1003 : vector<2x128xf32>
    %1005 = arith.addf %1001, %1004 : vector<2x128xf32>
    %c11_492 = arith.constant 11 : index
    %c15_493 = arith.constant 15 : index
    %1006 = memref.load %arg5[%c11_492, %c15_493] : memref<16x16xf32, #tpu.memory_space<smem>>
    %1007 = vector.broadcast %1006 : f32 to vector<2x128xf32>
    %1008 = arith.mulf %195, %1007 : vector<2x128xf32>
    %1009 = arith.addf %1005, %1008 : vector<2x128xf32>
    %cst_494 = arith.constant 0.000000e+00 : f32
    %1010 = vector.broadcast %cst_494 : f32 to vector<2x128xf32>
    %1011 = arith.maximumf %1009, %1010 : vector<2x128xf32>
    %c12_495 = arith.constant 12 : index
    %c0_496 = arith.constant 0 : index
    %1012 = memref.load %arg5[%c12_495, %c0_496] : memref<16x16xf32, #tpu.memory_space<smem>>
    %1013 = vector.broadcast %1012 : f32 to vector<2x128xf32>
    %1014 = arith.mulf %15, %1013 : vector<2x128xf32>
    %c12_497 = arith.constant 12 : index
    %1015 = memref.load %arg6[%c12_497] : memref<16xf32, #tpu.memory_space<smem>>
    %1016 = vector.broadcast %1015 : f32 to vector<2x128xf32>
    %1017 = arith.addf %1014, %1016 : vector<2x128xf32>
    %c12_498 = arith.constant 12 : index
    %c1_499 = arith.constant 1 : index
    %1018 = memref.load %arg5[%c12_498, %c1_499] : memref<16x16xf32, #tpu.memory_space<smem>>
    %1019 = vector.broadcast %1018 : f32 to vector<2x128xf32>
    %1020 = arith.mulf %27, %1019 : vector<2x128xf32>
    %1021 = arith.addf %1017, %1020 : vector<2x128xf32>
    %c12_500 = arith.constant 12 : index
    %c2_501 = arith.constant 2 : index
    %1022 = memref.load %arg5[%c12_500, %c2_501] : memref<16x16xf32, #tpu.memory_space<smem>>
    %1023 = vector.broadcast %1022 : f32 to vector<2x128xf32>
    %1024 = arith.mulf %39, %1023 : vector<2x128xf32>
    %1025 = arith.addf %1021, %1024 : vector<2x128xf32>
    %c12_502 = arith.constant 12 : index
    %c3_503 = arith.constant 3 : index
    %1026 = memref.load %arg5[%c12_502, %c3_503] : memref<16x16xf32, #tpu.memory_space<smem>>
    %1027 = vector.broadcast %1026 : f32 to vector<2x128xf32>
    %1028 = arith.mulf %51, %1027 : vector<2x128xf32>
    %1029 = arith.addf %1025, %1028 : vector<2x128xf32>
    %c12_504 = arith.constant 12 : index
    %c4_505 = arith.constant 4 : index
    %1030 = memref.load %arg5[%c12_504, %c4_505] : memref<16x16xf32, #tpu.memory_space<smem>>
    %1031 = vector.broadcast %1030 : f32 to vector<2x128xf32>
    %1032 = arith.mulf %63, %1031 : vector<2x128xf32>
    %1033 = arith.addf %1029, %1032 : vector<2x128xf32>
    %c12_506 = arith.constant 12 : index
    %c5_507 = arith.constant 5 : index
    %1034 = memref.load %arg5[%c12_506, %c5_507] : memref<16x16xf32, #tpu.memory_space<smem>>
    %1035 = vector.broadcast %1034 : f32 to vector<2x128xf32>
    %1036 = arith.mulf %75, %1035 : vector<2x128xf32>
    %1037 = arith.addf %1033, %1036 : vector<2x128xf32>
    %c12_508 = arith.constant 12 : index
    %c6_509 = arith.constant 6 : index
    %1038 = memref.load %arg5[%c12_508, %c6_509] : memref<16x16xf32, #tpu.memory_space<smem>>
    %1039 = vector.broadcast %1038 : f32 to vector<2x128xf32>
    %1040 = arith.mulf %87, %1039 : vector<2x128xf32>
    %1041 = arith.addf %1037, %1040 : vector<2x128xf32>
    %c12_510 = arith.constant 12 : index
    %c7_511 = arith.constant 7 : index
    %1042 = memref.load %arg5[%c12_510, %c7_511] : memref<16x16xf32, #tpu.memory_space<smem>>
    %1043 = vector.broadcast %1042 : f32 to vector<2x128xf32>
    %1044 = arith.mulf %99, %1043 : vector<2x128xf32>
    %1045 = arith.addf %1041, %1044 : vector<2x128xf32>
    %c12_512 = arith.constant 12 : index
    %c8_513 = arith.constant 8 : index
    %1046 = memref.load %arg5[%c12_512, %c8_513] : memref<16x16xf32, #tpu.memory_space<smem>>
    %1047 = vector.broadcast %1046 : f32 to vector<2x128xf32>
    %1048 = arith.mulf %111, %1047 : vector<2x128xf32>
    %1049 = arith.addf %1045, %1048 : vector<2x128xf32>
    %c12_514 = arith.constant 12 : index
    %c9_515 = arith.constant 9 : index
    %1050 = memref.load %arg5[%c12_514, %c9_515] : memref<16x16xf32, #tpu.memory_space<smem>>
    %1051 = vector.broadcast %1050 : f32 to vector<2x128xf32>
    %1052 = arith.mulf %123, %1051 : vector<2x128xf32>
    %1053 = arith.addf %1049, %1052 : vector<2x128xf32>
    %c12_516 = arith.constant 12 : index
    %c10_517 = arith.constant 10 : index
    %1054 = memref.load %arg5[%c12_516, %c10_517] : memref<16x16xf32, #tpu.memory_space<smem>>
    %1055 = vector.broadcast %1054 : f32 to vector<2x128xf32>
    %1056 = arith.mulf %135, %1055 : vector<2x128xf32>
    %1057 = arith.addf %1053, %1056 : vector<2x128xf32>
    %c12_518 = arith.constant 12 : index
    %c11_519 = arith.constant 11 : index
    %1058 = memref.load %arg5[%c12_518, %c11_519] : memref<16x16xf32, #tpu.memory_space<smem>>
    %1059 = vector.broadcast %1058 : f32 to vector<2x128xf32>
    %1060 = arith.mulf %147, %1059 : vector<2x128xf32>
    %1061 = arith.addf %1057, %1060 : vector<2x128xf32>
    %c12_520 = arith.constant 12 : index
    %c12_521 = arith.constant 12 : index
    %1062 = memref.load %arg5[%c12_520, %c12_521] : memref<16x16xf32, #tpu.memory_space<smem>>
    %1063 = vector.broadcast %1062 : f32 to vector<2x128xf32>
    %1064 = arith.mulf %159, %1063 : vector<2x128xf32>
    %1065 = arith.addf %1061, %1064 : vector<2x128xf32>
    %c12_522 = arith.constant 12 : index
    %c13_523 = arith.constant 13 : index
    %1066 = memref.load %arg5[%c12_522, %c13_523] : memref<16x16xf32, #tpu.memory_space<smem>>
    %1067 = vector.broadcast %1066 : f32 to vector<2x128xf32>
    %1068 = arith.mulf %171, %1067 : vector<2x128xf32>
    %1069 = arith.addf %1065, %1068 : vector<2x128xf32>
    %c12_524 = arith.constant 12 : index
    %c14_525 = arith.constant 14 : index
    %1070 = memref.load %arg5[%c12_524, %c14_525] : memref<16x16xf32, #tpu.memory_space<smem>>
    %1071 = vector.broadcast %1070 : f32 to vector<2x128xf32>
    %1072 = arith.mulf %183, %1071 : vector<2x128xf32>
    %1073 = arith.addf %1069, %1072 : vector<2x128xf32>
    %c12_526 = arith.constant 12 : index
    %c15_527 = arith.constant 15 : index
    %1074 = memref.load %arg5[%c12_526, %c15_527] : memref<16x16xf32, #tpu.memory_space<smem>>
    %1075 = vector.broadcast %1074 : f32 to vector<2x128xf32>
    %1076 = arith.mulf %195, %1075 : vector<2x128xf32>
    %1077 = arith.addf %1073, %1076 : vector<2x128xf32>
    %cst_528 = arith.constant 0.000000e+00 : f32
    %1078 = vector.broadcast %cst_528 : f32 to vector<2x128xf32>
    %1079 = arith.maximumf %1077, %1078 : vector<2x128xf32>
    %c13_529 = arith.constant 13 : index
    %c0_530 = arith.constant 0 : index
    %1080 = memref.load %arg5[%c13_529, %c0_530] : memref<16x16xf32, #tpu.memory_space<smem>>
    %1081 = vector.broadcast %1080 : f32 to vector<2x128xf32>
    %1082 = arith.mulf %15, %1081 : vector<2x128xf32>
    %c13_531 = arith.constant 13 : index
    %1083 = memref.load %arg6[%c13_531] : memref<16xf32, #tpu.memory_space<smem>>
    %1084 = vector.broadcast %1083 : f32 to vector<2x128xf32>
    %1085 = arith.addf %1082, %1084 : vector<2x128xf32>
    %c13_532 = arith.constant 13 : index
    %c1_533 = arith.constant 1 : index
    %1086 = memref.load %arg5[%c13_532, %c1_533] : memref<16x16xf32, #tpu.memory_space<smem>>
    %1087 = vector.broadcast %1086 : f32 to vector<2x128xf32>
    %1088 = arith.mulf %27, %1087 : vector<2x128xf32>
    %1089 = arith.addf %1085, %1088 : vector<2x128xf32>
    %c13_534 = arith.constant 13 : index
    %c2_535 = arith.constant 2 : index
    %1090 = memref.load %arg5[%c13_534, %c2_535] : memref<16x16xf32, #tpu.memory_space<smem>>
    %1091 = vector.broadcast %1090 : f32 to vector<2x128xf32>
    %1092 = arith.mulf %39, %1091 : vector<2x128xf32>
    %1093 = arith.addf %1089, %1092 : vector<2x128xf32>
    %c13_536 = arith.constant 13 : index
    %c3_537 = arith.constant 3 : index
    %1094 = memref.load %arg5[%c13_536, %c3_537] : memref<16x16xf32, #tpu.memory_space<smem>>
    %1095 = vector.broadcast %1094 : f32 to vector<2x128xf32>
    %1096 = arith.mulf %51, %1095 : vector<2x128xf32>
    %1097 = arith.addf %1093, %1096 : vector<2x128xf32>
    %c13_538 = arith.constant 13 : index
    %c4_539 = arith.constant 4 : index
    %1098 = memref.load %arg5[%c13_538, %c4_539] : memref<16x16xf32, #tpu.memory_space<smem>>
    %1099 = vector.broadcast %1098 : f32 to vector<2x128xf32>
    %1100 = arith.mulf %63, %1099 : vector<2x128xf32>
    %1101 = arith.addf %1097, %1100 : vector<2x128xf32>
    %c13_540 = arith.constant 13 : index
    %c5_541 = arith.constant 5 : index
    %1102 = memref.load %arg5[%c13_540, %c5_541] : memref<16x16xf32, #tpu.memory_space<smem>>
    %1103 = vector.broadcast %1102 : f32 to vector<2x128xf32>
    %1104 = arith.mulf %75, %1103 : vector<2x128xf32>
    %1105 = arith.addf %1101, %1104 : vector<2x128xf32>
    %c13_542 = arith.constant 13 : index
    %c6_543 = arith.constant 6 : index
    %1106 = memref.load %arg5[%c13_542, %c6_543] : memref<16x16xf32, #tpu.memory_space<smem>>
    %1107 = vector.broadcast %1106 : f32 to vector<2x128xf32>
    %1108 = arith.mulf %87, %1107 : vector<2x128xf32>
    %1109 = arith.addf %1105, %1108 : vector<2x128xf32>
    %c13_544 = arith.constant 13 : index
    %c7_545 = arith.constant 7 : index
    %1110 = memref.load %arg5[%c13_544, %c7_545] : memref<16x16xf32, #tpu.memory_space<smem>>
    %1111 = vector.broadcast %1110 : f32 to vector<2x128xf32>
    %1112 = arith.mulf %99, %1111 : vector<2x128xf32>
    %1113 = arith.addf %1109, %1112 : vector<2x128xf32>
    %c13_546 = arith.constant 13 : index
    %c8_547 = arith.constant 8 : index
    %1114 = memref.load %arg5[%c13_546, %c8_547] : memref<16x16xf32, #tpu.memory_space<smem>>
    %1115 = vector.broadcast %1114 : f32 to vector<2x128xf32>
    %1116 = arith.mulf %111, %1115 : vector<2x128xf32>
    %1117 = arith.addf %1113, %1116 : vector<2x128xf32>
    %c13_548 = arith.constant 13 : index
    %c9_549 = arith.constant 9 : index
    %1118 = memref.load %arg5[%c13_548, %c9_549] : memref<16x16xf32, #tpu.memory_space<smem>>
    %1119 = vector.broadcast %1118 : f32 to vector<2x128xf32>
    %1120 = arith.mulf %123, %1119 : vector<2x128xf32>
    %1121 = arith.addf %1117, %1120 : vector<2x128xf32>
    %c13_550 = arith.constant 13 : index
    %c10_551 = arith.constant 10 : index
    %1122 = memref.load %arg5[%c13_550, %c10_551] : memref<16x16xf32, #tpu.memory_space<smem>>
    %1123 = vector.broadcast %1122 : f32 to vector<2x128xf32>
    %1124 = arith.mulf %135, %1123 : vector<2x128xf32>
    %1125 = arith.addf %1121, %1124 : vector<2x128xf32>
    %c13_552 = arith.constant 13 : index
    %c11_553 = arith.constant 11 : index
    %1126 = memref.load %arg5[%c13_552, %c11_553] : memref<16x16xf32, #tpu.memory_space<smem>>
    %1127 = vector.broadcast %1126 : f32 to vector<2x128xf32>
    %1128 = arith.mulf %147, %1127 : vector<2x128xf32>
    %1129 = arith.addf %1125, %1128 : vector<2x128xf32>
    %c13_554 = arith.constant 13 : index
    %c12_555 = arith.constant 12 : index
    %1130 = memref.load %arg5[%c13_554, %c12_555] : memref<16x16xf32, #tpu.memory_space<smem>>
    %1131 = vector.broadcast %1130 : f32 to vector<2x128xf32>
    %1132 = arith.mulf %159, %1131 : vector<2x128xf32>
    %1133 = arith.addf %1129, %1132 : vector<2x128xf32>
    %c13_556 = arith.constant 13 : index
    %c13_557 = arith.constant 13 : index
    %1134 = memref.load %arg5[%c13_556, %c13_557] : memref<16x16xf32, #tpu.memory_space<smem>>
    %1135 = vector.broadcast %1134 : f32 to vector<2x128xf32>
    %1136 = arith.mulf %171, %1135 : vector<2x128xf32>
    %1137 = arith.addf %1133, %1136 : vector<2x128xf32>
    %c13_558 = arith.constant 13 : index
    %c14_559 = arith.constant 14 : index
    %1138 = memref.load %arg5[%c13_558, %c14_559] : memref<16x16xf32, #tpu.memory_space<smem>>
    %1139 = vector.broadcast %1138 : f32 to vector<2x128xf32>
    %1140 = arith.mulf %183, %1139 : vector<2x128xf32>
    %1141 = arith.addf %1137, %1140 : vector<2x128xf32>
    %c13_560 = arith.constant 13 : index
    %c15_561 = arith.constant 15 : index
    %1142 = memref.load %arg5[%c13_560, %c15_561] : memref<16x16xf32, #tpu.memory_space<smem>>
    %1143 = vector.broadcast %1142 : f32 to vector<2x128xf32>
    %1144 = arith.mulf %195, %1143 : vector<2x128xf32>
    %1145 = arith.addf %1141, %1144 : vector<2x128xf32>
    %cst_562 = arith.constant 0.000000e+00 : f32
    %1146 = vector.broadcast %cst_562 : f32 to vector<2x128xf32>
    %1147 = arith.maximumf %1145, %1146 : vector<2x128xf32>
    %c14_563 = arith.constant 14 : index
    %c0_564 = arith.constant 0 : index
    %1148 = memref.load %arg5[%c14_563, %c0_564] : memref<16x16xf32, #tpu.memory_space<smem>>
    %1149 = vector.broadcast %1148 : f32 to vector<2x128xf32>
    %1150 = arith.mulf %15, %1149 : vector<2x128xf32>
    %c14_565 = arith.constant 14 : index
    %1151 = memref.load %arg6[%c14_565] : memref<16xf32, #tpu.memory_space<smem>>
    %1152 = vector.broadcast %1151 : f32 to vector<2x128xf32>
    %1153 = arith.addf %1150, %1152 : vector<2x128xf32>
    %c14_566 = arith.constant 14 : index
    %c1_567 = arith.constant 1 : index
    %1154 = memref.load %arg5[%c14_566, %c1_567] : memref<16x16xf32, #tpu.memory_space<smem>>
    %1155 = vector.broadcast %1154 : f32 to vector<2x128xf32>
    %1156 = arith.mulf %27, %1155 : vector<2x128xf32>
    %1157 = arith.addf %1153, %1156 : vector<2x128xf32>
    %c14_568 = arith.constant 14 : index
    %c2_569 = arith.constant 2 : index
    %1158 = memref.load %arg5[%c14_568, %c2_569] : memref<16x16xf32, #tpu.memory_space<smem>>
    %1159 = vector.broadcast %1158 : f32 to vector<2x128xf32>
    %1160 = arith.mulf %39, %1159 : vector<2x128xf32>
    %1161 = arith.addf %1157, %1160 : vector<2x128xf32>
    %c14_570 = arith.constant 14 : index
    %c3_571 = arith.constant 3 : index
    %1162 = memref.load %arg5[%c14_570, %c3_571] : memref<16x16xf32, #tpu.memory_space<smem>>
    %1163 = vector.broadcast %1162 : f32 to vector<2x128xf32>
    %1164 = arith.mulf %51, %1163 : vector<2x128xf32>
    %1165 = arith.addf %1161, %1164 : vector<2x128xf32>
    %c14_572 = arith.constant 14 : index
    %c4_573 = arith.constant 4 : index
    %1166 = memref.load %arg5[%c14_572, %c4_573] : memref<16x16xf32, #tpu.memory_space<smem>>
    %1167 = vector.broadcast %1166 : f32 to vector<2x128xf32>
    %1168 = arith.mulf %63, %1167 : vector<2x128xf32>
    %1169 = arith.addf %1165, %1168 : vector<2x128xf32>
    %c14_574 = arith.constant 14 : index
    %c5_575 = arith.constant 5 : index
    %1170 = memref.load %arg5[%c14_574, %c5_575] : memref<16x16xf32, #tpu.memory_space<smem>>
    %1171 = vector.broadcast %1170 : f32 to vector<2x128xf32>
    %1172 = arith.mulf %75, %1171 : vector<2x128xf32>
    %1173 = arith.addf %1169, %1172 : vector<2x128xf32>
    %c14_576 = arith.constant 14 : index
    %c6_577 = arith.constant 6 : index
    %1174 = memref.load %arg5[%c14_576, %c6_577] : memref<16x16xf32, #tpu.memory_space<smem>>
    %1175 = vector.broadcast %1174 : f32 to vector<2x128xf32>
    %1176 = arith.mulf %87, %1175 : vector<2x128xf32>
    %1177 = arith.addf %1173, %1176 : vector<2x128xf32>
    %c14_578 = arith.constant 14 : index
    %c7_579 = arith.constant 7 : index
    %1178 = memref.load %arg5[%c14_578, %c7_579] : memref<16x16xf32, #tpu.memory_space<smem>>
    %1179 = vector.broadcast %1178 : f32 to vector<2x128xf32>
    %1180 = arith.mulf %99, %1179 : vector<2x128xf32>
    %1181 = arith.addf %1177, %1180 : vector<2x128xf32>
    %c14_580 = arith.constant 14 : index
    %c8_581 = arith.constant 8 : index
    %1182 = memref.load %arg5[%c14_580, %c8_581] : memref<16x16xf32, #tpu.memory_space<smem>>
    %1183 = vector.broadcast %1182 : f32 to vector<2x128xf32>
    %1184 = arith.mulf %111, %1183 : vector<2x128xf32>
    %1185 = arith.addf %1181, %1184 : vector<2x128xf32>
    %c14_582 = arith.constant 14 : index
    %c9_583 = arith.constant 9 : index
    %1186 = memref.load %arg5[%c14_582, %c9_583] : memref<16x16xf32, #tpu.memory_space<smem>>
    %1187 = vector.broadcast %1186 : f32 to vector<2x128xf32>
    %1188 = arith.mulf %123, %1187 : vector<2x128xf32>
    %1189 = arith.addf %1185, %1188 : vector<2x128xf32>
    %c14_584 = arith.constant 14 : index
    %c10_585 = arith.constant 10 : index
    %1190 = memref.load %arg5[%c14_584, %c10_585] : memref<16x16xf32, #tpu.memory_space<smem>>
    %1191 = vector.broadcast %1190 : f32 to vector<2x128xf32>
    %1192 = arith.mulf %135, %1191 : vector<2x128xf32>
    %1193 = arith.addf %1189, %1192 : vector<2x128xf32>
    %c14_586 = arith.constant 14 : index
    %c11_587 = arith.constant 11 : index
    %1194 = memref.load %arg5[%c14_586, %c11_587] : memref<16x16xf32, #tpu.memory_space<smem>>
    %1195 = vector.broadcast %1194 : f32 to vector<2x128xf32>
    %1196 = arith.mulf %147, %1195 : vector<2x128xf32>
    %1197 = arith.addf %1193, %1196 : vector<2x128xf32>
    %c14_588 = arith.constant 14 : index
    %c12_589 = arith.constant 12 : index
    %1198 = memref.load %arg5[%c14_588, %c12_589] : memref<16x16xf32, #tpu.memory_space<smem>>
    %1199 = vector.broadcast %1198 : f32 to vector<2x128xf32>
    %1200 = arith.mulf %159, %1199 : vector<2x128xf32>
    %1201 = arith.addf %1197, %1200 : vector<2x128xf32>
    %c14_590 = arith.constant 14 : index
    %c13_591 = arith.constant 13 : index
    %1202 = memref.load %arg5[%c14_590, %c13_591] : memref<16x16xf32, #tpu.memory_space<smem>>
    %1203 = vector.broadcast %1202 : f32 to vector<2x128xf32>
    %1204 = arith.mulf %171, %1203 : vector<2x128xf32>
    %1205 = arith.addf %1201, %1204 : vector<2x128xf32>
    %c14_592 = arith.constant 14 : index
    %c14_593 = arith.constant 14 : index
    %1206 = memref.load %arg5[%c14_592, %c14_593] : memref<16x16xf32, #tpu.memory_space<smem>>
    %1207 = vector.broadcast %1206 : f32 to vector<2x128xf32>
    %1208 = arith.mulf %183, %1207 : vector<2x128xf32>
    %1209 = arith.addf %1205, %1208 : vector<2x128xf32>
    %c14_594 = arith.constant 14 : index
    %c15_595 = arith.constant 15 : index
    %1210 = memref.load %arg5[%c14_594, %c15_595] : memref<16x16xf32, #tpu.memory_space<smem>>
    %1211 = vector.broadcast %1210 : f32 to vector<2x128xf32>
    %1212 = arith.mulf %195, %1211 : vector<2x128xf32>
    %1213 = arith.addf %1209, %1212 : vector<2x128xf32>
    %cst_596 = arith.constant 0.000000e+00 : f32
    %1214 = vector.broadcast %cst_596 : f32 to vector<2x128xf32>
    %1215 = arith.maximumf %1213, %1214 : vector<2x128xf32>
    %c15_597 = arith.constant 15 : index
    %c0_598 = arith.constant 0 : index
    %1216 = memref.load %arg5[%c15_597, %c0_598] : memref<16x16xf32, #tpu.memory_space<smem>>
    %1217 = vector.broadcast %1216 : f32 to vector<2x128xf32>
    %1218 = arith.mulf %15, %1217 : vector<2x128xf32>
    %c15_599 = arith.constant 15 : index
    %1219 = memref.load %arg6[%c15_599] : memref<16xf32, #tpu.memory_space<smem>>
    %1220 = vector.broadcast %1219 : f32 to vector<2x128xf32>
    %1221 = arith.addf %1218, %1220 : vector<2x128xf32>
    %c15_600 = arith.constant 15 : index
    %c1_601 = arith.constant 1 : index
    %1222 = memref.load %arg5[%c15_600, %c1_601] : memref<16x16xf32, #tpu.memory_space<smem>>
    %1223 = vector.broadcast %1222 : f32 to vector<2x128xf32>
    %1224 = arith.mulf %27, %1223 : vector<2x128xf32>
    %1225 = arith.addf %1221, %1224 : vector<2x128xf32>
    %c15_602 = arith.constant 15 : index
    %c2_603 = arith.constant 2 : index
    %1226 = memref.load %arg5[%c15_602, %c2_603] : memref<16x16xf32, #tpu.memory_space<smem>>
    %1227 = vector.broadcast %1226 : f32 to vector<2x128xf32>
    %1228 = arith.mulf %39, %1227 : vector<2x128xf32>
    %1229 = arith.addf %1225, %1228 : vector<2x128xf32>
    %c15_604 = arith.constant 15 : index
    %c3_605 = arith.constant 3 : index
    %1230 = memref.load %arg5[%c15_604, %c3_605] : memref<16x16xf32, #tpu.memory_space<smem>>
    %1231 = vector.broadcast %1230 : f32 to vector<2x128xf32>
    %1232 = arith.mulf %51, %1231 : vector<2x128xf32>
    %1233 = arith.addf %1229, %1232 : vector<2x128xf32>
    %c15_606 = arith.constant 15 : index
    %c4_607 = arith.constant 4 : index
    %1234 = memref.load %arg5[%c15_606, %c4_607] : memref<16x16xf32, #tpu.memory_space<smem>>
    %1235 = vector.broadcast %1234 : f32 to vector<2x128xf32>
    %1236 = arith.mulf %63, %1235 : vector<2x128xf32>
    %1237 = arith.addf %1233, %1236 : vector<2x128xf32>
    %c15_608 = arith.constant 15 : index
    %c5_609 = arith.constant 5 : index
    %1238 = memref.load %arg5[%c15_608, %c5_609] : memref<16x16xf32, #tpu.memory_space<smem>>
    %1239 = vector.broadcast %1238 : f32 to vector<2x128xf32>
    %1240 = arith.mulf %75, %1239 : vector<2x128xf32>
    %1241 = arith.addf %1237, %1240 : vector<2x128xf32>
    %c15_610 = arith.constant 15 : index
    %c6_611 = arith.constant 6 : index
    %1242 = memref.load %arg5[%c15_610, %c6_611] : memref<16x16xf32, #tpu.memory_space<smem>>
    %1243 = vector.broadcast %1242 : f32 to vector<2x128xf32>
    %1244 = arith.mulf %87, %1243 : vector<2x128xf32>
    %1245 = arith.addf %1241, %1244 : vector<2x128xf32>
    %c15_612 = arith.constant 15 : index
    %c7_613 = arith.constant 7 : index
    %1246 = memref.load %arg5[%c15_612, %c7_613] : memref<16x16xf32, #tpu.memory_space<smem>>
    %1247 = vector.broadcast %1246 : f32 to vector<2x128xf32>
    %1248 = arith.mulf %99, %1247 : vector<2x128xf32>
    %1249 = arith.addf %1245, %1248 : vector<2x128xf32>
    %c15_614 = arith.constant 15 : index
    %c8_615 = arith.constant 8 : index
    %1250 = memref.load %arg5[%c15_614, %c8_615] : memref<16x16xf32, #tpu.memory_space<smem>>
    %1251 = vector.broadcast %1250 : f32 to vector<2x128xf32>
    %1252 = arith.mulf %111, %1251 : vector<2x128xf32>
    %1253 = arith.addf %1249, %1252 : vector<2x128xf32>
    %c15_616 = arith.constant 15 : index
    %c9_617 = arith.constant 9 : index
    %1254 = memref.load %arg5[%c15_616, %c9_617] : memref<16x16xf32, #tpu.memory_space<smem>>
    %1255 = vector.broadcast %1254 : f32 to vector<2x128xf32>
    %1256 = arith.mulf %123, %1255 : vector<2x128xf32>
    %1257 = arith.addf %1253, %1256 : vector<2x128xf32>
    %c15_618 = arith.constant 15 : index
    %c10_619 = arith.constant 10 : index
    %1258 = memref.load %arg5[%c15_618, %c10_619] : memref<16x16xf32, #tpu.memory_space<smem>>
    %1259 = vector.broadcast %1258 : f32 to vector<2x128xf32>
    %1260 = arith.mulf %135, %1259 : vector<2x128xf32>
    %1261 = arith.addf %1257, %1260 : vector<2x128xf32>
    %c15_620 = arith.constant 15 : index
    %c11_621 = arith.constant 11 : index
    %1262 = memref.load %arg5[%c15_620, %c11_621] : memref<16x16xf32, #tpu.memory_space<smem>>
    %1263 = vector.broadcast %1262 : f32 to vector<2x128xf32>
    %1264 = arith.mulf %147, %1263 : vector<2x128xf32>
    %1265 = arith.addf %1261, %1264 : vector<2x128xf32>
    %c15_622 = arith.constant 15 : index
    %c12_623 = arith.constant 12 : index
    %1266 = memref.load %arg5[%c15_622, %c12_623] : memref<16x16xf32, #tpu.memory_space<smem>>
    %1267 = vector.broadcast %1266 : f32 to vector<2x128xf32>
    %1268 = arith.mulf %159, %1267 : vector<2x128xf32>
    %1269 = arith.addf %1265, %1268 : vector<2x128xf32>
    %c15_624 = arith.constant 15 : index
    %c13_625 = arith.constant 13 : index
    %1270 = memref.load %arg5[%c15_624, %c13_625] : memref<16x16xf32, #tpu.memory_space<smem>>
    %1271 = vector.broadcast %1270 : f32 to vector<2x128xf32>
    %1272 = arith.mulf %171, %1271 : vector<2x128xf32>
    %1273 = arith.addf %1269, %1272 : vector<2x128xf32>
    %c15_626 = arith.constant 15 : index
    %c14_627 = arith.constant 14 : index
    %1274 = memref.load %arg5[%c15_626, %c14_627] : memref<16x16xf32, #tpu.memory_space<smem>>
    %1275 = vector.broadcast %1274 : f32 to vector<2x128xf32>
    %1276 = arith.mulf %183, %1275 : vector<2x128xf32>
    %1277 = arith.addf %1273, %1276 : vector<2x128xf32>
    %c15_628 = arith.constant 15 : index
    %c15_629 = arith.constant 15 : index
    %1278 = memref.load %arg5[%c15_628, %c15_629] : memref<16x16xf32, #tpu.memory_space<smem>>
    %1279 = vector.broadcast %1278 : f32 to vector<2x128xf32>
    %1280 = arith.mulf %195, %1279 : vector<2x128xf32>
    %1281 = arith.addf %1277, %1280 : vector<2x128xf32>
    %cst_630 = arith.constant 0.000000e+00 : f32
    %1282 = vector.broadcast %cst_630 : f32 to vector<2x128xf32>
    %1283 = arith.maximumf %1281, %1282 : vector<2x128xf32>
    %c0_631 = arith.constant 0 : index
    %c0_632 = arith.constant 0 : index
    %1284 = memref.load %arg7[%c0_631, %c0_632] : memref<1x16xf32, #tpu.memory_space<smem>>
    %1285 = vector.broadcast %1284 : f32 to vector<2x128xf32>
    %1286 = arith.mulf %263, %1285 : vector<2x128xf32>
    %c0_633 = arith.constant 0 : index
    %1287 = memref.load %arg8[%c0_633] : memref<1xf32, #tpu.memory_space<smem>>
    %1288 = vector.broadcast %1287 : f32 to vector<2x128xf32>
    %1289 = arith.addf %1286, %1288 : vector<2x128xf32>
    %c0_634 = arith.constant 0 : index
    %c1_635 = arith.constant 1 : index
    %1290 = memref.load %arg7[%c0_634, %c1_635] : memref<1x16xf32, #tpu.memory_space<smem>>
    %1291 = vector.broadcast %1290 : f32 to vector<2x128xf32>
    %1292 = arith.mulf %331, %1291 : vector<2x128xf32>
    %1293 = arith.addf %1289, %1292 : vector<2x128xf32>
    %c0_636 = arith.constant 0 : index
    %c2_637 = arith.constant 2 : index
    %1294 = memref.load %arg7[%c0_636, %c2_637] : memref<1x16xf32, #tpu.memory_space<smem>>
    %1295 = vector.broadcast %1294 : f32 to vector<2x128xf32>
    %1296 = arith.mulf %399, %1295 : vector<2x128xf32>
    %1297 = arith.addf %1293, %1296 : vector<2x128xf32>
    %c0_638 = arith.constant 0 : index
    %c3_639 = arith.constant 3 : index
    %1298 = memref.load %arg7[%c0_638, %c3_639] : memref<1x16xf32, #tpu.memory_space<smem>>
    %1299 = vector.broadcast %1298 : f32 to vector<2x128xf32>
    %1300 = arith.mulf %467, %1299 : vector<2x128xf32>
    %1301 = arith.addf %1297, %1300 : vector<2x128xf32>
    %c0_640 = arith.constant 0 : index
    %c4_641 = arith.constant 4 : index
    %1302 = memref.load %arg7[%c0_640, %c4_641] : memref<1x16xf32, #tpu.memory_space<smem>>
    %1303 = vector.broadcast %1302 : f32 to vector<2x128xf32>
    %1304 = arith.mulf %535, %1303 : vector<2x128xf32>
    %1305 = arith.addf %1301, %1304 : vector<2x128xf32>
    %c0_642 = arith.constant 0 : index
    %c5_643 = arith.constant 5 : index
    %1306 = memref.load %arg7[%c0_642, %c5_643] : memref<1x16xf32, #tpu.memory_space<smem>>
    %1307 = vector.broadcast %1306 : f32 to vector<2x128xf32>
    %1308 = arith.mulf %603, %1307 : vector<2x128xf32>
    %1309 = arith.addf %1305, %1308 : vector<2x128xf32>
    %c0_644 = arith.constant 0 : index
    %c6_645 = arith.constant 6 : index
    %1310 = memref.load %arg7[%c0_644, %c6_645] : memref<1x16xf32, #tpu.memory_space<smem>>
    %1311 = vector.broadcast %1310 : f32 to vector<2x128xf32>
    %1312 = arith.mulf %671, %1311 : vector<2x128xf32>
    %1313 = arith.addf %1309, %1312 : vector<2x128xf32>
    %c0_646 = arith.constant 0 : index
    %c7_647 = arith.constant 7 : index
    %1314 = memref.load %arg7[%c0_646, %c7_647] : memref<1x16xf32, #tpu.memory_space<smem>>
    %1315 = vector.broadcast %1314 : f32 to vector<2x128xf32>
    %1316 = arith.mulf %739, %1315 : vector<2x128xf32>
    %1317 = arith.addf %1313, %1316 : vector<2x128xf32>
    %c0_648 = arith.constant 0 : index
    %c8_649 = arith.constant 8 : index
    %1318 = memref.load %arg7[%c0_648, %c8_649] : memref<1x16xf32, #tpu.memory_space<smem>>
    %1319 = vector.broadcast %1318 : f32 to vector<2x128xf32>
    %1320 = arith.mulf %807, %1319 : vector<2x128xf32>
    %1321 = arith.addf %1317, %1320 : vector<2x128xf32>
    %c0_650 = arith.constant 0 : index
    %c9_651 = arith.constant 9 : index
    %1322 = memref.load %arg7[%c0_650, %c9_651] : memref<1x16xf32, #tpu.memory_space<smem>>
    %1323 = vector.broadcast %1322 : f32 to vector<2x128xf32>
    %1324 = arith.mulf %875, %1323 : vector<2x128xf32>
    %1325 = arith.addf %1321, %1324 : vector<2x128xf32>
    %c0_652 = arith.constant 0 : index
    %c10_653 = arith.constant 10 : index
    %1326 = memref.load %arg7[%c0_652, %c10_653] : memref<1x16xf32, #tpu.memory_space<smem>>
    %1327 = vector.broadcast %1326 : f32 to vector<2x128xf32>
    %1328 = arith.mulf %943, %1327 : vector<2x128xf32>
    %1329 = arith.addf %1325, %1328 : vector<2x128xf32>
    %c0_654 = arith.constant 0 : index
    %c11_655 = arith.constant 11 : index
    %1330 = memref.load %arg7[%c0_654, %c11_655] : memref<1x16xf32, #tpu.memory_space<smem>>
    %1331 = vector.broadcast %1330 : f32 to vector<2x128xf32>
    %1332 = arith.mulf %1011, %1331 : vector<2x128xf32>
    %1333 = arith.addf %1329, %1332 : vector<2x128xf32>
    %c0_656 = arith.constant 0 : index
    %c12_657 = arith.constant 12 : index
    %1334 = memref.load %arg7[%c0_656, %c12_657] : memref<1x16xf32, #tpu.memory_space<smem>>
    %1335 = vector.broadcast %1334 : f32 to vector<2x128xf32>
    %1336 = arith.mulf %1079, %1335 : vector<2x128xf32>
    %1337 = arith.addf %1333, %1336 : vector<2x128xf32>
    %c0_658 = arith.constant 0 : index
    %c13_659 = arith.constant 13 : index
    %1338 = memref.load %arg7[%c0_658, %c13_659] : memref<1x16xf32, #tpu.memory_space<smem>>
    %1339 = vector.broadcast %1338 : f32 to vector<2x128xf32>
    %1340 = arith.mulf %1147, %1339 : vector<2x128xf32>
    %1341 = arith.addf %1337, %1340 : vector<2x128xf32>
    %c0_660 = arith.constant 0 : index
    %c14_661 = arith.constant 14 : index
    %1342 = memref.load %arg7[%c0_660, %c14_661] : memref<1x16xf32, #tpu.memory_space<smem>>
    %1343 = vector.broadcast %1342 : f32 to vector<2x128xf32>
    %1344 = arith.mulf %1215, %1343 : vector<2x128xf32>
    %1345 = arith.addf %1341, %1344 : vector<2x128xf32>
    %c0_662 = arith.constant 0 : index
    %c15_663 = arith.constant 15 : index
    %1346 = memref.load %arg7[%c0_662, %c15_663] : memref<1x16xf32, #tpu.memory_space<smem>>
    %1347 = vector.broadcast %1346 : f32 to vector<2x128xf32>
    %1348 = arith.mulf %1283, %1347 : vector<2x128xf32>
    %1349 = arith.addf %1345, %1348 : vector<2x128xf32>
    %c0_664 = arith.constant 0 : index
    %c0_665 = arith.constant 0 : index
    %c0_666 = arith.constant 0 : index
    %c0_667 = arith.constant 0 : index
    %1350 = vector.load %arg9[%c0_664, %c0_665, %c0_666, %c0_667] : memref<1x1x2x128xf32, #tpu.memory_space<vmem>>, vector<1x1x2x128xf32>
    %1351 = vector.shape_cast %1350 : vector<1x1x2x128xf32> to vector<2x128xf32>
    %1352 = vector.shape_cast %1349 : vector<2x128xf32> to vector<1x1x2x128xf32>
    tpu.vector_store %arg9[%c0_664, %c0_665, %c0_666, %c0_667], %1352 {strides = array<i32>} : memref<1x1x2x128xf32, #tpu.memory_space<vmem>>, vector<1x1x2x128xf32>,
    return
  }
  func.func @transform_0(%arg0: i32, %arg1: i32) -> (i32, i32, i32, i32) {
    %c0_i32 = arith.constant 0 : i32
    %c0_i32_0 = arith.constant 0 : i32
    %c0_i32_1 = arith.constant 0 : i32
    return %arg0, %c0_i32, %arg1, %c0_i32_0 : i32, i32, i32, i32
  }
  func.func @transform_1(%arg0: i32, %arg1: i32) -> (i32, i32) {
    %c0_i32 = arith.constant 0 : i32
    %c0_i32_0 = arith.constant 0 : i32
    %c0_i32_1 = arith.constant 0 : i32
    return %c0_i32, %c0_i32_0 : i32, i32
  }
  func.func @transform_2(%arg0: i32, %arg1: i32) -> i32 {
    %c0_i32 = arith.constant 0 : i32
    %c0_i32_0 = arith.constant 0 : i32
    return %c0_i32 : i32
  }
  func.func @transform_3(%arg0: i32, %arg1: i32) -> (i32, i32) {
    %c0_i32 = arith.constant 0 : i32
    %c0_i32_0 = arith.constant 0 : i32
    %c0_i32_1 = arith.constant 0 : i32
    return %c0_i32, %c0_i32_0 : i32, i32
  }
  func.func @transform_4(%arg0: i32, %arg1: i32) -> i32 {
    %c0_i32 = arith.constant 0 : i32
    %c0_i32_0 = arith.constant 0 : i32
    return %c0_i32 : i32
  }
  func.func @transform_5(%arg0: i32, %arg1: i32) -> (i32, i32) {
    %c0_i32 = arith.constant 0 : i32
    %c0_i32_0 = arith.constant 0 : i32
    %c0_i32_1 = arith.constant 0 : i32
    return %c0_i32, %c0_i32_0 : i32, i32
  }
  func.func @transform_6(%arg0: i32, %arg1: i32) -> i32 {
    %c0_i32 = arith.constant 0 : i32
    %c0_i32_0 = arith.constant 0 : i32
    return %c0_i32 : i32
  }
  func.func @transform_7(%arg0: i32, %arg1: i32) -> (i32, i32, i32, i32) {
    %c0_i32 = arith.constant 0 : i32
    %c0_i32_0 = arith.constant 0 : i32
    %c0_i32_1 = arith.constant 0 : i32
    return %arg0, %c0_i32, %arg1, %c0_i32_0 : i32, i32, i32, i32
  }
}

</mosaic_0001>

<bundles_post_ra>
// kernel: tpu_custom_call.1
= control target key start
LH: loop header
LB: loop body
LE: loop exit
PB: predicated region body
PF: predicated region fallthrough
CT: control target
= control target key end

     0   :  { %s4167_s0 = inlined_call_operand.hbm [shape: f32[2,2,2,128], index: 0, kind: input, shape index: {}]   ;;  %s4168_s1 = inlined_call_operand.vmem [shape: f32[16,2], index: 1, kind: input, shape index: {}]   ;;  %s4169_s2 = inlined_call_operand.vmem [shape: f32[16], index: 2, kind: input, shape index: {}]   ;;  %s4170_s3 = inlined_call_operand.vmem [shape: f32[16,16], index: 3, kind: input, shape index: {}]   ;;  %s4171_s4 = inlined_call_operand.vmem [shape: f32[16], index: 4, kind: input, shape index: {}]   ;;  %s4172_s5 = inlined_call_operand.vmem [shape: f32[1,16], index: 5, kind: input, shape index: {}]   ;;  %s4173_s6 = inlined_call_operand.<no memory space> [shape: f32[1], index: 6, kind: input, shape index: {}]   ;;  %s4174_s7 = inlined_call_operand.hbm [shape: f32[2,1,2,128], index: 7, kind: output, shape index: {}]  }
   0x1   :  { %4188 = sst [smem:[#allocation104_spill]] %s4167_s0 }
   0x2   :  { %4189 = sst [smem:[#allocation105_spill]] %s4168_s1 }
   0x3   :  { %4190 = sst [smem:[#allocation106_spill]] %s4169_s2 }
   0x4   :  { %4191 = sst [smem:[#allocation107_spill]] %s4170_s3 }
   0x5   :  { %4192 = sst [smem:[#allocation108_spill]] %s4171_s4 }
   0x6   :  { %4193 = sst [smem:[#allocation109_spill]] %s4172_s5 }
   0x7   :  { %4194 = sst [smem:[#allocation110_spill]] %s4174_s7 }
   0x8   :  { %12 = sst [smem:[#allocation2]] %s4173_s6 }
   0x9   :  { %13 = vsyncpa [#allocation4], 0 }
   0xa   :  { %15 = vsyncpa [#allocation4 + $0x1], 0 }
   0xb   :  { %16 = vsyncpa [#allocation6], 0 }
   0xc   :  { %17 = vsyncpa [#allocation9], 0 }
   0xd   :  { %18 = vsyncpa [#allocation12], 0 }
   0xe   :  { %19 = vsyncpa [#allocation5], 0 }
   0xf   :  { %21 = vsyncpa [#allocation5 + $0x1], 0  ;;  %s2578_s26 = smov 0   ;;  %s2580_s27 = smov 0  }
  0x10   :  { %s2582_s28 = smov 0   ;;  %s2584_s29 = smov 0  }
  0x11   :  { %s2586_s30 = smov 0   ;;  %s2588_s8 = smov 0  }
  0x12 LB: > { %4195 = sst [smem:[#allocation20_spill]] %s2504_s26  ;;  %s1851_s11 = sadd.s32 4294967295, %s2524_s8   ;;  %s2524_s8 = sphi %s2588_s8, %s27_s8   ;;  %s2520_s30 = sphi %s2586_s30, %s4509_s30   ;;  %s2516_s29 = sphi %s2584_s29, %s4508_s29   ;;  %s2512_s28 = sphi %s2582_s28, %s4507_s28   ;;  %s2508_s27 = sphi %s2580_s27, %s4506_s27   ;;  %s2504_s26 = sphi %s2578_s26, %s4505_s26  }
  0x13   : > { %4196 = sst [smem:[#allocation21_spill]] %s2508_s27  ;;  %p1853_p0 = scmp.ge.s32.totalorder %s2524_s8, 1 }
  0x14   : > { %4197 = sst [smem:[#allocation22_spill]] %s2512_s28  ;;  %p2615_p1 = scmp.eq.s32.totalorder %s1851_s11, 0 }
  0x15   : > { %4198 = sst [smem:[#allocation23_spill]] %s2516_s29  ;;  %p226_p2 = scmp.lt.s32.totalorder %s2524_s8, 3 }
  0x16   : > { %4199 = sst [smem:[#allocation24_spill]] %s2520_s30  ;;  %p1859_p4 = scmp.ge.s32.totalorder %s2524_s8, 2 }
  0x17   : > { %4200 = sst [smem:[#allocation25_spill]] %s2524_s8  ;;  %p2620_p3 = pnand %p1853_p0, %p226_p2 }
  0x18   : > { %s4201_s2 = sld [smem:[#allocation106_spill]]  ;;  %s2526_s21 = smov [#allocation8]  }
  0x19   : > { %s4204_s4 = sld [smem:[#allocation108_spill]]  ;;  %p2232_p5 = pneg %p2620_p3 }
  0x1a   : > { %s4205_s1 = sld [smem:[#allocation105_spill]]  ;;  %s2527_s22 = smov [#allocation11]  }
  0x1b   : > { %p2635_p6 = pnand %p2232_p5, %p2615_p1  ;;  %s4207_s3 = sld [smem:[#allocation107_spill]] }
  0x1c   : > { %s2528_s6 = smov [#allocation7]   ;;  %s2529_s9 = smov 128  }
  0x1d   : > { %s2530_s14 = smov 8   ;;  %s4208_s5 = sld [smem:[#allocation109_spill]] }
  0x1e   : > { %s250_s10 = sshll.u32 %s4201_s2, 4  ;;  %s2532_s18 = smov [#allocation13]   ;;  %s251_s10 = int_to_ptr.vmem [resolvable:$true] %s250_s10 }
  0x1f   : > { %s272_s16 = sshll.u32 %s4204_s4, 4  ;;  %p55_p8 = scmp.ne.s32.totalorder %s2512_s28, %s2508_s27  ;;  %s273_s16 = int_to_ptr.vmem [resolvable:$true] %s272_s16 }
  0x20   : > { %s237_s19 = sshll.u32 %s4205_s1, 4  ;;  %p56_p9 = scmp.eq.s32.totalorder %s2524_s8, 0  ;;  %s238_s19 = int_to_ptr.vmem [resolvable:$true] %s237_s19 }
  0x21   : > { %2238 = dma.vmem_to_smem (!%p2635_p6), %s251_s10, 16, %s2526_s21, [#allocation9]  }
  0x22   : > { %2244 = dma.vmem_to_smem (!%p2635_p6), %s273_s16, 16, %s2527_s22, [#allocation12]  }
  0x23   : > { %s259_s25 = sshll.u32 %s4207_s3, 4  ;;  %s2531_s10 = smov [#allocation10]   ;;  %s260_s25 = int_to_ptr.vmem [resolvable:$true] %s259_s25 }
  0x24   : > { %2235 = dma.vmem_to_smem (!%p2635_p6), %s238_s19, 256, %s2528_s6, [#allocation6], %s2529_s9, %s2529_s9, %s2530_s14  }
  0x25   : > { %2241 = dma.vmem_to_smem (!%p2635_p6), %s260_s25, 256, %s2531_s10, [#allocation9], %s2529_s9, %s2529_s9, %s2530_s14  }
  0x26   : > { %s282_s17 = sshll.u32 %s4208_s5, 4  ;;  %s1852_s21 = sadd.s32 4294967294, %s2524_s8   ;;  %s283_s17 = int_to_ptr.vmem [resolvable:$true] %s282_s17 }
  0x27   : > { %2247 = dma.vmem_to_smem (!%p2635_p6), %s283_s17, 16, %s2532_s18, [#allocation12]  }
  0x28   : > { %s39_s22 = sadd.s32 1, %s2520_s30  ;;  %s48_s19 = sadd.s32 1, %s2512_s28 }
  0x29   : > { %p41_p7 = scmp.ge.s32.totalorder %s39_s22, 2  ;;  %p61_p10 = scmp.ne.s32.totalorder %s2508_s27, %s2504_s26 }
  0x2a   : > { %p2665_p11 = por %p56_p9, %p55_p8  ;;  %p213_p13 = scmp.eq.s32.totalorder %s1851_s11, 1 }
  0x2b   : > { %s4511_s22 = smov (%p41_p7, %s39_s22), 0  ;;  %p2671_p12 = por %p2615_p1, %p61_p10 }
  0x2c   : > { %4209 = sst [smem:[#allocation26_spill]] %s4511_s22  ;;  %s43_s24 = ssub.s32 %s2520_s30, %s4511_s22 }
  0x2d   : > { %p46_p0 = scmp.eq.s32.totalorder %s43_s24, 0  ;;  %p219_p2 = scmp.eq.s32.totalorder %s1852_s21, 1 }
  0x2e   : > { %p2679_p5 = por %p213_p13, %p55_p8  ;;  %p2261_p6 = scmp.lt.s32.totalorder %s2524_s8, 2 }
  0x2f   : > { %s2685_s6 = scalar_select %p46_p0, %s2512_s28, %s48_s19  }
  0x30   : > { %s4212_s25 = scalar_select %p2679_p5, 1, 0 }
  0x31   : > { %4214 = sst [smem:[#allocation28_spill]] %s2685_s6  ;;  %p2687_p7 = por %p219_p2, %p61_p10 }
  0x32   : > { %4213 = sst [smem:[#allocation27_spill]] %s4212_s25  ;;  %s296_s14 = sand.u32 1, %s2512_s28  }
  0x33   : > { %s4215_s9 = scalar_select %p2687_p7, 1, 0 }
  0x34   : > { %s1860_s10 = sshll.u32 %s296_s14, 2  ;;  %s2207_s15 = sshll.u32 %s2520_s30, 2 }
  0x35   : > { %4216 = sst [smem:[#allocation29_spill]] %s4215_s9  ;;  %s300_s18 = scalar_lea.vmem [#allocation3], %s1860_s10 }
  0x36   : > { %s4217_s0 = sld [smem:[#allocation104_spill]]  ;;  %s309_s21 = sshll.u32 %s300_s18, 4  ;;  %s310_s21 = int_to_ptr.vmem [resolvable:$true] %s309_s21 }
  0x37   : > { %p2249_p8 = pnand %p2261_p6, %p2665_p11  ;;  %s297_s19 = scalar_lea.sflag [#allocation4], %s296_s14 }
  0x38   : > { %s2533_s1 = smov 32   ;;  %s2534_s2 = smov 2  }
  0x3a   : > { %321 = sbr.rel (%p2620_p3) target bundleno = 715 (0x2cb), region = 48 }
  0x3c   : > { %s306_s11 = scalar_lea.hbm %s4217_s0, %s2207_s15 }
  0x3d   : > { %s307_s24 = sshll.u32 %s306_s11, 4  ;;  %s308_s24 = int_to_ptr.hbm [resolvable:$true] %s307_s24 }
  0x3e   : > { %2251 = dma.hbm_to_vmem [thread:$0]  (!%p2249_p8), %s308_s24, 64, %s310_s21, %s297_s19, %s2533_s1, %s2533_s1, %s2534_s2  }
  0x3f   : > { %s2701_s3 = sand.u32 1, %s2508_s27  }
  0x40   : > { %4218 = sst [smem:[#allocation30_spill]] %s2701_s3  ;;  %s1864_s10 = sshll.u32 %s2701_s3, 2 }
  0x41   : > { %s324_s15 = scalar_lea.sflag [#allocation4], %s2701_s3  ;;  %s2705_s16 = scalar_lea.vmem [#allocation3], %s1864_s10 }
  0x42   : > { %2483 = dma.done.wait (%p2671_p12), %s324_s15, 64  }
  0x43   : > { %2485 = vsyncadd (%p2671_p12), %s324_s15, 4294967232 }
  0x44   : > { %2487 = dma.done.wait (%p2615_p1), [#allocation6], 256  }
  0x45   : > { %2489 = vsyncadd (%p2615_p1), [#allocation6], 4294967040 }
  0x46   : > { %2491 = dma.done.wait (%p2615_p1), [#allocation9], 272  }
  0x47   : > { %2493 = vsyncadd (%p2615_p1), [#allocation9], 4294967024 }
  0x48   : > { %2495 = dma.done.wait (%p2615_p1), [#allocation12], 32  }
  0x49   : > { %2497 = vsyncadd (%p2615_p1), [#allocation12], 4294967264 }
  0x4a   : > { %358 = sfence }
  0x4b   : > { %s2723_s1 = sld [smem:[#allocation7]]  ;;  %v2900_v0 = vld [vmem:[%s2705_s16] sm:$0x3]  ;;  %v2914_v4 = vld [vmem:[%s2705_s16 + $0x2] sm:$0x3] }
  0x4c   : > { %s2725_s2 = sld [smem:[#allocation8]] }
  0x4d   : > { %s2727_s13 = sld [smem:[#allocation7 + $0x1]] }
  0x4e   : > { %s2729_s23 = sld [smem:[#allocation7 + $0x80]] }
  0x4f   : > { %s2731_s20 = sld [smem:[#allocation8 + $0x1]] }
  0x50   : > { %s2733_s14 = sld [smem:[#allocation7 + $0x81]] }
  0x51   : > { %s2735_s17 = sld [smem:[#allocation7 + $0x100]]  ;;  %v389_v1 = vstv %s2723_s1 }
  0x52   : > { %s2737_s11 = sld [smem:[#allocation8 + $0x2]]  ;;  %v390_v2 = vmul.f32 %v389_v1, %v2900_v0  ;;  %v392_v5 = vstv %s2725_s2 }
  0x53   : > { %s2739_s18 = sld [smem:[#allocation7 + $0x101]]  ;;  %v395_v6 = vstv %s2727_s13 }
  0x54   : > { %s2741_s12 = sld [smem:[#allocation7 + $0x180]]  ;;  %v400_v3 = vstv %s2729_s23  ;;  %v393_v9 = vadd.f32 %v392_v5, %v390_v2  ;;  %v396_v10 = vmul.f32 %v2914_v4, %v395_v6 }
  0x55   : > { %s2743_s21 = sld [smem:[#allocation8 + $0x3]]  ;;  %v401_v7 = vmul.f32 %v400_v3, %v2900_v0  ;;  %v403_v11 = vstv %s2731_s20 }
  0x56   : > { %s2745_s24 = sld [smem:[#allocation7 + $0x181]]  ;;  %v406_v12 = vstv %s2733_s14  ;;  %v397_v18 = vadd.f32 %v396_v10, %v393_v9 }
  0x57   : > { %s2747_s19 = sld [smem:[#allocation7 + $0x200]]  ;;  %v411_v8 = vstv %s2735_s17  ;;  %v404_v14 = vadd.f32 %v403_v11, %v401_v7  ;;  %v407_v15 = vmul.f32 %v2914_v4, %v406_v12 }
  0x58   : > { %s2749_s10 = sld [smem:[#allocation8 + $0x4]]  ;;  %v412_v13 = vmul.f32 %v411_v8, %v2900_v0  ;;  %v414_v16 = vstv %s2737_s11  ;;  %v2952_v24 = vmax.f32 %v397_v18, 0.0 }
  0x59   : > { %s2751_s15 = sld [smem:[#allocation7 + $0x201]]  ;;  %v417_v17 = vstv %s2739_s18  ;;  %v408_v22 = vadd.f32 %v407_v15, %v404_v14 }
  0x5a   : > { %s2753_s0 = sld [smem:[#allocation7 + $0x280]]  ;;  %v422_v19 = vstv %s2741_s12  ;;  %v415_v20 = vadd.f32 %v414_v16, %v412_v13  ;;  %v418_v21 = vmul.f32 %v2914_v4, %v417_v17 }
  0x5b   : > { %s2755_s4 = sld [smem:[#allocation8 + $0x5]]  ;;  %v423_v23 = vmul.f32 %v422_v19, %v2900_v0  ;;  %v425_v25 = vstv %s2743_s21  ;;  %v2964_v30 = vmax.f32 %v408_v22, 0.0 }
  0x5c   : > { %s2757_s5 = sld [smem:[#allocation7 + $0x281]]  ;;  %v428_v26 = vstv %s2745_s24  ;;  %v419_v29 = vadd.f32 %v418_v21, %v415_v20 }
  0x5d   : > { %s2759_s22 = sld [smem:[#allocation7 + $0x300]]  ;;  %v433_v27 = vstv %s2747_s19  ;;  %v426_v31 = vadd.f32 %v425_v25, %v423_v23  ;;  %v429_v32 = vmul.f32 %v2914_v4, %v428_v26 }
  0x5e   : > { %s2761_s30 = sld [smem:[#allocation8 + $0x6]]  ;;  %v434_v33 = vmul.f32 %v433_v27, %v2900_v0  ;;  %v436_v34 = vstv %s2749_s10  ;;  %v2981_v41 = vmax.f32 %v419_v29, 0.0 }
  0x5f   : > { %s2763_s6 = sld [smem:[#allocation7 + $0x301]]  ;;  %v439_v35 = vstv %s2751_s15  ;;  %v430_v43 = vadd.f32 %v429_v32, %v426_v31 }
  0x60   : > { %s2765_s28 = sld [smem:[#allocation7 + $0x380]]  ;;  %v444_v36 = vstv %s2753_s0  ;;  %v437_v44 = vadd.f32 %v436_v34, %v434_v33  ;;  %v440_v45 = vmul.f32 %v2914_v4, %v439_v35 }
  0x61   : > { %4219 = sst [smem:[#allocation31_spill]] %s2755_s4  ;;  %v445_v46 = vmul.f32 %v444_v36, %v2900_v0  ;;  %v3006_v58 = vmax.f32 %v430_v43, 0.0 }
  0x62   : > { %4220 = sst [smem:[#allocation32_spill]] %s2757_s5  ;;  %v441_v59 = vadd.f32 %v440_v45, %v437_v44 }
  0x63   : > { %s2767_s27 = sld [smem:[#allocation8 + $0x7]]  ;;  %v455_v38 = vstv %s2759_s22 }
  0x64   : > { %4221 = sst [smem:[#allocation33_spill]] %s2761_s30  ;;  %v456_v48 = vmul.f32 %v455_v38, %v2900_v0  ;;  %v3027_v11 = vmax.f32 %v441_v59, 0.0 }
  0x65   : > { %4222 = sst [smem:[#allocation34_spill]] %s2763_s6 }
  0x66   : > { %4223 = sst [smem:[#allocation35_spill]] %s2765_s28 }
  0x67   : > { %s2769_s8 = sld [smem:[#allocation7 + $0x381]] }
  0x68   : > { %s2771_s9 = sld [smem:[#allocation7 + $0x400]] }
  0x69   : > { %4224 = sst [smem:[#allocation36_spill]] %s2767_s27 }
  0x6a   : > { %s2773_s26 = sld [smem:[#allocation8 + $0x8]] }
  0x6b   : > { %s2775_s25 = sld [smem:[#allocation7 + $0x401]] }
  0x6c   : > { %s2777_s7 = sld [smem:[#allocation7 + $0x480]] }
  0x6d   : > { %4225 = sst [smem:[#allocation37_spill]] %s2769_s8 }
  0x6e   : > { %4226 = sst [smem:[#allocation38_spill]] %s2771_s9 }
  0x6f   : > { %s2779_s29 = sld [smem:[#allocation8 + $0x9]] }
  0x70   : > { %4227 = sst [smem:[#allocation39_spill]] %s2773_s26 }
  0x71   : > { %4228 = sst [smem:[#allocation40_spill]] %s2775_s25 }
  0x72   : > { %4229 = sst [smem:[#allocation41_spill]] %s2777_s7 }
  0x73   : > { %s2781_s3 = sld [smem:[#allocation7 + $0x481]] }
  0x74   : > { %s2783_s30 = sld [smem:[#allocation7 + $0x500]] }
  0x75   : > { %4230 = sst [smem:[#allocation42_spill]] %s2779_s29 }
  0x76   : > { %s2785_s6 = sld [smem:[#allocation8 + $0xa]] }
  0x77   : > { %s2787_s5 = sld [smem:[#allocation7 + $0x501]] }
  0x78   : > { %s2789_s27 = sld [smem:[#allocation7 + $0x580]] }
  0x79   : > { %4231 = sst [smem:[#allocation43_spill]] %s2781_s3 }
  0x7a   : > { %4232 = sst [smem:[#allocation44_spill]] %s2783_s30 }
  0x7b   : > { %s2791_s8 = sld [smem:[#allocation8 + $0xb]] }
  0x7c   : > { %4233 = sst [smem:[#allocation45_spill]] %s2785_s6 }
  0x7d   : > { %4234 = sst [smem:[#allocation46_spill]] %s2787_s5 }
  0x7e   : > { %4235 = sst [smem:[#allocation47_spill]] %s2789_s27 }
  0x7f   : > { %s2793_s9 = sld [smem:[#allocation7 + $0x581]] }
  0x80   : > { %s2795_s26 = sld [smem:[#allocation7 + $0x600]] }
  0x81   : > { %4236 = sst [smem:[#allocation48_spill]] %s2791_s8 }
  0x82   : > { %s2797_s25 = sld [smem:[#allocation8 + $0xc]] }
  0x83   : > { %s2799_s7 = sld [smem:[#allocation7 + $0x601]] }
  0x84   : > { %s2801_s29 = sld [smem:[#allocation7 + $0x680]] }
  0x85   : > { %4237 = sst [smem:[#allocation49_spill]] %s2793_s9 }
  0x86   : > { %4238 = sst [smem:[#allocation50_spill]] %s2795_s26 }
  0x87   : > { %s2803_s3 = sld [smem:[#allocation8 + $0xd]] }
  0x88   : > { %4239 = sst [smem:[#allocation51_spill]] %s2797_s25 }
  0x89   : > { %4240 = sst [smem:[#allocation52_spill]] %s2799_s7 }
  0x8a   : > { %4241 = sst [smem:[#allocation53_spill]] %s2801_s29 }
  0x8b   : > { %s2805_s30 = sld [smem:[#allocation7 + $0x681]] }
  0x8c   : > { %s2807_s6 = sld [smem:[#allocation7 + $0x700]] }
  0x8d   : > { %4242 = sst [smem:[#allocation54_spill]] %s2803_s3 }
  0x8e   : > { %s2809_s5 = sld [smem:[#allocation8 + $0xe]] }
  0x8f   : > { %s2811_s27 = sld [smem:[#allocation7 + $0x701]] }
  0x90   : > { %s2813_s8 = sld [smem:[#allocation7 + $0x780]] }
  0x91   : > { %4243 = sst [smem:[#allocation55_spill]] %s2805_s30 }
  0x92   : > { %4244 = sst [smem:[#allocation56_spill]] %s2807_s6 }
  0x93   : > { %s2815_s9 = sld [smem:[#allocation8 + $0xf]] }
  0x94   : > { %4245 = sst [smem:[#allocation57_spill]] %s2809_s5 }
  0x95   : > { %4246 = sst [smem:[#allocation58_spill]] %s2811_s27 }
  0x96   : > { %4247 = sst [smem:[#allocation59_spill]] %s2813_s8 }
  0x97   : > { %s2817_s26 = sld [smem:[#allocation7 + $0x781]] }
  0x98   : > { %s2819_s25 = sld [smem:[#allocation10]] }
  0x99   : > { %4248 = sst [smem:[#allocation60_spill]] %s2815_s9 }
  0x9a   : > { %s2821_s7 = sld [smem:[#allocation11]] }
  0x9b   : > { %s2823_s29 = sld [smem:[#allocation10 + $0x1]] }
  0x9c   : > { %s2825_s3 = sld [smem:[#allocation10 + $0x2]] }
  0x9d   : > { %4249 = sst [smem:[#allocation61_spill]] %s2817_s26 }
  0x9e   : > { %s2827_s30 = sld [smem:[#allocation10 + $0x3]]  ;;  %v565_v28 = vstv %s2819_s25 }
  0x9f   : > { %s2829_s6 = sld [smem:[#allocation10 + $0x4]]  ;;  %v566_v37 = vmul.f32 %v565_v28, %v2952_v24 }
  0xa0   : > { %s2831_s5 = sld [smem:[#allocation10 + $0x5]]  ;;  %v568_v39 = vstv %s2821_s7 }
  0xa1   : > { %4250 = sst [smem:[#allocation62_spill]] %s2823_s29  ;;  %v569_v49 = vadd.f32 %v568_v39, %v566_v37 }
  0xa2   : > { %4251 = sst [smem:[#allocation63_spill]] %s2825_s3 }
  0xa3   : > { %s2833_s27 = sld [smem:[#allocation10 + $0x6]] }
  0xa4   : > { %4252 = sst [smem:[#allocation64_spill]] %s2827_s30 }
  0xa5   : > { %4253 = sst [smem:[#allocation65_spill]] %s2829_s6 }
  0xa6   : > { %4254 = sst [smem:[#allocation66_spill]] %s2831_s5 }
  0xa7   : > { %s2835_s8 = sld [smem:[#allocation10 + $0x7]] }
  0xa8   : > { %s2837_s9 = sld [smem:[#allocation10 + $0x8]] }
  0xa9   : > { %4255 = sst [smem:[#allocation67_spill]] %s2833_s27 }
  0xaa   : > { %s2839_s26 = sld [smem:[#allocation10 + $0x9]] }
  0xab   : > { %s2841_s4 = sld [smem:[#allocation10 + $0xa]] }
  0xac   : > { %s2843_s28 = sld [smem:[#allocation10 + $0xb]] }
  0xad   : > { %4256 = sst [smem:[#allocation68_spill]] %s2835_s8 }
  0xae   : > { %4257 = sst [smem:[#allocation69_spill]] %s2837_s9 }
  0xaf   : > { %s2845_s29 = sld [smem:[#allocation10 + $0xc]] }
  0xb0   : > { %4258 = sst [smem:[#allocation70_spill]] %s2839_s26 }
  0xb1   : > { %4259 = sst [smem:[#allocation71_spill]] %s2841_s4 }
  0xb2   : > { %4260 = sst [smem:[#allocation72_spill]] %s2843_s28 }
  0xb3   : > { %s2847_s3 = sld [smem:[#allocation10 + $0xd]] }
  0xb4   : > { %s2849_s30 = sld [smem:[#allocation10 + $0xe]] }
  0xb5   : > { %4261 = sst [smem:[#allocation73_spill]] %s2845_s29 }
  0xb6   : > { %s2851_s6 = sld [smem:[#allocation10 + $0xf]] }
  0xb7   : > { %s2853_s5 = sld [smem:[#allocation10 + $0x80]] }
  0xb8   : > { %s2855_s27 = sld [smem:[#allocation11 + $0x1]] }
  0xb9   : > { %4262 = sst [smem:[#allocation74_spill]] %s2847_s3 }
  0xba   : > { %4263 = sst [smem:[#allocation75_spill]] %s2849_s30 }
  0xbb   : > { %s2857_s8 = sld [smem:[#allocation10 + $0x81]] }
  0xbc   : > { %4264 = sst [smem:[#allocation76_spill]] %s2851_s6 }
  0xbd   : > { %s2859_s9 = sld [smem:[#allocation10 + $0x82]]  ;;  %v632_v21 = vstv %s2853_s5 }
  0xbe   : > { %4265 = sst [smem:[#allocation77_spill]] %s2855_s27  ;;  %v633_v35 = vmul.f32 %v632_v21, %v2952_v24 }
  0xbf   : > { %s2861_s26 = sld [smem:[#allocation10 + $0x83]] }
  0xc0   : > { %s2863_s4 = sld [smem:[#allocation10 + $0x84]] }
  0xc1   : > { %4266 = sst [smem:[#allocation78_spill]] %s2857_s8 }
  0xc2   : > { %s2865_s28 = sld [smem:[#allocation10 + $0x85]] }
  0xc3   : > { %4267 = sst [smem:[#allocation79_spill]] %s2859_s9 }
  0xc4   : > { %s2867_s29 = sld [smem:[#allocation10 + $0x86]] }
  0xc5   : > { %s2869_s30 = sld [smem:[#allocation10 + $0x87]] }
  0xc6   : > { %4268 = sst [smem:[#allocation80_spill]] %s2863_s4 }
  0xc7   : > { %s2871_s6 = sld [smem:[#allocation10 + $0x88]] }
  0xc8   : > { %4269 = sst [smem:[#allocation81_spill]] %s2865_s28 }
  0xc9   : > { %s2873_s3 = sld [smem:[#allocation10 + $0x89]] }
  0xca   : > { %4270 = sst [smem:[#allocation82_spill]] %s2867_s29 }
  0xcb   : > { %4271 = sst [smem:[#allocation83_spill]] %s2869_s30 }
  0xcc   : > { %s2875_s27 = sld [smem:[#allocation10 + $0x8a]] }
  0xcd   : > { %4272 = sst [smem:[#allocation84_spill]] %s2871_s6 }
  0xce   : > { %s2877_s8 = sld [smem:[#allocation10 + $0x8b]] }
  0xcf   : > { %4273 = sst [smem:[#allocation85_spill]] %s2873_s3 }
  0xd0   : > { %s2879_s9 = sld [smem:[#allocation10 + $0x8c]] }
  0xd1   : > { %s2881_s4 = sld [smem:[#allocation10 + $0x8d]] }
  0xd2   : > { %4274 = sst [smem:[#allocation86_spill]] %s2875_s27 }
  0xd3   : > { %s2883_s28 = sld [smem:[#allocation10 + $0x8e]] }
  0xd4   : > { %4275 = sst [smem:[#allocation87_spill]] %s2877_s8 }
  0xd5   : > { %s2885_s29 = sld [smem:[#allocation10 + $0x8f]] }
  0xd6   : > { %4276 = sst [smem:[#allocation88_spill]] %s2879_s9 }
  0xd7   : > { %4277 = sst [smem:[#allocation89_spill]] %s2881_s4 }
  0xd8   : > { %s2887_s30 = sld [smem:[#allocation10 + $0x100]] }
  0xd9   : > { %4278 = sst [smem:[#allocation90_spill]] %s2883_s28 }
  0xda   : > { %s2889_s6 = sld [smem:[#allocation11 + $0x2]] }
  0xdb   : > { %4279 = sst [smem:[#allocation91_spill]] %s2885_s29 }
  0xdc   : > { %s2891_s3 = sld [smem:[#allocation10 + $0x101]] }
  0xdd   : > { %s2893_s27 = sld [smem:[#allocation10 + $0x102]] }
  0xde   : > { %s2895_s8 = sld [smem:[#allocation10 + $0x103]] }
  0xdf   : > { %s2897_s9 = sld [smem:[#allocation10 + $0x104]] }
  0xe0   : > { %s2903_s28 = sld [smem:[#allocation10 + $0x105]] }
  0xe1   : > { %s2905_s29 = sld [smem:[#allocation10 + $0x106]] }
  0xe2   : > { %s2907_s4 = sld [smem:[#allocation10 + $0x107]] }
  0xe3   : > { %4280 = sst [smem:[#allocation92_spill]] %s2893_s27 }
  0xe4   : > { %s2911_s27 = sld [smem:[#allocation10 + $0x108]] }
  0xe5   : > { %4281 = sst [smem:[#allocation93_spill]] %s2897_s9 }
  0xe6   : > { %s2918_s9 = sld [smem:[#allocation10 + $0x109]] }
  0xe7   : > { %4282 = sst [smem:[#allocation94_spill]] %s2905_s29 }
  0xe8   : > { %4283 = sst [smem:[#allocation95_spill]] %s2907_s4 }
  0xe9   : > { %s2920_s1 = sld [smem:[#allocation10 + $0x10a]] }
  0xea   : > { %4284 = sst [smem:[#allocation96_spill]] %s2911_s27 }
  0xeb   : > { %s2924_s4 = sld [smem:[#allocation10 + $0x10b]] }
  0xec   : > { %4285 = sst [smem:[#allocation97_spill]] %s2918_s9 }
  0xed   : > { %s2929_s16 = sld [smem:[#allocation10 + $0x10c]] }
  0xee   : > { %s2931_s2 = sld [smem:[#allocation10 + $0x10d]] }
  0xef   : > { %4286 = sst [smem:[#allocation98_spill]] %s2920_s1 }
  0xf0   : > { %s2934_s13 = sld [smem:[#allocation10 + $0x10e]] }
  0xf1   : > { %4287 = sst [smem:[#allocation99_spill]] %s2924_s4 }
  0xf2   : > { %s2939_s23 = sld [smem:[#allocation10 + $0x10f]] }
  0xf3   : > { %4288 = sst [smem:[#allocation100_spill]] %s2929_s16 }
  0xf4   : > { %4289 = sst [smem:[#allocation101_spill]] %s2931_s2 }
  0xf5   : > { %s2942_s20 = sld [smem:[#allocation10 + $0x180]] }
  0xf6   : > { %4290 = sst [smem:[#allocation102_spill]] %s2934_s13 }
  0xf7   : > { %s2944_s14 = sld [smem:[#allocation11 + $0x3]] }
  0xf8   : > { %4291 = sst [smem:[#allocation103_spill]] %s2939_s23 }
  0xf9   : > { %s2947_s17 = sld [smem:[#allocation10 + $0x181]] }
  0xfa   : > { %s2950_s11 = sld [smem:[#allocation10 + $0x182]] }
  0xfb   : > { %s2957_s18 = sld [smem:[#allocation10 + $0x183]] }
  0xfc   : > { %s4292_s12 = sld [smem:[#allocation62_spill]] }
  0xfd   : > { %s2960_s23 = sld [smem:[#allocation10 + $0x184]] }
  0xfe   : > { %s2962_s13 = sld [smem:[#allocation10 + $0x185]] }
  0xff   : > { %s4293_s2 = sld [smem:[#allocation35_spill]] }
 0x100   : > { %s2968_s21 = sld [smem:[#allocation10 + $0x186]] }
 0x101   : > { %s4295_s24 = sld [smem:[#allocation31_spill]] }
 0x102   : > { %s2974_s25 = sld [smem:[#allocation10 + $0x187]]  ;;  %v571_v40 = vstv %s4292_s12 }
 0x103   : > { %s4297_s19 = sld [smem:[#allocation32_spill]]  ;;  %v572_v50 = vmul.f32 %v571_v40, %v2964_v30 }
 0x104   : > { %s4298_s16 = sld [smem:[#allocation33_spill]] }
 0x105   : > { %s2979_s4 = sld [smem:[#allocation10 + $0x188]]  ;;  %v466_v42 = vstv %s4293_s2  ;;  %v573_v1 = vadd.f32 %v572_v50, %v569_v49 }
 0x106   : > { %4294 = sst [smem:[#allocation62_spill]] %s2968_s21  ;;  %v467_v53 = vmul.f32 %v466_v42, %v2900_v0 }
 0x107   : > { %s4300_s1 = sld [smem:[#allocation63_spill]]  ;;  %v447_v47 = vstv %s4295_s24 }
 0x108   : > { %4296 = sst [smem:[#allocation35_spill]] %s2974_s25  ;;  %v448_v60 = vadd.f32 %v447_v47, %v445_v46 }
 0x109   : > { %s2984_s9 = sld [smem:[#allocation10 + $0x189]]  ;;  %v450_v51 = vstv %s4297_s19 }
 0x10a   : > { %s4302_s10 = sld [smem:[#allocation34_spill]]  ;;  %v458_v52 = vstv %s4298_s16  ;;  %v451_v62 = vmul.f32 %v2914_v4, %v450_v51 }
 0x10b   : > { %4299 = sst [smem:[#allocation31_spill]] %s2979_s4  ;;  %v459_v63 = vadd.f32 %v458_v52, %v456_v48 }
 0x10c   : > { %s4303_s0 = sld [smem:[#allocation36_spill]]  ;;  %v452_v12 = vadd.f32 %v451_v62, %v448_v60 }
 0x10d   : > { %s4304_s15 = sld [smem:[#allocation37_spill]]  ;;  %v575_v54 = vstv %s4300_s1 }
 0x10e   : > { %s2988_s7 = sld [smem:[#allocation10 + $0x18a]]  ;;  %v576_v2 = vmul.f32 %v575_v54, %v2981_v41  ;;  %v3042_v22 = vmax.f32 %v452_v12, 0.0 }
 0x10f   : > { %4301 = sst [smem:[#allocation32_spill]] %s2984_s9 }
 0x110   : > { %s4306_s22 = sld [smem:[#allocation38_spill]]  ;;  %v461_v55 = vstv %s4302_s10  ;;  %v577_v13 = vadd.f32 %v576_v2, %v573_v1 }
 0x111   : > { %s2993_s2 = sld [smem:[#allocation10 + $0x18b]]  ;;  %v462_v3 = vmul.f32 %v2914_v4, %v461_v55 }
 0x112   : > { %s2999_s12 = sld [smem:[#allocation10 + $0x18c]]  ;;  %v469_v56 = vstv %s4303_s0 }
 0x113   : > { %s4309_s9 = sld [smem:[#allocation64_spill]]  ;;  %v472_v57 = vstv %s4304_s15  ;;  %v470_v5 = vadd.f32 %v469_v56, %v467_v53  ;;  %v463_v15 = vadd.f32 %v462_v3, %v459_v63 }
 0x114   : > { %4305 = sst [smem:[#allocation33_spill]] %s2988_s7  ;;  %v473_v6 = vmul.f32 %v2914_v4, %v472_v57 }
 0x115   : > { %s3004_s24 = sld [smem:[#allocation10 + $0x18d]]  ;;  %v3048_v27 = vmax.f32 %v463_v15, 0.0 }
 0x116   : > { %s4311_s7 = sld [smem:[#allocation39_spill]]  ;;  %v477_v61 = vstv %s4306_s22  ;;  %v474_v16 = vadd.f32 %v473_v6, %v470_v5 }
 0x117   : > { %4307 = sst [smem:[#allocation63_spill]] %s2993_s2  ;;  %v478_v8 = vmul.f32 %v477_v61, %v2900_v0 }
 0x118   : > { %4308 = sst [smem:[#allocation34_spill]] %s2999_s12  ;;  %v3050_v28 = vmax.f32 %v474_v16, 0.0 }
 0x119   : > { %s4312_s4 = sld [smem:[#allocation40_spill]]  ;;  %v579_v7 = vstv %s4309_s9 }
 0x11a   : > { %s3009_s19 = sld [smem:[#allocation10 + $0x18e]]  ;;  %v580_v14 = vmul.f32 %v579_v7, %v3006_v58 }
 0x11b   : > { %4310 = sst [smem:[#allocation36_spill]] %s3004_s24 }
 0x11c   : > { %s3013_s1 = sld [smem:[#allocation10 + $0x18f]]  ;;  %v480_v9 = vstv %s4311_s7  ;;  %v581_v25 = vadd.f32 %v580_v14, %v577_v13 }
 0x11d   : > { %s4315_s16 = sld [smem:[#allocation65_spill]]  ;;  %v481_v18 = vadd.f32 %v480_v9, %v478_v8  ;;  %v646_v9 = vstv %s2861_s26 }
 0x11e   : > { %s3018_s10 = sld [smem:[#allocation10 + $0x200]] }
 0x11f   : > { %s4316_s0 = sld [smem:[#allocation41_spill]]  ;;  %v483_v10 = vstv %s4312_s4 }
 0x120   : > { %4313 = sst [smem:[#allocation37_spill]] %s3009_s19  ;;  %v484_v19 = vmul.f32 %v2914_v4, %v483_v10 }
 0x121   : > { %s3021_s15 = sld [smem:[#allocation11 + $0x4]] }
 0x122   : > { %4314 = sst [smem:[#allocation38_spill]] %s3013_s1  ;;  %v485_v32 = vadd.f32 %v484_v19, %v481_v18 }
 0x123   : > { %s3025_s22 = sld [smem:[#allocation10 + $0x201]]  ;;  %v583_v17 = vstv %s4315_s16 }
 0x124   : > { %s4317_s1 = sld [smem:[#allocation44_spill]]  ;;  %v584_v26 = vmul.f32 %v583_v17, %v3027_v11  ;;  %v3105_v10 = vmax.f32 %v485_v32, 0.0 }
 0x125   : > { %s3030_s9 = sld [smem:[#allocation10 + $0x202]]  ;;  %v488_v20 = vstv %s4316_s0 }
 0x126   : > { %s4319_s19 = sld [smem:[#allocation66_spill]]  ;;  %v489_v29 = vmul.f32 %v488_v20, %v2900_v0  ;;  %v585_v43 = vadd.f32 %v584_v26, %v581_v25 }
 0x127   : > { %s3033_s24 = sld [smem:[#allocation10 + $0x203]] }
 0x128   : > { %s4321_s4 = sld [smem:[#allocation42_spill]] }
 0x129   : > { %s4322_s7 = sld [smem:[#allocation47_spill]] }
 0x12a   : > { %s3037_s12 = sld [smem:[#allocation10 + $0x204]]  ;;  %v499_v23 = vstv %s4317_s1 }
 0x12b   : > { %4318 = sst [smem:[#allocation64_spill]] %s3030_s9  ;;  %v500_v37 = vmul.f32 %v499_v23, %v2900_v0  ;;  %v647_v23 = vmul.f32 %v646_v9, %v3006_v58 }
 0x12c   : > { %s3040_s2 = sld [smem:[#allocation10 + $0x205]]  ;;  %v587_v31 = vstv %s4319_s19 }
 0x12d   : > { %4320 = sst [smem:[#allocation39_spill]] %s3033_s24  ;;  %v588_v44 = vmul.f32 %v587_v31, %v3042_v22 }
 0x12e   : > { %s4325_s25 = sld [smem:[#allocation43_spill]]  ;;  %v491_v33 = vstv %s4321_s4 }
 0x12f   : > { %s4326_s27 = sld [smem:[#allocation77_spill]]  ;;  %v510_v34 = vstv %s4322_s7  ;;  %v492_v45 = vadd.f32 %v491_v33, %v489_v29  ;;  %v589_v60 = vadd.f32 %v588_v44, %v585_v43 }
 0x130   : > { %4323 = sst [smem:[#allocation40_spill]] %s3037_s12  ;;  %v511_v47 = vmul.f32 %v510_v34, %v2900_v0 }
 0x131   : > { %s4327_s16 = sld [smem:[#allocation78_spill]] }
 0x132   : > { %4324 = sst [smem:[#allocation65_spill]] %s3040_s2 }
 0x133   : > { %s3046_s24 = sld [smem:[#allocation10 + $0x206]] }
 0x134   : > { %s4329_s21 = sld [smem:[#allocation45_spill]]  ;;  %v494_v36 = vstv %s4325_s25 }
 0x135   : > { %s4330_s0 = sld [smem:[#allocation50_spill]]  ;;  %v635_v38 = vstv %s4326_s27  ;;  %v495_v53 = vmul.f32 %v2914_v4, %v494_v36 }
 0x136   : > { %s3054_s5 = sld [smem:[#allocation10 + $0x207]]  ;;  %v636_v51 = vadd.f32 %v635_v38, %v633_v35 }
 0x137   : > { %s4331_s1 = sld [smem:[#allocation46_spill]]  ;;  %v638_v39 = vstv %s4327_s16  ;;  %v496_v12 = vadd.f32 %v495_v53, %v492_v45 }
 0x138   : > { %s4332_s2 = sld [smem:[#allocation67_spill]]  ;;  %v639_v52 = vmul.f32 %v638_v39, %v2964_v30 }
 0x139   : > { %4328 = sst [smem:[#allocation41_spill]] %s3046_s24  ;;  %v3122_v29 = vmax.f32 %v496_v12, 0.0 }
 0x13a   : > { %s3059_s12 = sld [smem:[#allocation10 + $0x208]]  ;;  %v502_v40 = vstv %s4329_s21  ;;  %v640_v5 = vadd.f32 %v639_v52, %v636_v51 }
 0x13b   : > { %s4334_s24 = sld [smem:[#allocation48_spill]]  ;;  %v521_v42 = vstv %s4330_s0  ;;  %v503_v54 = vadd.f32 %v502_v40, %v500_v37 }
 0x13c   : > { %s4335_s29 = sld [smem:[#allocation49_spill]]  ;;  %v522_v55 = vmul.f32 %v521_v42, %v2900_v0  ;;  %v699_v42 = vstv %s2887_s30 }
 0x13d   : > { %s3065_s9 = sld [smem:[#allocation10 + $0x209]]  ;;  %v505_v46 = vstv %s4331_s1 }
 0x13e   : > { %s4337_s19 = sld [smem:[#allocation79_spill]]  ;;  %v591_v48 = vstv %s4332_s2  ;;  %v506_v62 = vmul.f32 %v2914_v4, %v505_v46 }
 0x13f   : > { %s3070_s4 = sld [smem:[#allocation10 + $0x20a]]  ;;  %v592_v61 = vmul.f32 %v591_v48, %v3048_v27 }
 0x140   : > { %4333 = sst [smem:[#allocation44_spill]] %s3059_s12  ;;  %v507_v15 = vadd.f32 %v506_v62, %v503_v54  ;;  %v700_v54 = vmul.f32 %v699_v42, %v2952_v24 }
 0x141   : > { %s4339_s7 = sld [smem:[#allocation51_spill]]  ;;  %v513_v49 = vstv %s4334_s24  ;;  %v593_v13 = vadd.f32 %v592_v61, %v589_v60 }
 0x142   : > { %s4340_s12 = sld [smem:[#allocation52_spill]]  ;;  %v516_v50 = vstv %s4335_s29  ;;  %v514_v63 = vadd.f32 %v513_v49, %v511_v47  ;;  %v3128_v34 = vmax.f32 %v507_v15, 0.0 }
 0x143   : > { %4336 = sst [smem:[#allocation66_spill]] %s3065_s9  ;;  %v517_v1 = vmul.f32 %v2914_v4, %v516_v50  ;;  %v766_v50 = vstv %s2942_s20 }
 0x144   : > { %s3075_s25 = sld [smem:[#allocation10 + $0x20b]]  ;;  %v642_v56 = vstv %s4337_s19 }
 0x145   : > { %4338 = sst [smem:[#allocation42_spill]] %s3070_s4  ;;  %v643_v6 = vmul.f32 %v642_v56, %v2981_v41  ;;  %v518_v16 = vadd.f32 %v517_v1, %v514_v63  ;;  %v767_v63 = vmul.f32 %v766_v50, %v2952_v24 }
 0x146   : > { %s4342_s27 = sld [smem:[#allocation68_spill]] }
 0x147   : > { %s3080_s21 = sld [smem:[#allocation10 + $0x20c]]  ;;  %v524_v57 = vstv %s4339_s7  ;;  %v644_v21 = vadd.f32 %v643_v6, %v640_v5  ;;  %v3134_v38 = vmax.f32 %v518_v16, 0.0  ;;  %v772_v5 = vstv %s2947_s17 }
 0x148   : > { %s4344_s16 = sld [smem:[#allocation53_spill]]  ;;  %v527_v59 = vstv %s4340_s12  ;;  %v525_v7 = vadd.f32 %v524_v57, %v522_v55  ;;  %v702_v57 = vstv %s2889_s6 }
 0x149   : > { %s3085_s0 = sld [smem:[#allocation10 + $0x20d]]  ;;  %v528_v8 = vmul.f32 %v2914_v4, %v527_v59  ;;  %v648_v39 = vadd.f32 %v647_v23, %v644_v21  ;;  %v705_v59 = vstv %s2891_s3  ;;  %v776_v23 = vstv %s2950_s11 }
 0x14a   : > { %4341 = sst [smem:[#allocation47_spill]] %s3075_s25  ;;  %v706_v9 = vmul.f32 %v705_v59, %v2964_v30 }
 0x14b   : > { %s3090_s29 = sld [smem:[#allocation10 + $0x20e]]  ;;  %v529_v25 = vadd.f32 %v528_v8, %v525_v7  ;;  %v703_v8 = vadd.f32 %v702_v57, %v700_v54 }
 0x14c   : > { %v595_v2 = vstv %s4342_s27  ;;  %s3095_s2 = sld [smem:[#allocation10 + $0x20f]] }
 0x14d   : > { %4343 = sst [smem:[#allocation43_spill]] %s3080_s21  ;;  %v596_v14 = vmul.f32 %v595_v2, %v3050_v28  ;;  %v3140_v43 = vmax.f32 %v529_v25, 0.0 }
 0x14e   : > { %v532_v3 = vstv %s4344_s16  ;;  %s4348_s24 = sld [smem:[#allocation69_spill]] }
 0x14f   : > { %4345 = sst [smem:[#allocation77_spill]] %s3085_s0  ;;  %v533_v17 = vmul.f32 %v532_v3, %v2900_v0  ;;  %v597_v32 = vadd.f32 %v596_v14, %v593_v13  ;;  %v769_v3 = vstv %s2944_s14 }
 0x150   : > { %s4349_s1 = sld [smem:[#allocation54_spill]] }
 0x151   : > { %4346 = sst [smem:[#allocation78_spill]] %s3090_s29 }
 0x152   : > { %4347 = sst [smem:[#allocation45_spill]] %s3095_s2 }
 0x153   : > { %s3099_s12 = sld [smem:[#allocation10 + $0x280]] }
 0x154   : > { %s4350_s19 = sld [smem:[#allocation55_spill]]  ;;  %v599_v18 = vstv %s4348_s24 }
 0x155   : > { %s3103_s7 = sld [smem:[#allocation11 + $0x5]]  ;;  %v600_v33 = vmul.f32 %v599_v18, %v3105_v10  ;;  %v770_v18 = vadd.f32 %v769_v3, %v767_v63  ;;  %v784_v63 = vstv %s2960_s23 }
 0x156   : > { %s4351_s27 = sld [smem:[#allocation80_spill]]  ;;  %v535_v19 = vstv %s4349_s1 }
 0x157   : > { %s4352_s16 = sld [smem:[#allocation56_spill]]  ;;  %v536_v35 = vadd.f32 %v535_v19, %v533_v17  ;;  %v601_v48 = vadd.f32 %v600_v33, %v597_v32 }
 0x158   : > { %s3108_s2 = sld [smem:[#allocation10 + $0x281]] }
 0x159   : > { %s3112_s29 = sld [smem:[#allocation10 + $0x282]] }
 0x15a   : > { %s4353_s26 = sld [smem:[#allocation70_spill]]  ;;  %v538_v20 = vstv %s4350_s19 }
 0x15b   : > { %s3117_s0 = sld [smem:[#allocation10 + $0x283]]  ;;  %v539_v36 = vmul.f32 %v2914_v4, %v538_v20 }
 0x15c   : > { %v650_v26 = vstv %s4351_s27  ;;  %s3120_s21 = sld [smem:[#allocation10 + $0x284]] }
 0x15d   : > { %v543_v31 = vstv %s4352_s16  ;;  %s4354_s25 = sld [smem:[#allocation57_spill]]  ;;  %v651_v40 = vmul.f32 %v650_v26, %v3027_v11  ;;  %v540_v51 = vadd.f32 %v539_v36, %v536_v35 }
 0x15e   : > { %s4355_s24 = sld [smem:[#allocation81_spill]]  ;;  %v544_v44 = vmul.f32 %v543_v31, %v2900_v0  ;;  %v707_v31 = vadd.f32 %v706_v9, %v703_v8 }
 0x15f   : > { %s3126_s1 = sld [smem:[#allocation10 + $0x285]]  ;;  %v652_v55 = vadd.f32 %v651_v40, %v648_v39  ;;  %v3200_v39 = vmax.f32 %v540_v51, 0.0  ;;  %v833_v51 = vstv %s3018_s10 }
 0x160   : > { %s4357_s19 = sld [smem:[#allocation58_spill]]  ;;  %v603_v37 = vstv %s4353_s26 }
 0x161   : > { %s3132_s27 = sld [smem:[#allocation10 + $0x286]]  ;;  %v604_v49 = vmul.f32 %v603_v37, %v3122_v29  ;;  %v713_v37 = vstv %s2895_s8 }
 0x162   : > { %s4359_s16 = sld [smem:[#allocation59_spill]]  ;;  %v714_v50 = vmul.f32 %v713_v37, %v3006_v58 }
 0x163   : > { %s4360_s4 = sld [smem:[#allocation71_spill]]  ;;  %v546_v45 = vstv %s4354_s25  ;;  %v605_v1 = vadd.f32 %v604_v49, %v601_v48 }
 0x164   : > { %s3138_s9 = sld [smem:[#allocation10 + $0x287]]  ;;  %v654_v46 = vstv %s4355_s24  ;;  %v547_v60 = vadd.f32 %v546_v45, %v544_v44  ;;  %v777_v44 = vmul.f32 %v776_v23, %v2981_v41 }
 0x165   : > { %4356 = sst [smem:[#allocation50_spill]] %s3126_s1  ;;  %v655_v56 = vmul.f32 %v654_v46, %v3042_v22 }
 0x166   : > { %s3145_s26 = sld [smem:[#allocation10 + $0x288]]  ;;  %v549_v47 = vstv %s4357_s19 }
 0x167   : > { %4358 = sst [smem:[#allocation46_spill]] %s3132_s27  ;;  %v550_v61 = vmul.f32 %v2914_v4, %v549_v47  ;;  %v656_v13 = vadd.f32 %v655_v56, %v652_v55  ;;  %v780_v47 = vstv %s2957_s18 }
 0x168   : > { %s4361_s27 = sld [smem:[#allocation82_spill]]  ;;  %v554_v52 = vstv %s4359_s16 }
 0x169   : > { %s3150_s1 = sld [smem:[#allocation10 + $0x289]]  ;;  %v607_v53 = vstv %s4360_s4  ;;  %v555_v6 = vmul.f32 %v554_v52, %v2900_v0  ;;  %v773_v0 = vmul.f32 %v772_v5, %v2964_v30  ;;  %v551_v19 = vadd.f32 %v550_v61, %v547_v60 }
 0x16a   : > { %s3155_s30 = sld [smem:[#allocation10 + $0x28a]]  ;;  %v608_v2 = vmul.f32 %v607_v53, %v3128_v34  ;;  %v781_v60 = vmul.f32 %v780_v47, %v3006_v58  ;;  %v836_v5 = vstv %s3021_s15 }
 0x16b   : > { %s4363_s25 = sld [smem:[#allocation72_spill]]  ;;  %v774_v42 = vadd.f32 %v773_v0, %v770_v18  ;;  %v3211_v48 = vmax.f32 %v551_v19, 0.0  ;;  %v788_v18 = vstv %s2962_s13 }
 0x16c   : > { %s3160_s24 = sld [smem:[#allocation10 + $0x28b]]  ;;  %v609_v20 = vadd.f32 %v608_v2, %v605_v1  ;;  %v834_v1 = vmul.f32 %v833_v51, %v2952_v24  ;;  %v789_v37 = vmul.f32 %v788_v18, %v3042_v22 }
 0x16d   : > { %s4365_s20 = sld [smem:[#allocation60_spill]]  ;;  %v778_v59 = vadd.f32 %v777_v44, %v774_v42 }
 0x16e   : > { %v658_v62 = vstv %s4361_s27  ;;  %s4366_s4 = sld [smem:[#allocation92_spill]]  ;;  %v837_v0 = vadd.f32 %v836_v5, %v834_v1 }
 0x16f   : > { %s3165_s19 = sld [smem:[#allocation10 + $0x28c]]  ;;  %v659_v14 = vmul.f32 %v658_v62, %v3048_v27 }
 0x170   : > { %4362 = sst [smem:[#allocation67_spill]] %s3155_s30 }
 0x171   : > { %s4368_s16 = sld [smem:[#allocation61_spill]]  ;;  %v611_v7 = vstv %s4363_s25  ;;  %v660_v35 = vadd.f32 %v659_v14, %v656_v13 }
 0x172   : > { %4364 = sst [smem:[#allocation48_spill]] %s3160_s24  ;;  %v612_v21 = vmul.f32 %v611_v7, %v3134_v38 }
 0x173   : > { %s4369_s30 = sld [smem:[#allocation83_spill]]  ;;  %v557_v12 = vstv %s4365_s20 }
 0x174   : > { %s3170_s3 = sld [smem:[#allocation10 + $0x28d]]  ;;  %v709_v15 = vstv %s4366_s4  ;;  %v558_v25 = vadd.f32 %v557_v12, %v555_v6  ;;  %v613_v45 = vadd.f32 %v612_v21, %v609_v20  ;;  %v839_v6 = vstv %s3025_s22 }
 0x175   : > { %4367 = sst [smem:[#allocation49_spill]] %s3165_s19  ;;  %v710_v32 = vmul.f32 %v709_v15, %v2981_v41  ;;  %v721_v12 = vstv %s2903_s28  ;;  %v782_v15 = vadd.f32 %v781_v60, %v778_v59  ;;  %v840_v19 = vmul.f32 %v839_v6, %v2964_v30 }
 0x176   : > { %s3175_s6 = sld [smem:[#allocation10 + $0x28e]]  ;;  %v722_v23 = vmul.f32 %v721_v12, %v3042_v22 }
 0x177   : > { %s4372_s27 = sld [smem:[#allocation73_spill]]  ;;  %v560_v16 = vstv %s4368_s16  ;;  %v711_v49 = vadd.f32 %v710_v32, %v707_v31  ;;  %v841_v44 = vadd.f32 %v840_v19, %v837_v0 }
 0x178   : > { %s3180_s19 = sld [smem:[#allocation10 + $0x28f]]  ;;  %v561_v33 = vmul.f32 %v2914_v4, %v560_v16  ;;  %v785_v16 = vmul.f32 %v784_v63, %v3027_v11 }
 0x179   : > { %v662_v17 = vstv %s4369_s30  ;;  %s3185_s14 = sld [smem:[#allocation10 + $0x300]]  ;;  %v715_v2 = vadd.f32 %v714_v50, %v711_v49 }
 0x17a   : > { %4370 = sst [smem:[#allocation79_spill]] %s3170_s3  ;;  %v663_v36 = vmul.f32 %v662_v17, %v3050_v28  ;;  %v562_v52 = vadd.f32 %v561_v33, %v558_v25 }
 0x17b   : > { %s4374_s17 = sld [smem:[#allocation84_spill]] }
 0x17c   : > { %4371 = sst [smem:[#allocation51_spill]] %s3175_s6  ;;  %v664_v53 = vadd.f32 %v663_v36, %v660_v35  ;;  %v3236_v7 = vmax.f32 %v562_v52, 0.0  ;;  %v786_v36 = vadd.f32 %v785_v16, %v782_v15 }
 0x17d   : > { %s3189_s25 = sld [smem:[#allocation11 + $0x6]]  ;;  %v615_v26 = vstv %s4372_s27 }
 0x17e   : > { %4373 = sst [smem:[#allocation52_spill]] %s3180_s19  ;;  %v616_v4 = vmul.f32 %v615_v26, %v3140_v43 }
 0x17f   : > { %s4375_s20 = sld [smem:[#allocation74_spill]] }
 0x180   : > { %s3193_s30 = sld [smem:[#allocation10 + $0x301]]  ;;  %v617_v61 = vadd.f32 %v616_v4, %v613_v45 }
 0x181   : > { %s3198_s4 = sld [smem:[#allocation10 + $0x302]]  ;;  %v666_v40 = vstv %s4374_s17 }
 0x182   : > { %s4376_s11 = sld [smem:[#allocation93_spill]]  ;;  %v667_v54 = vmul.f32 %v666_v40, %v3105_v10 }
 0x183   : > { %s3204_s16 = sld [smem:[#allocation10 + $0x303]] }
 0x184   : > { %s4377_s27 = sld [smem:[#allocation85_spill]]  ;;  %v668_v8 = vadd.f32 %v667_v54, %v664_v53  ;;  %v900_v53 = vstv %s3099_s12 }
 0x185   : > { %v619_v46 = vstv %s4375_s20  ;;  %s3209_s19 = sld [smem:[#allocation10 + $0x304]] }
 0x186   : > { %s4378_s8 = sld [smem:[#allocation75_spill]]  ;;  %v620_v56 = vmul.f32 %v619_v46, %v3200_v39 }
 0x187   : > { %s3215_s17 = sld [smem:[#allocation10 + $0x305]] }
 0x188   : > { %v717_v55 = vstv %s4376_s11  ;;  %s3219_s18 = sld [smem:[#allocation10 + $0x306]]  ;;  %v621_v20 = vadd.f32 %v620_v56, %v617_v61  ;;  %v790_v56 = vadd.f32 %v789_v37, %v786_v36 }
 0x189   : > { %s3224_s20 = sld [smem:[#allocation10 + $0x307]]  ;;  %v718_v3 = vmul.f32 %v717_v55, %v3027_v11 }
 0x18a   : > { %v670_v57 = vstv %s4377_s27  ;;  %s4380_s10 = sld [smem:[#allocation86_spill]] }
 0x18b   : > { %s3229_s6 = sld [smem:[#allocation10 + $0x308]]  ;;  %v671_v9 = vmul.f32 %v670_v57, %v3122_v29  ;;  %v719_v21 = vadd.f32 %v718_v3, %v715_v2  ;;  %v901_v3 = vmul.f32 %v900_v53, %v2952_v24  ;;  %v914_v53 = vstv %s3117_s0 }
 0x18c   : > { %v623_v62 = vstv %s4378_s8  ;;  %s4382_s11 = sld [smem:[#allocation76_spill]] }
 0x18d   : > { %s3234_s27 = sld [smem:[#allocation10 + $0x309]]  ;;  %v624_v13 = vmul.f32 %v623_v62, %v3211_v48  ;;  %v672_v26 = vadd.f32 %v671_v9, %v668_v8  ;;  %v723_v46 = vadd.f32 %v722_v23, %v719_v21  ;;  %v903_v8 = vstv %s3103_s7 }
 0x18e   : > { %s4384_s8 = sld [smem:[#allocation64_spill]]  ;;  %v906_v9 = vstv %s3108_s2  ;;  %v904_v21 = vadd.f32 %v903_v8, %v901_v3  ;;  %v915_v3 = vmul.f32 %v914_v53, %v3006_v58 }
 0x18f   : > { %4379 = sst [smem:[#allocation68_spill]] %s3224_s20  ;;  %v625_v50 = vadd.f32 %v624_v13, %v621_v20  ;;  %v907_v23 = vmul.f32 %v906_v9, %v2964_v30  ;;  %v918_v9 = vstv %s3120_s21 }
 0x190   : > { %s3240_s23 = sld [smem:[#allocation10 + $0x30a]]  ;;  %v674_v14 = vstv %s4380_s10 }
 0x191   : > { %4381 = sst [smem:[#allocation53_spill]] %s3229_s6  ;;  %v675_v31 = vmul.f32 %v674_v14, %v3128_v34 }
 0x192   : > { %s4386_s6 = sld [smem:[#allocation87_spill]]  ;;  %v627_v17 = vstv %s4382_s11 }
 0x193   : > { %4383 = sst [smem:[#allocation69_spill]] %s3234_s27  ;;  %v628_v35 = vmul.f32 %v627_v17, %v3236_v7  ;;  %v676_v51 = vadd.f32 %v675_v31, %v672_v26 }
 0x194   : > { %s4387_s3 = sld [smem:[#allocation94_spill]]  ;;  %v843_v25 = vstv %s4384_s8 }
 0x195   : > { %s3245_s15 = sld [smem:[#allocation10 + $0x30b]]  ;;  %v844_v45 = vmul.f32 %v843_v25, %v2981_v41  ;;  %v3313_v25 = vadd.f32 %v628_v35, %v625_v50 }
 0x196   : > { %4385 = sst [smem:[#allocation54_spill]] %s3240_s23 }
 0x197   : > { %s4389_s22 = sld [smem:[#allocation88_spill]]  ;;  %v845_v61 = vadd.f32 %v844_v45, %v841_v44 }
 0x198   : > { %s3250_s27 = sld [smem:[#allocation10 + $0x30c]]  ;;  %v678_v32 = vstv %s4386_s6 }
 0x199   : > { %s4391_s28 = sld [smem:[#allocation62_spill]]  ;;  %v679_v4 = vmul.f32 %v678_v32, %v3134_v38  ;;  %v910_v32 = vstv %s3112_s29 }
 0x19a   : > { %s3254_s10 = sld [smem:[#allocation10 + $0x30d]]  ;;  %v725_v33 = vstv %s4387_s3 }
 0x19b   : > { %4388 = sst [smem:[#allocation55_spill]] %s3245_s15  ;;  %v726_v47 = vmul.f32 %v725_v33, %v3048_v27  ;;  %v680_v5 = vadd.f32 %v679_v4, %v676_v51 }
 0x19c   : > { %s4393_s15 = sld [smem:[#allocation39_spill]] }
 0x19d   : > { %s3259_s13 = sld [smem:[#allocation10 + $0x30e]]  ;;  %v682_v40 = vstv %s4389_s22  ;;  %v727_v63 = vadd.f32 %v726_v47, %v723_v46  ;;  %v908_v47 = vadd.f32 %v907_v23, %v904_v21  ;;  %v919_v23 = vmul.f32 %v918_v9, %v3027_v11 }
 0x19e   : > { %4390 = sst [smem:[#allocation80_spill]] %s3250_s27  ;;  %v683_v54 = vmul.f32 %v682_v40, %v3140_v43 }
 0x19f   : > { %s4395_s11 = sld [smem:[#allocation95_spill]]  ;;  %v792_v42 = vstv %s4391_s28 }
 0x1a0   : > { %4392 = sst [smem:[#allocation56_spill]] %s3254_s10  ;;  %v793_v57 = vmul.f32 %v792_v42, %v3048_v27  ;;  %v684_v26 = vadd.f32 %v683_v54, %v680_v5  ;;  %v630_v5 = vmax.f32 %v3313_v25, 0.0 }
 0x1a1   : > { %s3263_s27 = sld [smem:[#allocation10 + $0x30f]] }
 0x1a2   : > { %s4397_s8 = sld [smem:[#allocation89_spill]]  ;;  %v847_v49 = vstv %s4393_s15  ;;  %v794_v14 = vadd.f32 %v793_v57, %v790_v56 }
 0x1a3   : > { %4394 = sst [smem:[#allocation70_spill]] %s3259_s13  ;;  %v848_v62 = vmul.f32 %v847_v49, %v3006_v58  ;;  %v911_v49 = vmul.f32 %v910_v32, %v2981_v41 }
 0x1a4   : > { %s3268_s10 = sld [smem:[#allocation10 + $0x380]] }
 0x1a5   : > { %s4398_s3 = sld [smem:[#allocation96_spill]]  ;;  %v729_v52 = vstv %s4395_s11  ;;  %v849_v18 = vadd.f32 %v848_v62, %v845_v61 }
 0x1a6   : > { %s4399_s6 = sld [smem:[#allocation35_spill]]  ;;  %v730_v1 = vmul.f32 %v729_v52, %v3050_v28 }
 0x1a7   : > { %4396 = sst [smem:[#allocation57_spill]] %s3263_s27 }
 0x1a8   : > { %s3273_s13 = sld [smem:[#allocation11 + $0x7]]  ;;  %v686_v55 = vstv %s4397_s8  ;;  %v731_v19 = vadd.f32 %v730_v1, %v727_v63  ;;  %v863_v1 = vstv %s3054_s5 }
 0x1a9   : > { %s4400_s22 = sld [smem:[#allocation40_spill]]  ;;  %v687_v6 = vmul.f32 %v686_v55, %v3200_v39 }
 0x1aa   : > { %s3277_s28 = sld [smem:[#allocation10 + $0x381]] }
 0x1ab   : > { %s3282_s27 = sld [smem:[#allocation10 + $0x382]]  ;;  %v733_v59 = vstv %s4398_s3  ;;  %v688_v50 = vadd.f32 %v687_v6, %v684_v26 }
 0x1ac   : > { %s4401_s15 = sld [smem:[#allocation90_spill]]  ;;  %v796_v60 = vstv %s4399_s6  ;;  %v734_v13 = vmul.f32 %v733_v59, %v3105_v10 }
 0x1ad   : > { %s3287_s11 = sld [smem:[#allocation10 + $0x383]]  ;;  %v797_v15 = vmul.f32 %v796_v60, %v3050_v28 }
 0x1ae   : > { %s4402_s12 = sld [smem:[#allocation97_spill]]  ;;  %v735_v4 = vadd.f32 %v734_v13, %v731_v19 }
 0x1af   : > { %s4403_s23 = sld [smem:[#allocation31_spill]]  ;;  %v851_v2 = vstv %s4400_s22  ;;  %v798_v37 = vadd.f32 %v797_v15, %v794_v14 }
 0x1b0   : > { %s3292_s8 = sld [smem:[#allocation10 + $0x384]]  ;;  %v852_v0 = vmul.f32 %v851_v2, %v3027_v11  ;;  %v912_v2 = vadd.f32 %v911_v49, %v908_v47 }
 0x1b1   : > { %s4404_s20 = sld [smem:[#allocation65_spill]] }
 0x1b2   : > { %s3297_s3 = sld [smem:[#allocation10 + $0x385]]  ;;  %v690_v12 = vstv %s4401_s15  ;;  %v853_v44 = vadd.f32 %v852_v0, %v849_v18  ;;  %v864_v18 = vmul.f32 %v863_v1, %v3050_v28  ;;  %v967_v0 = vstv %s3185_s14 }
 0x1b3   : > { %s3302_s6 = sld [smem:[#allocation10 + $0x386]]  ;;  %v691_v31 = vmul.f32 %v690_v12, %v3211_v48  ;;  %v916_v21 = vadd.f32 %v915_v3, %v912_v2 }
 0x1b4   : > { %s4406_s22 = sld [smem:[#allocation91_spill]]  ;;  %v737_v16 = vstv %s4402_s12 }
 0x1b5   : > { %s4407_s24 = sld [smem:[#allocation98_spill]]  ;;  %v800_v17 = vstv %s4403_s23  ;;  %v738_v42 = vmul.f32 %v737_v16, %v3122_v29  ;;  %v692_v6 = vadd.f32 %v691_v31, %v688_v50  ;;  %v920_v49 = vadd.f32 %v919_v23, %v916_v21 }
 0x1b6   : > { %s3307_s7 = sld [smem:[#allocation10 + $0x387]]  ;;  %v801_v40 = vmul.f32 %v800_v17, %v3105_v10  ;;  %v981_v21 = vstv %s3204_s16 }
 0x1b7   : > { %s4409_s2 = sld [smem:[#allocation32_spill]]  ;;  %v855_v20 = vstv %s4404_s20  ;;  %v739_v63 = vadd.f32 %v738_v42, %v735_v4  ;;  %v968_v42 = vmul.f32 %v967_v0, %v2952_v24  ;;  %v973_v4 = vstv %s3193_s30 }
 0x1b8   : > { %s3311_s15 = sld [smem:[#allocation10 + $0x388]]  ;;  %v856_v45 = vmul.f32 %v855_v20, %v3042_v22  ;;  %v802_v56 = vadd.f32 %v801_v40, %v798_v37 }
 0x1b9   : > { %4405 = sst [smem:[#allocation81_spill]] %s3302_s6 }
 0x1ba   : > { %s4411_s6 = sld [smem:[#allocation41_spill]]  ;;  %v694_v33 = vstv %s4406_s22  ;;  %v857_v61 = vadd.f32 %v856_v45, %v853_v44  ;;  %v970_v45 = vstv %s3189_s25 }
 0x1bb   : > { %s3317_s23 = sld [smem:[#allocation10 + $0x389]]  ;;  %v741_v36 = vstv %s4407_s24  ;;  %v695_v51 = vmul.f32 %v694_v33, %v3236_v7 }
 0x1bc   : > { %4408 = sst [smem:[#allocation58_spill]] %s3307_s7  ;;  %v742_v52 = vmul.f32 %v741_v36, %v3128_v34 }
 0x1bd   : > { %s3322_s20 = sld [smem:[#allocation10 + $0x38a]]  ;;  %v804_v35 = vstv %s4409_s2  ;;  %v3373_v26 = vadd.f32 %v695_v51, %v692_v6 }
 0x1be   : > { %4410 = sst [smem:[#allocation59_spill]] %s3311_s15  ;;  %v805_v57 = vmul.f32 %v804_v35, %v3122_v29  ;;  %v743_v19 = vadd.f32 %v742_v52, %v739_v63  ;;  %v977_v63 = vstv %s3198_s4 }
 0x1bf   : > { %s4414_s12 = sld [smem:[#allocation99_spill]] }
 0x1c0   : > { %s4415_s15 = sld [smem:[#allocation100_spill]]  ;;  %v859_v46 = vstv %s4411_s6  ;;  %v806_v14 = vadd.f32 %v805_v57, %v802_v56  ;;  %v971_v56 = vadd.f32 %v970_v45, %v968_v42  ;;  %v974_v57 = vmul.f32 %v973_v4, %v2964_v30 }
 0x1c1   : > { %4412 = sst [smem:[#allocation71_spill]] %s3317_s23  ;;  %v860_v62 = vmul.f32 %v859_v46, %v3048_v27  ;;  %v1044_v45 = vstv %s3282_s27 }
 0x1c2   : > { %s3327_s7 = sld [smem:[#allocation10 + $0x38b]] }
 0x1c3   : > { %4413 = sst [smem:[#allocation82_spill]] %s3322_s20  ;;  %v861_v17 = vadd.f32 %v860_v62, %v857_v61 }
 0x1c4   : > { %s4417_s29 = sld [smem:[#allocation101_spill]] }
 0x1c5   : > { %s4418_s22 = sld [smem:[#allocation33_spill]]  ;;  %v745_v54 = vstv %s4414_s12  ;;  %v865_v35 = vadd.f32 %v864_v18, %v861_v17  ;;  %v1037_v17 = vstv %s3273_s13  ;;  %v1040_v18 = vstv %s3277_s28 }
 0x1c6   : > { %s3331_s24 = sld [smem:[#allocation10 + $0x38c]]  ;;  %v749_v55 = vstv %s4415_s15  ;;  %v746_v8 = vmul.f32 %v745_v54, %v3134_v38  ;;  %v1041_v42 = vmul.f32 %v1040_v18, %v2964_v30 }
 0x1c7   : > { %s3336_s2 = sld [smem:[#allocation10 + $0x38d]]  ;;  %v750_v12 = vmul.f32 %v749_v55, %v3140_v43 }
 0x1c8   : > { %4416 = sst [smem:[#allocation72_spill]] %s3327_s7  ;;  %v747_v46 = vadd.f32 %v746_v8, %v743_v19 }
 0x1c9   : > { %s3341_s6 = sld [smem:[#allocation10 + $0x38e]] }
 0x1ca   : > { %v753_v59 = vstv %s4417_s29  ;;  %s4423_s7 = sld [smem:[#allocation63_spill]]  ;;  %v751_v1 = vadd.f32 %v750_v12, %v747_v46  ;;  %v978_v12 = vmul.f32 %v977_v63, %v2981_v41  ;;  %v1048_v63 = vstv %s3287_s11 }
 0x1cb   : > { %v808_v60 = vstv %s4418_s22  ;;  %s3350_s0 = sld [smem:[#allocation10 + $0x400]]  ;;  %v3359_v13 = vmul.f32 %v753_v59, %v3200_v39  ;;  %v1034_v59 = vstv %s3268_s10  ;;  %v1049_v18 = vmul.f32 %v1048_v63, %v3006_v58 }
 0x1cc   : > { %4419 = sst [smem:[#allocation60_spill]] %s3331_s24  ;;  %v809_v15 = vmul.f32 %v808_v60, %v3128_v34 }
 0x1cd   : > { %4420 = sst [smem:[#allocation92_spill]] %s3336_s2  ;;  %v755_v23 = vadd.f32 %v3359_v13, %v751_v1  ;;  %v982_v13 = vmul.f32 %v981_v21, %v3006_v58 }
 0x1ce   : > { %s3346_s24 = sld [smem:[#allocation10 + $0x38f]]  ;;  %v810_v36 = vadd.f32 %v809_v15, %v806_v14  ;;  %v930_v14 = vstv %s3138_s9  ;;  %v1035_v15 = vmul.f32 %v1034_v59, %v2952_v24 }
 0x1cf   : > { %4421 = sst [smem:[#allocation61_spill]] %s3341_s6 }
 0x1d0   : > { %s4424_s15 = sld [smem:[#allocation44_spill]]  ;;  %v812_v16 = vstv %s4423_s7 }
 0x1d1   : > { %s3355_s12 = sld [smem:[#allocation11 + $0x8]]  ;;  %v813_v37 = vmul.f32 %v812_v16, %v3134_v38  ;;  %v975_v16 = vadd.f32 %v974_v57, %v971_v56  ;;  %v938_v57 = vstv %s3150_s1 }
 0x1d2   : > { %s4425_s29 = sld [smem:[#allocation102_spill]] }
 0x1d3   : > { %s4426_s5 = sld [smem:[#allocation103_spill]]  ;;  %v814_v60 = vadd.f32 %v813_v37, %v810_v36  ;;  %v934_v37 = vstv %s3145_s26 }
 0x1d4   : > { %4422 = sst [smem:[#allocation83_spill]] %s3346_s24 }
 0x1d5   : > { %s4427_s22 = sld [smem:[#allocation50_spill]] }
 0x1d6   : > { %s3362_s24 = sld [smem:[#allocation10 + $0x401]]  ;;  %v867_v20 = vstv %s4424_s15 }
 0x1d7   : > { %s4428_s6 = sld [smem:[#allocation34_spill]]  ;;  %v868_v44 = vmul.f32 %v867_v20, %v3105_v10 }
 0x1d8   : > { %s3367_s21 = sld [smem:[#allocation10 + $0x402]]  ;;  %v757_v31 = vstv %s4425_s29 }
 0x1d9   : > { %s3371_s2 = sld [smem:[#allocation10 + $0x403]]  ;;  %v761_v32 = vstv %s4426_s5  ;;  %v758_v51 = vmul.f32 %v757_v31, %v3211_v48  ;;  %v869_v61 = vadd.f32 %v868_v44, %v865_v35  ;;  %v979_v44 = vadd.f32 %v978_v12, %v975_v16 }
 0x1da   : > { %s4429_s20 = sld [smem:[#allocation66_spill]]  ;;  %v3396_v52 = vmul.f32 %v761_v32, %v3236_v7 }
 0x1db   : > { %v922_v33 = vstv %s4427_s22  ;;  %s3378_s7 = sld [smem:[#allocation10 + $0x404]] }
 0x1dc   : > { %s4430_s14 = sld [smem:[#allocation46_spill]]  ;;  %v923_v50 = vmul.f32 %v922_v33, %v3042_v22  ;;  %v931_v33 = vmul.f32 %v930_v14, %v3050_v28 }
 0x1dd   : > { %v816_v40 = vstv %s4428_s6  ;;  %s3383_s15 = sld [smem:[#allocation10 + $0x405]] }
 0x1de   : > { %s4431_s23 = sld [smem:[#allocation36_spill]]  ;;  %v817_v53 = vmul.f32 %v816_v40, %v3140_v43  ;;  %v924_v3 = vadd.f32 %v923_v50, %v920_v49  ;;  %v1038_v40 = vadd.f32 %v1037_v17, %v1035_v15  ;;  %v985_v49 = vstv %s3209_s19 }
 0x1df   : > { %s3388_s29 = sld [smem:[#allocation10 + $0x406]]  ;;  %v759_v50 = vadd.f32 %v758_v51, %v755_v23  ;;  %v986_v51 = vmul.f32 %v985_v49, %v3027_v11  ;;  %v939_v15 = vmul.f32 %v938_v57, %v3122_v29  ;;  %v1104_v57 = vstv %s3355_s12 }
 0x1e0   : > { %v871_v47 = vstv %s4429_s20  ;;  %s3392_s6 = sld [smem:[#allocation10 + $0x407]]  ;;  %v818_v0 = vadd.f32 %v817_v53, %v814_v60  ;;  %v1042_v59 = vadd.f32 %v1041_v42, %v1038_v40  ;;  %v1045_v60 = vmul.f32 %v1044_v45, %v2981_v41 }
 0x1e1   : > { %s4432_s5 = sld [smem:[#allocation42_spill]]  ;;  %v872_v62 = vmul.f32 %v871_v47, %v3122_v29  ;;  %v1101_v40 = vstv %s3350_s0 }
 0x1e2   : > { %v926_v54 = vstv %s4430_s14  ;;  %s3400_s25 = sld [smem:[#allocation10 + $0x408]]  ;;  %v1046_v17 = vadd.f32 %v1045_v60, %v1042_v59  ;;  %v1107_v59 = vstv %s3362_s24 }
 0x1e3   : > { %s4433_s30 = sld [smem:[#allocation37_spill]]  ;;  %v927_v6 = vmul.f32 %v926_v54, %v3048_v27  ;;  %v873_v19 = vadd.f32 %v872_v62, %v869_v61  ;;  %v983_v62 = vadd.f32 %v982_v13, %v979_v44 }
 0x1e4   : > { %v820_v55 = vstv %s4431_s23  ;;  %s3405_s20 = sld [smem:[#allocation10 + $0x409]]  ;;  %v1050_v44 = vadd.f32 %v1049_v18, %v1046_v17 }
 0x1e5   : > { %s3409_s22 = sld [smem:[#allocation10 + $0x40a]]  ;;  %v821_v8 = vmul.f32 %v820_v55, %v3200_v39  ;;  %v928_v32 = vadd.f32 %v927_v6, %v924_v3  ;;  %v935_v55 = vmul.f32 %v934_v37, %v3105_v10  ;;  %v989_v6 = vstv %s3215_s17 }
 0x1e6   : > { %s3413_s23 = sld [smem:[#allocation10 + $0x40b]] }
 0x1e7   : > { %v875_v2 = vstv %s4432_s5  ;;  %s4434_s10 = sld [smem:[#allocation47_spill]]  ;;  %v822_v4 = vadd.f32 %v821_v8, %v818_v0  ;;  %v932_v54 = vadd.f32 %v931_v33, %v928_v32  ;;  %v697_v8 = vmax.f32 %v3373_v26, 0.0 }
 0x1e8   : > { %s3419_s14 = sld [smem:[#allocation10 + $0x40c]]  ;;  %v876_v20 = vmul.f32 %v875_v2, %v3128_v34  ;;  %v993_v32 = vstv %s3219_s18 }
 0x1e9   : > { %v824_v9 = vstv %s4433_s30  ;;  %s3424_s4 = sld [smem:[#allocation10 + $0x40d]]  ;;  %v936_v14 = vadd.f32 %v935_v55, %v932_v54  ;;  %v1102_v54 = vmul.f32 %v1101_v40, %v2952_v24 }
 0x1ea   : > { %s4437_s5 = sld [smem:[#allocation38_spill]]  ;;  %v825_v36 = vmul.f32 %v824_v9, %v3211_v48  ;;  %v877_v46 = vadd.f32 %v876_v20, %v873_v19  ;;  %v3469_v9 = vadd.f32 %v3396_v52, %v759_v50  ;;  %v987_v52 = vadd.f32 %v986_v51, %v983_v62 }
 0x1eb   : > { %s3428_s9 = sld [smem:[#allocation10 + $0x40e]]  ;;  %v990_v19 = vmul.f32 %v989_v6, %v3042_v22  ;;  %v1052_v20 = vstv %s3292_s8 }
 0x1ec   : > { %s3433_s13 = sld [smem:[#allocation10 + $0x40f]]  ;;  %v826_v1 = vadd.f32 %v825_v36, %v822_v4  ;;  %v764_v33 = vmax.f32 %v3469_v9, 0.0  ;;  %v940_v36 = vadd.f32 %v939_v15, %v936_v14  ;;  %v1053_v13 = vmul.f32 %v1052_v20, %v3027_v11 }
 0x1ed   : > { %v879_v31 = vstv %s4434_s10  ;;  %s4440_s28 = sld [smem:[#allocation43_spill]]  ;;  %v991_v4 = vadd.f32 %v990_v19, %v987_v52  ;;  %v1105_v14 = vadd.f32 %v1104_v57, %v1102_v54  ;;  %v1108_v15 = vmul.f32 %v1107_v59, %v2964_v30 }
 0x1ee   : > { %4435 = sst [smem:[#allocation73_spill]] %s3419_s14  ;;  %v880_v47 = vmul.f32 %v879_v31, %v3134_v38  ;;  %v1054_v62 = vadd.f32 %v1053_v13, %v1050_v44 }
 0x1ef   : > { %4436 = sst [smem:[#allocation84_spill]] %s3424_s4  ;;  %v1109_v40 = vadd.f32 %v1108_v15, %v1105_v14 }
 0x1f0   : > { %s3438_s30 = sld [smem:[#allocation10 + $0x480]]  ;;  %v828_v35 = vstv %s4437_s5  ;;  %v881_v2 = vadd.f32 %v880_v47, %v877_v46  ;;  %v994_v46 = vmul.f32 %v993_v32, %v3048_v27  ;;  %v1056_v47 = vstv %s3297_s3 }
 0x1f1   : > { %4438 = sst [smem:[#allocation74_spill]] %s3428_s9  ;;  %v829_v56 = vmul.f32 %v828_v35, %v3236_v7  ;;  %v1057_v51 = vmul.f32 %v1056_v47, %v3042_v22  ;;  %v1115_v47 = vstv %s3371_s2 }
 0x1f2   : > { %4439 = sst [smem:[#allocation93_spill]] %s3433_s13  ;;  %v995_v63 = vadd.f32 %v994_v46, %v991_v4 }
 0x1f3   : > { %s3443_s16 = sld [smem:[#allocation11 + $0x9]]  ;;  %v883_v53 = vstv %s4440_s28  ;;  %v3484_v21 = vadd.f32 %v829_v56, %v826_v1  ;;  %v1058_v20 = vadd.f32 %v1057_v51, %v1054_v62  ;;  %v1116_v62 = vmul.f32 %v1115_v47, %v3006_v58 }
 0x1f4   : > { %s4441_s10 = sld [smem:[#allocation77_spill]]  ;;  %v884_v3 = vmul.f32 %v883_v53, %v3140_v43 }
 0x1f5   : > { %s3447_s26 = sld [smem:[#allocation10 + $0x481]]  ;;  %v831_v49 = vmax.f32 %v3484_v21, 0.0 }
 0x1f6   : > { %s3451_s5 = sld [smem:[#allocation10 + $0x482]]  ;;  %v885_v23 = vadd.f32 %v884_v3, %v881_v2 }
 0x1f7   : > { %s3456_s27 = sld [smem:[#allocation10 + $0x483]] }
 0x1f8   : > { %s4442_s19 = sld [smem:[#allocation67_spill]] }
 0x1f9   : > { %s3461_s28 = sld [smem:[#allocation10 + $0x484]] }
 0x1fa   : > { %v887_v61 = vstv %s4441_s10  ;;  %s4443_s13 = sld [smem:[#allocation78_spill]] }
 0x1fb   : > { %s3465_s1 = sld [smem:[#allocation10 + $0x485]]  ;;  %v888_v16 = vmul.f32 %v887_v61, %v3200_v39  ;;  %v1174_v44 = vstv %s3447_s26 }
 0x1fc   : > { %s4444_s10 = sld [smem:[#allocation45_spill]]  ;;  %v1175_v59 = vmul.f32 %v1174_v44, %v2964_v30  ;;  %v1178_v51 = vstv %s3451_s5 }
 0x1fd   : > { %s3472_s11 = sld [smem:[#allocation10 + $0x486]]  ;;  %v889_v50 = vadd.f32 %v888_v16, %v885_v23  ;;  %v1168_v16 = vstv %s3438_s30 }
 0x1fe   : > { %v942_v12 = vstv %s4442_s19  ;;  %s3477_s17 = sld [smem:[#allocation10 + $0x487]] }
 0x1ff   : > { %s4445_s9 = sld [smem:[#allocation48_spill]]  ;;  %v943_v37 = vmul.f32 %v942_v12, %v3128_v34 }
 0x200   : > { %v891_v0 = vstv %s4443_s13  ;;  %s3482_s4 = sld [smem:[#allocation10 + $0x488]] }
 0x201   : > { %s3488_s19 = sld [smem:[#allocation10 + $0x489]]  ;;  %v892_v42 = vmul.f32 %v891_v0, %v3211_v48  ;;  %v944_v55 = vadd.f32 %v943_v37, %v940_v36  ;;  %v1111_v0 = vstv %s3367_s21  ;;  %v1169_v37 = vmul.f32 %v1168_v16, %v2952_v24 }
 0x202   : > { %v895_v31 = vstv %s4444_s10  ;;  %s4447_s13 = sld [smem:[#allocation68_spill]] }
 0x203   : > { %s3493_s14 = sld [smem:[#allocation10 + $0x48a]]  ;;  %v896_v45 = vmul.f32 %v895_v31, %v3236_v7  ;;  %v893_v6 = vadd.f32 %v892_v42, %v889_v50  ;;  %v1112_v42 = vmul.f32 %v1111_v0, %v2981_v41 }
 0x204   : > { %s3498_s18 = sld [smem:[#allocation10 + $0x48b]] }
 0x205   : > { %v946_v35 = vstv %s4445_s9  ;;  %s4450_s8 = sld [smem:[#allocation49_spill]]  ;;  %v3549_v13 = vadd.f32 %v896_v45, %v893_v6 }
 0x206   : > { %s4451_s10 = sld [smem:[#allocation79_spill]]  ;;  %v947_v56 = vmul.f32 %v946_v35, %v3134_v38  ;;  %v1171_v35 = vstv %s3443_s16 }
 0x207   : > { %4446 = sst [smem:[#allocation85_spill]] %s3488_s19  ;;  %v1172_v57 = vadd.f32 %v1171_v35, %v1169_v37  ;;  %v1123_v37 = vstv %s3383_s15 }
 0x208   : > { %s3503_s0 = sld [smem:[#allocation10 + $0x48c]]  ;;  %v997_v53 = vstv %s4447_s13  ;;  %v948_v12 = vadd.f32 %v947_v56, %v944_v55 }
 0x209   : > { %4448 = sst [smem:[#allocation75_spill]] %s3493_s14  ;;  %v998_v1 = vmul.f32 %v997_v53, %v3050_v28 }
 0x20a   : > { %4449 = sst [smem:[#allocation86_spill]] %s3498_s18 }
 0x20b   : > { %s4453_s9 = sld [smem:[#allocation53_spill]]  ;;  %v950_v60 = vstv %s4450_s8  ;;  %v999_v31 = vadd.f32 %v998_v1, %v995_v63  ;;  %v898_v63 = vmax.f32 %v3549_v13, 0.0 }
 0x20c   : > { %s4454_s14 = sld [smem:[#allocation81_spill]]  ;;  %v954_v61 = vstv %s4451_s10  ;;  %v951_v17 = vmul.f32 %v950_v60, %v3140_v43 }
 0x20d   : > { %s3508_s19 = sld [smem:[#allocation10 + $0x48d]]  ;;  %v955_v18 = vmul.f32 %v954_v61, %v3200_v39  ;;  %v1113_v61 = vadd.f32 %v1112_v42, %v1109_v40 }
 0x20e   : > { %4452 = sst [smem:[#allocation76_spill]] %s3503_s0  ;;  %v952_v4 = vadd.f32 %v951_v17, %v948_v12  ;;  %v1176_v17 = vadd.f32 %v1175_v59, %v1172_v57 }
 0x20f   : > { %s3513_s18 = sld [smem:[#allocation10 + $0x48e]] }
 0x210   : > { %s3518_s3 = sld [smem:[#allocation10 + $0x48f]]  ;;  %v956_v1 = vadd.f32 %v955_v18, %v952_v4  ;;  %v1179_v18 = vmul.f32 %v1178_v51, %v2981_v41 }
 0x211   : > { %s4458_s13 = sld [smem:[#allocation51_spill]]  ;;  %v1001_v2 = vstv %s4453_s9 }
 0x212   : > { %v1060_v3 = vstv %s4454_s14  ;;  %s4459_s24 = sld [smem:[#allocation69_spill]]  ;;  %v1002_v19 = vmul.f32 %v1001_v2, %v3105_v10  ;;  %v1180_v4 = vadd.f32 %v1179_v18, %v1176_v17  ;;  %v1190_v18 = vstv %s3465_s1 }
 0x213   : > { %4455 = sst [smem:[#allocation64_spill]] %s3508_s19  ;;  %v1061_v23 = vmul.f32 %v1060_v3, %v3048_v27  ;;  %v1119_v3 = vstv %s3378_s7 }
 0x214   : > { %s3523_s19 = sld [smem:[#allocation10 + $0x500]]  ;;  %v1003_v60 = vadd.f32 %v1002_v19, %v999_v31  ;;  %v1117_v19 = vadd.f32 %v1116_v62, %v1113_v61  ;;  %v1127_v61 = vstv %s3388_s29 }
 0x215   : > { %4456 = sst [smem:[#allocation87_spill]] %s3513_s18  ;;  %v1062_v54 = vadd.f32 %v1061_v23, %v1058_v20  ;;  %v1120_v20 = vmul.f32 %v1119_v3, %v3027_v11  ;;  %v1182_v23 = vstv %s3456_s27  ;;  %v1128_v17 = vmul.f32 %v1127_v61, %v3048_v27 }
 0x216   : > { %4457 = sst [smem:[#allocation94_spill]] %s3518_s3  ;;  %v1183_v47 = vmul.f32 %v1182_v23, %v3006_v58 }
 0x217   : > { %s4460_s12 = sld [smem:[#allocation58_spill]]  ;;  %v958_v52 = vstv %s4458_s13 }
 0x218   : > { %s3527_s8 = sld [smem:[#allocation11 + $0xa]]  ;;  %v1005_v32 = vstv %s4459_s24  ;;  %v959_v46 = vmul.f32 %v958_v52, %v3211_v48 }
 0x219   : > { %s3532_s14 = sld [smem:[#allocation10 + $0x501]]  ;;  %v1006_v53 = vmul.f32 %v1005_v32, %v3122_v29 }
 0x21a   : > { %s3537_s30 = sld [smem:[#allocation10 + $0x502]]  ;;  %v1235_v0 = vstv %s3523_s19  ;;  %v960_v57 = vadd.f32 %v959_v46, %v956_v1  ;;  %v1184_v1 = vadd.f32 %v1183_v47, %v1180_v4  ;;  %v1194_v47 = vstv %s3472_s11 }
 0x21b   : > { %s4461_s10 = sld [smem:[#allocation52_spill]]  ;;  %v1007_v52 = vadd.f32 %v1006_v53, %v1003_v60  ;;  %v1236_v44 = vmul.f32 %v1235_v0, %v2952_v24 }
 0x21c   : > { %s3542_s9 = sld [smem:[#allocation10 + $0x503]] }
 0x21d   : > { %v1064_v36 = vstv %s4460_s12  ;;  %s4462_s21 = sld [smem:[#allocation54_spill]] }
 0x21e   : > { %s4463_s13 = sld [smem:[#allocation59_spill]]  ;;  %v1065_v55 = vmul.f32 %v1064_v36, %v3050_v28 }
 0x21f   : > { %s3547_s3 = sld [smem:[#allocation10 + $0x504]]  ;;  %v1241_v53 = vstv %s3532_s14 }
 0x220   : > { %s3553_s24 = sld [smem:[#allocation10 + $0x505]]  ;;  %v1066_v15 = vadd.f32 %v1065_v55, %v1062_v54  ;;  %v1121_v55 = vadd.f32 %v1120_v20, %v1117_v19  ;;  %v1131_v20 = vstv %s3392_s6 }
 0x221   : > { %v962_v50 = vstv %s4461_s10  ;;  %s3558_s16 = sld [smem:[#allocation10 + $0x506]]  ;;  %v1132_v4 = vmul.f32 %v1131_v20, %v3050_v28 }
 0x222   : > { %s4464_s26 = sld [smem:[#allocation55_spill]]  ;;  %v963_v2 = vmul.f32 %v962_v50, %v3236_v7  ;;  %v1238_v50 = vstv %s3527_s8 }
 0x223   : > { %v1009_v56 = vstv %s4462_s21  ;;  %s3563_s12 = sld [smem:[#allocation10 + $0x507]]  ;;  %v1239_v3 = vadd.f32 %v1238_v50, %v1236_v44 }
 0x224   : > { %v1068_v45 = vstv %s4463_s13  ;;  %s4465_s2 = sld [smem:[#allocation71_spill]]  ;;  %v1010_v6 = vmul.f32 %v1009_v56, %v3128_v34  ;;  %v1124_v56 = vmul.f32 %v1123_v37, %v3042_v22  ;;  %v3626_v0 = vadd.f32 %v963_v2, %v960_v57 }
 0x225   : > { %s3567_s10 = sld [smem:[#allocation10 + $0x508]]  ;;  %v1069_v16 = vmul.f32 %v1068_v45, %v3105_v10  ;;  %v1186_v45 = vstv %s3461_s28  ;;  %v1191_v2 = vmul.f32 %v1190_v18, %v3042_v22 }
 0x226   : > { %s3572_s21 = sld [smem:[#allocation10 + $0x509]]  ;;  %v1011_v54 = vadd.f32 %v1010_v6, %v1007_v52  ;;  %v1242_v6 = vmul.f32 %v1241_v53, %v2964_v30 }
 0x227   : > { %s4466_s13 = sld [smem:[#allocation80_spill]]  ;;  %v1070_v40 = vadd.f32 %v1069_v16, %v1066_v15  ;;  %v1245_v15 = vstv %s3537_s30 }
 0x228   : > { %v1013_v14 = vstv %s4464_s26  ;;  %s4467_s18 = sld [smem:[#allocation56_spill]] }
 0x229   : > { %s3577_s5 = sld [smem:[#allocation10 + $0x50a]]  ;;  %v1014_v31 = vmul.f32 %v1013_v14, %v3134_v38  ;;  %v1187_v14 = vmul.f32 %v1186_v45, %v3027_v11 }
 0x22a   : > { %v1072_v12 = vstv %s4465_s2  ;;  %s4468_s0 = sld [smem:[#allocation82_spill]] }
 0x22b   : > { %s3582_s7 = sld [smem:[#allocation10 + $0x50b]]  ;;  %v1073_v42 = vmul.f32 %v1072_v12, %v3122_v29  ;;  %v1015_v16 = vadd.f32 %v1014_v31, %v1011_v54  ;;  %v1125_v12 = vadd.f32 %v1124_v56, %v1121_v55  ;;  %v1246_v31 = vmul.f32 %v1245_v15, %v2981_v41 }
 0x22c   : > { %s3586_s26 = sld [smem:[#allocation10 + $0x50c]]  ;;  %v1135_v55 = vstv %s3400_s25 }
 0x22d   : > { %v1017_v32 = vstv %s4466_s13  ;;  %s3592_s2 = sld [smem:[#allocation10 + $0x50d]]  ;;  %v1074_v46 = vadd.f32 %v1073_v42, %v1070_v40  ;;  %v1188_v40 = vadd.f32 %v1187_v14, %v1184_v1  ;;  %v1249_v42 = vstv %s3542_s9 }
 0x22e   : > { %v1021_v36 = vstv %s4467_s18  ;;  %s3597_s19 = sld [smem:[#allocation10 + $0x50e]]  ;;  %v1018_v59 = vmul.f32 %v1017_v32, %v3140_v43  ;;  %v1129_v44 = vadd.f32 %v1128_v17, %v1125_v12  ;;  %v1250_v57 = vmul.f32 %v1249_v42, %v3006_v58 }
 0x22f   : > { %s4469_s27 = sld [smem:[#allocation72_spill]]  ;;  %v1022_v60 = vmul.f32 %v1021_v36, %v3200_v39  ;;  %v1243_v36 = vadd.f32 %v1242_v6, %v1239_v3  ;;  %v1253_v3 = vstv %s3547_s3  ;;  %v1136_v1 = vmul.f32 %v1135_v55, %v3105_v10 }
 0x230   : > { %v1076_v35 = vstv %s4468_s0  ;;  %s3602_s18 = sld [smem:[#allocation10 + $0x50f]]  ;;  %v1198_v14 = vstv %s3477_s17  ;;  %v1139_v12 = vstv %s3405_s20 }
 0x231   : > { %s3606_s15 = sld [smem:[#allocation10 + $0x580]]  ;;  %v1077_v62 = vmul.f32 %v1076_v35, %v3128_v34  ;;  %v1019_v35 = vadd.f32 %v1018_v59, %v1015_v16  ;;  %v1247_v45 = vadd.f32 %v1246_v31, %v1243_v36  ;;  %v1257_v36 = vstv %s3553_s24 }
 0x232   : > { %s3611_s0 = sld [smem:[#allocation11 + $0xb]] }
 0x233   : > { %s4471_s8 = sld [smem:[#allocation70_spill]]  ;;  %v1078_v37 = vadd.f32 %v1077_v62, %v1074_v46  ;;  %v1192_v62 = vadd.f32 %v1191_v2, %v1188_v40  ;;  %v1023_v6 = vadd.f32 %v1022_v60, %v1019_v35  ;;  %v1133_v46 = vadd.f32 %v1132_v4, %v1129_v44 }
 0x234   : > { %s4472_s14 = sld [smem:[#allocation57_spill]]  ;;  %v1251_v18 = vadd.f32 %v1250_v57, %v1247_v45  ;;  %v1254_v60 = vmul.f32 %v1253_v3, %v3027_v11  ;;  %v1140_v40 = vmul.f32 %v1139_v12, %v3122_v29  ;;  %v1202_v2 = vstv %s3482_s4 }
 0x235   : > { %v1080_v51 = vstv %s4469_s27  ;;  %s3616_s28 = sld [smem:[#allocation10 + $0x581]]  ;;  %v1143_v35 = vstv %s3409_s22  ;;  %v1203_v57 = vmul.f32 %v1202_v2, %v3105_v10 }
 0x236   : > { %4470 = sst [smem:[#allocation88_spill]] %s3602_s18  ;;  %v1081_v23 = vmul.f32 %v1080_v51, %v3134_v38  ;;  %v1195_v51 = vmul.f32 %v1194_v47, %v3048_v27 }
 0x237   : > { %s4473_s13 = sld [smem:[#allocation60_spill]]  ;;  %v1302_v59 = vstv %s3606_s15 }
 0x238   : > { %s3620_s29 = sld [smem:[#allocation10 + $0x582]]  ;;  %v1082_v61 = vadd.f32 %v1081_v23, %v1078_v37  ;;  %v1303_v17 = vmul.f32 %v1302_v59, %v2952_v24  ;;  %v1196_v23 = vadd.f32 %v1195_v51, %v1192_v62  ;;  %v1137_v37 = vadd.f32 %v1136_v1, %v1133_v46 }
 0x239   : > { %s3624_s27 = sld [smem:[#allocation10 + $0x583]]  ;;  %v1025_v52 = vstv %s4471_s8  ;;  %v1261_v59 = vstv %s3558_s16  ;;  %v1144_v62 = vmul.f32 %v1143_v35, %v3128_v34  ;;  %v1147_v51 = vstv %s3413_s23 }
 0x23a   : > { %v1029_v19 = vstv %s4472_s14  ;;  %s3631_s18 = sld [smem:[#allocation10 + $0x584]]  ;;  %v1026_v50 = vmul.f32 %v1025_v52, %v3211_v48  ;;  %v1305_v52 = vstv %s3611_s0  ;;  %v1262_v12 = vmul.f32 %v1261_v59, %v3048_v27 }
 0x23b   : > { %s3636_s30 = sld [smem:[#allocation10 + $0x585]]  ;;  %v1030_v53 = vmul.f32 %v1029_v19, %v3236_v7  ;;  %v1308_v19 = vstv %s3616_s28  ;;  %v1306_v44 = vadd.f32 %v1305_v52, %v1303_v17  ;;  %v1265_v52 = vstv %s3563_s12 }
 0x23c   : > { %s4474_s1 = sld [smem:[#allocation92_spill]]  ;;  %v1027_v31 = vadd.f32 %v1026_v50, %v1023_v6  ;;  %v1309_v4 = vmul.f32 %v1308_v19, %v2964_v30  ;;  %v1258_v50 = vmul.f32 %v1257_v36, %v3042_v22  ;;  %v965_v6 = vmax.f32 %v3626_v0, 0.0 }
 0x23d   : > { %v1084_v32 = vstv %s4473_s13  ;;  %s3640_s8 = sld [smem:[#allocation10 + $0x586]]  ;;  %v1266_v35 = vmul.f32 %v1265_v52, %v3050_v28 }
 0x23e   : > { %s3644_s6 = sld [smem:[#allocation10 + $0x587]]  ;;  %v1085_v54 = vmul.f32 %v1084_v32, %v3140_v43  ;;  %v1199_v32 = vmul.f32 %v1198_v14, %v3050_v28  ;;  %v1312_v55 = vstv %s3620_s29  ;;  %v3704_v46 = vadd.f32 %v1030_v53, %v1027_v31 }
 0x23f   : > { %s3650_s14 = sld [smem:[#allocation10 + $0x588]]  ;;  %v1310_v1 = vadd.f32 %v1309_v4, %v1306_v44  ;;  %v1313_v14 = vmul.f32 %v1312_v55, %v2981_v41  ;;  %v1316_v17 = vstv %s3624_s27  ;;  %v1148_v53 = vmul.f32 %v1147_v51, %v3134_v38 }
 0x240   : > { %s4475_s9 = sld [smem:[#allocation61_spill]]  ;;  %v1086_v20 = vadd.f32 %v1085_v54, %v1082_v61  ;;  %v1255_v54 = vadd.f32 %v1254_v60, %v1251_v18  ;;  %v1200_v45 = vadd.f32 %v1199_v32, %v1196_v23  ;;  %v1141_v61 = vadd.f32 %v1140_v40, %v1137_v37 }
 0x241   : > { %s3655_s11 = sld [smem:[#allocation10 + $0x589]]  ;;  %v1314_v37 = vadd.f32 %v1313_v14, %v1310_v1  ;;  %v1317_v40 = vmul.f32 %v1316_v17, %v3006_v58  ;;  %v1269_v44 = vstv %s3567_s10  ;;  %v1320_v4 = vstv %s3631_s18 }
 0x242   : > { %v1088_v56 = vstv %s4474_s1  ;;  %s3659_s13 = sld [smem:[#allocation10 + $0x58a]]  ;;  %v1204_v18 = vadd.f32 %v1203_v57, %v1200_v45  ;;  %v1321_v51 = vmul.f32 %v1320_v4, %v3027_v11  ;;  %v1273_v1 = vstv %s3572_s21 }
 0x243   : > { %s3663_s25 = sld [smem:[#allocation10 + $0x58b]]  ;;  %v1089_v15 = vmul.f32 %v1088_v56, %v3200_v39  ;;  %v1324_v14 = vstv %s3636_s30 }
 0x244   : > { %s3669_s15 = sld [smem:[#allocation10 + $0x58c]] }
 0x245   : > { %s3674_s3 = sld [smem:[#allocation10 + $0x58d]]  ;;  %v1090_v56 = vadd.f32 %v1089_v15, %v1086_v20  ;;  %v1145_v20 = vadd.f32 %v1144_v62, %v1141_v61  ;;  %v1270_v61 = vmul.f32 %v1269_v44, %v3105_v10  ;;  %v1318_v62 = vadd.f32 %v1317_v40, %v1314_v37 }
 0x246   : > { %v1092_v16 = vstv %s4475_s9  ;;  %s4477_s17 = sld [smem:[#allocation83_spill]]  ;;  %v1328_v37 = vstv %s3640_s8 }
 0x247   : > { %s3678_s20 = sld [smem:[#allocation10 + $0x58e]]  ;;  %v1093_v42 = vmul.f32 %v1092_v16, %v3211_v48  ;;  %v1259_v16 = vadd.f32 %v1258_v50, %v1255_v54 }
 0x248   : > { %s3682_s1 = sld [smem:[#allocation10 + $0x58f]] }
 0x249   : > { %s4480_s0 = sld [smem:[#allocation85_spill]]  ;;  %v1094_v19 = vadd.f32 %v1093_v42, %v1090_v56  ;;  %v1263_v2 = vadd.f32 %v1262_v12, %v1259_v16  ;;  %v1149_v56 = vadd.f32 %v1148_v53, %v1145_v20  ;;  %v1274_v20 = vmul.f32 %v1273_v1, %v3122_v29 }
 0x24a   : > { %s3687_s28 = sld [smem:[#allocation10 + $0x600]] }
 0x24b   : > { %4476 = sst [smem:[#allocation62_spill]] %s3674_s3 }
 0x24c   : > { %v1096_v47 = vstv %s4477_s17  ;;  %s3692_s24 = sld [smem:[#allocation11 + $0xc]] }
 0x24d   : > { %4478 = sst [smem:[#allocation39_spill]] %s3678_s20  ;;  %v1097_v15 = vmul.f32 %v1096_v47, %v3236_v7 }
 0x24e   : > { %4479 = sst [smem:[#allocation95_spill]] %s3682_s1 }
 0x24f   : > { %s3696_s22 = sld [smem:[#allocation10 + $0x601]]  ;;  %v1206_v3 = vstv %s4480_s0  ;;  %v3738_v55 = vadd.f32 %v1097_v15, %v1094_v19 }
 0x250   : > { %s3701_s4 = sld [smem:[#allocation10 + $0x602]]  ;;  %v1207_v60 = vmul.f32 %v1206_v3, %v3122_v29  ;;  %v1369_v50 = vstv %s3687_s28  ;;  %v1267_v3 = vadd.f32 %v1266_v35, %v1263_v2 }
 0x251   : > { %s4481_s29 = sld [smem:[#allocation73_spill]]  ;;  %v1370_v15 = vmul.f32 %v1369_v50, %v2952_v24 }
 0x252   : > { %s4482_s9 = sld [smem:[#allocation75_spill]]  ;;  %v1208_v47 = vadd.f32 %v1207_v60, %v1204_v18  ;;  %v1372_v17 = vstv %s3692_s24 }
 0x253   : > { %s3707_s16 = sld [smem:[#allocation10 + $0x603]]  ;;  %v1373_v40 = vadd.f32 %v1372_v17, %v1370_v15 }
 0x254   : > { %s4483_s17 = sld [smem:[#allocation84_spill]] }
 0x255   : > { %s4484_s1 = sld [smem:[#allocation74_spill]]  ;;  %v1375_v53 = vstv %s3696_s22 }
 0x256   : > { %s3712_s23 = sld [smem:[#allocation10 + $0x604]]  ;;  %v1376_v2 = vmul.f32 %v1375_v53, %v2964_v30 }
 0x257   : > { %s3717_s0 = sld [smem:[#allocation10 + $0x605]]  ;;  %v1151_v23 = vstv %s4481_s29 }
 0x258   : > { %v1210_v32 = vstv %s4482_s9  ;;  %s3721_s20 = sld [smem:[#allocation10 + $0x606]]  ;;  %v1152_v42 = vmul.f32 %v1151_v23, %v3140_v43  ;;  %v1277_v23 = vstv %s3577_s5 }
 0x259   : > { %s4485_s27 = sld [smem:[#allocation86_spill]]  ;;  %v1211_v54 = vmul.f32 %v1210_v32, %v3128_v34  ;;  %v1322_v32 = vadd.f32 %v1321_v51, %v1318_v62  ;;  %v1329_v62 = vmul.f32 %v1328_v37, %v3048_v27  ;;  %v1332_v51 = vstv %s3644_s6 }
 0x25a   : > { %v1155_v36 = vstv %s4483_s17  ;;  %s3726_s3 = sld [smem:[#allocation10 + $0x607]]  ;;  %v1153_v18 = vadd.f32 %v1152_v42, %v1149_v56  ;;  %v1379_v42 = vstv %s3701_s4  ;;  %v1278_v56 = vmul.f32 %v1277_v23, %v3128_v34 }
 0x25b   : > { %v1159_v31 = vstv %s4484_s1  ;;  %s3731_s12 = sld [smem:[#allocation10 + $0x608]]  ;;  %v1156_v45 = vmul.f32 %v1155_v36, %v3200_v39  ;;  %v1212_v16 = vadd.f32 %v1211_v54, %v1208_v47  ;;  %v1325_v36 = vmul.f32 %v1324_v14, %v3042_v22 }
 0x25c   : > { %s3736_s1 = sld [smem:[#allocation10 + $0x609]]  ;;  %v3745_v59 = vmul.f32 %v1159_v31, %v3211_v48  ;;  %v1271_v31 = vadd.f32 %v1270_v61, %v1267_v3  ;;  %v1380_v1 = vmul.f32 %v1379_v42, %v2981_v41  ;;  %v1387_v42 = vstv %s3712_s23 }
 0x25d   : > { %s3742_s10 = sld [smem:[#allocation10 + $0x60a]]  ;;  %v1157_v47 = vadd.f32 %v1156_v45, %v1153_v18  ;;  %v1326_v61 = vadd.f32 %v1325_v36, %v1322_v32  ;;  %v1377_v45 = vadd.f32 %v1376_v2, %v1373_v40  ;;  %v1285_v18 = vstv %s3586_s26 }
 0x25e   : > { %s4486_s18 = sld [smem:[#allocation93_spill]]  ;;  %v1275_v3 = vadd.f32 %v1274_v20, %v1271_v31  ;;  %v1336_v31 = vstv %s3650_s14 }
 0x25f   : > { %v1214_v57 = vstv %s4485_s27  ;;  %s4487_s29 = sld [smem:[#allocation76_spill]]  ;;  %v1381_v37 = vadd.f32 %v1380_v1, %v1377_v45  ;;  %v1161_v2 = vadd.f32 %v3745_v59, %v1157_v47  ;;  %v1337_v59 = vmul.f32 %v1336_v31, %v3105_v10 }
 0x260   : > { %s4488_s28 = sld [smem:[#allocation64_spill]]  ;;  %v1215_v12 = vmul.f32 %v1214_v57, %v3134_v38  ;;  %v1281_v57 = vstv %s3582_s7  ;;  %v1279_v36 = vadd.f32 %v1278_v56, %v1275_v3  ;;  %v1388_v1 = vmul.f32 %v1387_v42, %v3027_v11 }
 0x261   : > { %s3749_s9 = sld [smem:[#allocation10 + $0x60b]]  ;;  %v1282_v53 = vmul.f32 %v1281_v57, %v3134_v38 }
 0x262   : > { %s3754_s17 = sld [smem:[#allocation10 + $0x60c]]  ;;  %v1216_v44 = vadd.f32 %v1215_v12, %v1212_v16  ;;  %v1383_v16 = vstv %s3707_s16 }
 0x263   : > { %s3759_s27 = sld [smem:[#allocation10 + $0x60d]]  ;;  %v1384_v40 = vmul.f32 %v1383_v16, %v3006_v58 }
 0x264   : > { %v1163_v60 = vstv %s4486_s18  ;;  %s4490_s21 = sld [smem:[#allocation87_spill]] }
 0x265   : > { %v1218_v52 = vstv %s4487_s29  ;;  %s3769_s30 = sld [smem:[#allocation11 + $0xd]]  ;;  %v1164_v35 = vmul.f32 %v1163_v60, %v3236_v7  ;;  %v1333_v60 = vmul.f32 %v1332_v51, %v3050_v28  ;;  %v1289_v51 = vstv %s3592_s2 }
 0x266   : > { %v1222_v19 = vstv %s4488_s28  ;;  %s3773_s24 = sld [smem:[#allocation10 + $0x681]]  ;;  %v1219_v4 = vmul.f32 %v1218_v52, %v3140_v43  ;;  %v1385_v45 = vadd.f32 %v1384_v40, %v1381_v37  ;;  %v1099_v37 = vmax.f32 %v3738_v55, 0.0 }
 0x267   : > { %4489 = sst [smem:[#allocation89_spill]] %s3749_s9  ;;  %v1223_v54 = vmul.f32 %v1222_v19, %v3200_v39  ;;  %v1330_v19 = vadd.f32 %v1329_v62, %v1326_v61  ;;  %v1286_v61 = vmul.f32 %v1285_v18, %v3140_v43 }
 0x268   : > { %s3764_s9 = sld [smem:[#allocation10 + $0x680]]  ;;  %v1220_v15 = vadd.f32 %v1219_v4, %v1216_v44 }
 0x269   : > { %s3778_s5 = sld [smem:[#allocation10 + $0x682]]  ;;  %v1334_v3 = vadd.f32 %v1333_v60, %v1330_v19 }
 0x26a   : > { %v1226_v50 = vstv %s4490_s21  ;;  %s3783_s8 = sld [smem:[#allocation10 + $0x60e]]  ;;  %v1224_v44 = vadd.f32 %v1223_v54, %v1220_v15  ;;  %v1283_v54 = vadd.f32 %v1282_v53, %v1279_v36  ;;  %v1290_v53 = vmul.f32 %v1289_v51, %v3200_v39 }
 0x26b   : > { %s3788_s22 = sld [smem:[#allocation10 + $0x683]]  ;;  %v1439_v17 = vstv %s3769_s30  ;;  %v1227_v4 = vmul.f32 %v1226_v50, %v3211_v48  ;;  %v1340_v50 = vstv %s3655_s11  ;;  %v1389_v36 = vadd.f32 %v1388_v1, %v1385_v45 }
 0x26c   : > { %s3791_s4 = sld [smem:[#allocation10 + $0x60f]]  ;;  %v1442_v52 = vstv %s3773_s24  ;;  %v1341_v19 = vmul.f32 %v1340_v50, %v3122_v29  ;;  %v1399_v50 = vstv %s3726_s3  ;;  %v1352_v1 = vstv %s3669_s15 }
 0x26d   : > { %s3797_s7 = sld [smem:[#allocation10 + $0x684]]  ;;  %v1443_v23 = vmul.f32 %v1442_v52, %v2964_v30  ;;  %v1228_v15 = vadd.f32 %v1227_v4, %v1224_v44  ;;  %v1338_v52 = vadd.f32 %v1337_v59, %v1334_v3  ;;  %v1395_v44 = vstv %s3721_s20 }
 0x26e   : > { %v1436_v14 = vstv %s3764_s9  ;;  %s3803_s6 = sld [smem:[#allocation10 + $0x685]]  ;;  %v1348_v4 = vstv %s3663_s25 }
 0x26f   : > { %v1437_v12 = vmul.f32 %v1436_v14, %v2952_v24  ;;  %s4491_s18 = sld [smem:[#allocation94_spill]]  ;;  %v1446_v32 = vstv %s3778_s5  ;;  %v3832_v14 = vadd.f32 %v1164_v35, %v1161_v2  ;;  %v1293_v35 = vstv %s3597_s19 }
 0x270   : > { %s3807_s16 = sld [smem:[#allocation10 + $0x686]]  ;;  %v1447_v62 = vmul.f32 %v1446_v32, %v2981_v41  ;;  %v1344_v32 = vstv %s3659_s13  ;;  %v1342_v51 = vadd.f32 %v1341_v19, %v1338_v52  ;;  %v1349_v45 = vmul.f32 %v1348_v4, %v3134_v38 }
 0x271   : > { %v1440_v20 = vadd.f32 %v1439_v17, %v1437_v12  ;;  %s3811_s26 = sld [smem:[#allocation10 + $0x687]]  ;;  %v1450_v47 = vstv %s3788_s22  ;;  %v1391_v12 = vstv %s3717_s0  ;;  %v1032_v17 = vmax.f32 %v3704_v46, 0.0 }
 0x272   : > { %s3816_s29 = sld [smem:[#allocation10 + $0x688]]  ;;  %v1451_v60 = vmul.f32 %v1450_v47, %v3006_v58  ;;  %v1392_v31 = vmul.f32 %v1391_v12, %v3042_v22  ;;  %v1166_v40 = vmax.f32 %v3832_v14, 0.0  ;;  %v1345_v3 = vmul.f32 %v1344_v32, %v3128_v34 }
 0x273   : > { %v1444_v56 = vadd.f32 %v1443_v23, %v1440_v20  ;;  %s3821_s14 = sld [smem:[#allocation10 + $0x689]]  ;;  %v1454_v20 = vstv %s3797_s7  ;;  %v1287_v23 = vadd.f32 %v1286_v61, %v1283_v54  ;;  %v1396_v54 = vmul.f32 %v1395_v44, %v3048_v27 }
 0x274   : > { %s3826_s28 = sld [smem:[#allocation10 + $0x68a]]  ;;  %v1458_v61 = vstv %s3803_s6  ;;  %v1393_v47 = vadd.f32 %v1392_v31, %v1389_v36  ;;  %v1400_v52 = vmul.f32 %v1399_v50, %v3050_v28  ;;  %v1403_v19 = vstv %s3731_s12 }
 0x275   : > { %v1230_v57 = vstv %s4491_s18  ;;  %s3830_s23 = sld [smem:[#allocation10 + $0x68b]]  ;;  %v1448_v18 = vadd.f32 %v1447_v62, %v1444_v56  ;;  %v1294_v56 = vmul.f32 %v1293_v35, %v3211_v48  ;;  %v1291_v59 = vadd.f32 %v1290_v53, %v1287_v23 }
 0x276   : > { %v1231_v16 = vmul.f32 %v1230_v57, %v3236_v7  ;;  %s3836_s2 = sld [smem:[#allocation10 + $0x68c]]  ;;  %v1455_v57 = vmul.f32 %v1454_v20, %v3027_v11  ;;  %v1462_v53 = vstv %s3807_s16  ;;  %v1346_v35 = vadd.f32 %v1345_v3, %v1342_v51 }
 0x277   : > { %s3841_s11 = sld [smem:[#allocation10 + $0x68d]]  ;;  %v1452_v42 = vadd.f32 %v1451_v60, %v1448_v18  ;;  %v1397_v23 = vadd.f32 %v1396_v54, %v1393_v47  ;;  %v1463_v44 = vmul.f32 %v1462_v53, %v3048_v27  ;;  %v1466_v4 = vstv %s3811_s26 }
 0x278   : > { %s3846_s0 = sld [smem:[#allocation10 + $0x700]]  ;;  %v3854_v2 = vadd.f32 %v1231_v16, %v1228_v15  ;;  %v1459_v15 = vmul.f32 %v1458_v61, %v3042_v22  ;;  %v1350_v54 = vadd.f32 %v1349_v45, %v1346_v35  ;;  %v1353_v50 = vmul.f32 %v1352_v1, %v3140_v43 }
 0x279   : > { %s4492_s9 = sld [smem:[#allocation88_spill]]  ;;  %v1456_v12 = vadd.f32 %v1455_v57, %v1452_v42  ;;  %v1407_v1 = vstv %s3736_s1  ;;  %v1467_v35 = vmul.f32 %v1466_v4, %v3050_v28 }
 0x27a   : > { %s3850_s21 = sld [smem:[#allocation11 + $0xe]] }
 0x27b   : > { %s3857_s19 = sld [smem:[#allocation10 + $0x701]]  ;;  %v1460_v61 = vadd.f32 %v1459_v15, %v1456_v12  ;;  %v1233_v12 = vmax.f32 %v3854_v2, 0.0 }
 0x27c   : > { %s3862_s13 = sld [smem:[#allocation10 + $0x702]] }
 0x27d   : > { %s3867_s20 = sld [smem:[#allocation10 + $0x703]] }
 0x27e   : > { %s3871_s25 = sld [smem:[#allocation10 + $0x704]]  ;;  %v1503_v16 = vstv %s3846_s0 }
 0x27f   : > { %v1297_v62 = vstv %s4492_s9  ;;  %s3877_s30 = sld [smem:[#allocation10 + $0x705]]  ;;  %v1504_v18 = vmul.f32 %v1503_v16, %v2952_v24 }
 0x280   : > { %v1506_v60 = vstv %s3850_s21  ;;  %s3882_s3 = sld [smem:[#allocation10 + $0x706]]  ;;  %v1298_v45 = vmul.f32 %v1297_v62, %v3236_v7  ;;  %v1470_v62 = vstv %s3816_s29 }
 0x281   : > { %s3886_s15 = sld [smem:[#allocation10 + $0x68e]]  ;;  %v1509_v20 = vstv %s3857_s19  ;;  %v1507_v32 = vadd.f32 %v1506_v60, %v1504_v18  ;;  %v1401_v18 = vadd.f32 %v1400_v52, %v1397_v23  ;;  %v1404_v60 = vmul.f32 %v1403_v19, %v3105_v10 }
 0x282   : > { %s3889_s24 = sld [smem:[#allocation10 + $0x68f]]  ;;  %v1510_v36 = vmul.f32 %v1509_v20, %v2964_v30  ;;  %v1513_v31 = vstv %s3862_s13  ;;  %v1464_v52 = vadd.f32 %v1463_v44, %v1460_v61  ;;  %v1408_v44 = vmul.f32 %v1407_v1, %v3122_v29 }
 0x283   : > { %s4493_s5 = sld [smem:[#allocation62_spill]]  ;;  %v1514_v42 = vmul.f32 %v1513_v31, %v2981_v41  ;;  %v1517_v57 = vstv %s3867_s20  ;;  %v1354_v31 = vadd.f32 %v1353_v50, %v1350_v54  ;;  %v1471_v54 = vmul.f32 %v1470_v62, %v3105_v10 }
 0x284   : > { %s3897_s12 = sld [smem:[#allocation10 + $0x707]]  ;;  %v1511_v51 = vadd.f32 %v1510_v36, %v1507_v32  ;;  %v1518_v3 = vmul.f32 %v1517_v57, %v3006_v58  ;;  %v1521_v47 = vstv %s3871_s25  ;;  %v1295_v36 = vadd.f32 %v1294_v56, %v1291_v59 }
 0x285   : > { %s3901_s22 = sld [smem:[#allocation10 + $0x708]]  ;;  %v1525_v53 = vstv %s3877_s30  ;;  %v1522_v15 = vmul.f32 %v1521_v47, %v3027_v11  ;;  %v1405_v57 = vadd.f32 %v1404_v60, %v1401_v18  ;;  %v1468_v59 = vadd.f32 %v1467_v35, %v1464_v52 }
 0x286   : > { %s3906_s7 = sld [smem:[#allocation10 + $0x709]]  ;;  %v1515_v20 = vadd.f32 %v1514_v42, %v1511_v51  ;;  %v1526_v23 = vmul.f32 %v1525_v53, %v3042_v22  ;;  %v1529_v32 = vstv %s3882_s3  ;;  %v3940_v53 = vadd.f32 %v1298_v45, %v1295_v36 }
 0x287   : > { %s3910_s6 = sld [smem:[#allocation10 + $0x70a]]  ;;  %v1530_v56 = vmul.f32 %v1529_v32, %v3048_v27  ;;  %v1409_v1 = vadd.f32 %v1408_v44, %v1405_v57  ;;  %v1478_v45 = vstv %s3826_s28  ;;  %v1419_v36 = vstv %s3754_s17 }
 0x288   : > { %s4494_s18 = sld [smem:[#allocation39_spill]]  ;;  %v1519_v19 = vadd.f32 %v1518_v3, %v1515_v20  ;;  %v1411_v3 = vstv %s3742_s10  ;;  %v1474_v20 = vstv %s3821_s14  ;;  %v1423_v57 = vstv %s3759_s27 }
 0x289   : > { %v1356_v16 = vstv %s4493_s5  ;;  %s3916_s16 = sld [smem:[#allocation10 + $0x70b]]  ;;  %v1412_v35 = vmul.f32 %v1411_v3, %v3128_v34  ;;  %v1479_v3 = vmul.f32 %v1478_v45, %v3128_v34 }
 0x28a   : > { %s4495_s26 = sld [smem:[#allocation95_spill]]  ;;  %v1357_v42 = vmul.f32 %v1356_v16, %v3200_v39  ;;  %v1523_v61 = vadd.f32 %v1522_v15, %v1519_v19  ;;  %v1533_v16 = vstv %s3897_s12 }
 0x28b   : > { %s4496_s0 = sld [smem:[#allocation89_spill]]  ;;  %v1537_v32 = vstv %s3901_s22 }
 0x28c   : > { %s3920_s9 = sld [smem:[#allocation10 + $0x70c]]  ;;  %v1527_v50 = vadd.f32 %v1526_v23, %v1523_v61  ;;  %v1358_v18 = vadd.f32 %v1357_v42, %v1354_v31  ;;  %v1534_v23 = vmul.f32 %v1533_v16, %v3050_v28  ;;  %v1472_v31 = vadd.f32 %v1471_v54, %v1468_v59 }
 0x28d   : > { %s3924_s1 = sld [smem:[#allocation10 + $0x70d]]  ;;  %v1475_v42 = vmul.f32 %v1474_v20, %v3122_v29 }
 0x28e   : > { %v1360_v4 = vstv %s4494_s18  ;;  %s3928_s21 = sld [smem:[#allocation10 + $0x780]]  ;;  %v1531_v19 = vadd.f32 %v1530_v56, %v1527_v50 }
 0x28f   : > { %s3934_s19 = sld [smem:[#allocation11 + $0xf]]  ;;  %v1361_v60 = vmul.f32 %v1360_v4, %v3211_v48  ;;  %v1476_v16 = vadd.f32 %v1475_v42, %v1472_v31 }
 0x290   : > { %v1364_v51 = vstv %s4495_s26  ;;  %s3938_s29 = sld [smem:[#allocation10 + $0x781]]  ;;  %v1535_v59 = vadd.f32 %v1534_v23, %v1531_v19 }
 0x291   : > { %v1415_v47 = vstv %s4496_s0  ;;  %s3944_s10 = sld [smem:[#allocation10 + $0x782]]  ;;  %v1365_v15 = vmul.f32 %v1364_v51, %v3236_v7  ;;  %v1362_v4 = vadd.f32 %v1361_v60, %v1358_v18  ;;  %v1413_v51 = vadd.f32 %v1412_v35, %v1409_v1 }
 0x292   : > { %v1416_v52 = vmul.f32 %v1415_v47, %v3134_v38  ;;  %s3949_s13 = sld [smem:[#allocation10 + $0x783]]  ;;  %v1538_v47 = vmul.f32 %v1537_v32, %v3105_v10  ;;  %v1541_v18 = vstv %s3906_s7  ;;  %v1482_v1 = vstv %s3830_s23 }
 0x293   : > { %s3954_s14 = sld [smem:[#allocation10 + $0x784]]  ;;  %v1424_v32 = vmul.f32 %v1423_v57, %v3200_v39  ;;  %v1542_v42 = vmul.f32 %v1541_v18, %v3122_v29  ;;  %v1427_v57 = vstv %s3783_s8 }
 0x294   : > { %v1570_v62 = vstv %s3928_s21  ;;  %s3959_s20 = sld [smem:[#allocation10 + $0x785]]  ;;  %v1417_v23 = vadd.f32 %v1416_v52, %v1413_v51  ;;  %v1539_v31 = vadd.f32 %v1538_v47, %v1535_v59  ;;  %v1483_v52 = vmul.f32 %v1482_v1, %v3134_v38 }
 0x295   : > { %v1571_v44 = vmul.f32 %v1570_v62, %v2952_v24  ;;  %v1573_v61 = vstv %s3934_s19  ;;  %s3964_s28 = sld [smem:[#allocation10 + $0x786]]  ;;  %v1486_v51 = vstv %s3836_s2  ;;  %v4004_v59 = vadd.f32 %v1365_v15, %v1362_v4 }
 0x296   : > { %v1576_v56 = vstv %s3938_s29  ;;  %s3969_s17 = sld [smem:[#allocation10 + $0x787]]  ;;  %v1487_v15 = vmul.f32 %v1486_v51, %v3140_v43  ;;  %v1549_v4 = vstv %s3916_s16  ;;  %v1490_v1 = vstv %s3841_s11 }
 0x297   : > { %s3971_s25 = sld [smem:[#allocation10 + $0x70e]]  ;;  %v1574_v54 = vadd.f32 %v1573_v61, %v1571_v44  ;;  %v1577_v24 = vmul.f32 %v1576_v56, %v2964_v30  ;;  %v1580_v50 = vstv %s3944_s10  ;;  %v1420_v30 = vmul.f32 %v1419_v36, %v3140_v43 }
 0x298   : > { %v1581_v60 = vmul.f32 %v1580_v50, %v2981_v41  ;;  %v1584_v20 = vstv %s3949_s13  ;;  %s3978_s27 = sld [smem:[#allocation10 + $0x788]]  ;;  %v1480_v44 = vadd.f32 %v1479_v3, %v1476_v16  ;;  %v1545_v61 = vstv %s3910_s6 }
 0x299   : > { %v1578_v35 = vadd.f32 %v1577_v24, %v1574_v54  ;;  %v1585_v45 = vmul.f32 %v1584_v20, %v3006_v58  ;;  %v1588_v19 = vstv %s3954_s14  ;;  %s3983_s30 = sld [smem:[#allocation10 + $0x789]]  ;;  %v1431_v3 = vstv %s3791_s4 }
 0x29a   : > { %v1592_v41 = vstv %s3959_s20  ;;  %s3988_s3 = sld [smem:[#allocation10 + $0x78a]]  ;;  %v1589_v58 = vmul.f32 %v1588_v19, %v3027_v11  ;;  %v1421_v11 = vadd.f32 %v1420_v30, %v1417_v23  ;;  %v1543_v24 = vadd.f32 %v1542_v42, %v1539_v31 }
 0x29b   : > { %v1582_v62 = vadd.f32 %v1581_v60, %v1578_v35  ;;  %s3992_s23 = sld [smem:[#allocation10 + $0x78b]]  ;;  %v1596_v36 = vstv %s3964_s28  ;;  %v1593_v56 = vmul.f32 %v1592_v41, %v3042_v22  ;;  %v1546_v50 = vmul.f32 %v1545_v61, %v3128_v34 }
 0x29c   : > { %s3997_s5 = sld [smem:[#allocation10 + $0x78c]]  ;;  %v1600_v54 = vstv %s3969_s17  ;;  %v1597_v18 = vmul.f32 %v1596_v36, %v3048_v27  ;;  %v1484_v22 = vadd.f32 %v1483_v52, %v1480_v44  ;;  %v4020_v20 = vmul.f32 %v1427_v57, %v3211_v48 }
 0x29d   : > { %v1586_v47 = vadd.f32 %v1585_v45, %v1582_v62  ;;  %s4002_s12 = sld [smem:[#allocation10 + $0x78d]]  ;;  %v1601_v45 = vmul.f32 %v1600_v54, %v3050_v28  ;;  %v4026_v27 = vadd.f32 %v1424_v32, %v1421_v11  ;;  %v4029_v19 = vmul.f32 %v1431_v3, %v3236_v7 }
 0x29e   : > { %s4008_s22 = sld [smem:[#allocation10 + $0x78e]]  ;;  %v1604_v60 = vstv %s3978_s27  ;;  %v1553_v23 = vstv %s3920_s9  ;;  %v1547_v41 = vadd.f32 %v1546_v50, %v1543_v24  ;;  %v1550_v31 = vmul.f32 %v1549_v4, %v3134_v38 }
 0x29f   : > { %v1590_v16 = vadd.f32 %v1589_v58, %v1586_v47  ;;  %s4012_s8 = sld [smem:[#allocation13]]  ;;  %v1608_v30 = vstv %s3983_s30  ;;  %v1605_v28 = vmul.f32 %v1604_v60, %v3105_v10  ;;  %v1488_v32 = vadd.f32 %v1487_v15, %v1484_v22 }
 0x2a0   : > { %s4017_s2 = sld [smem:[#allocation2]]  ;;  %v1491_v62 = vmul.f32 %v1490_v1, %v3200_v39  ;;  %v1494_v58 = vstv %s3886_s15  ;;  %v1612_v44 = vstv %s3988_s3  ;;  %v1554_v52 = vmul.f32 %v1553_v23, %v3140_v43 }
 0x2a1   : > { %v1594_v35 = vadd.f32 %v1593_v56, %v1590_v16  ;;  %s4024_s4 = sld [smem:[#allocation13 + $0x1]]  ;;  %v1609_v36 = vmul.f32 %v1608_v30, %v3122_v29  ;;  %v1557_v10 = vstv %s3924_s1  ;;  %v1616_v51 = vstv %s3992_s23 }
 0x2a2   : > { %s4033_s7 = sld [smem:[#allocation13 + $0x2]]  ;;  %v1551_v11 = vadd.f32 %v1550_v31, %v1547_v41  ;;  %v1613_v54 = vmul.f32 %v1612_v44, %v3128_v34  ;;  %v1620_v29 = vstv %s3997_s5  ;;  %v1495_v15 = vmul.f32 %v1494_v58, %v3211_v48 }
 0x2a3   : > { %v1598_v42 = vadd.f32 %v1597_v18, %v1594_v35  ;;  %s4037_s11 = sld [smem:[#allocation13 + $0x3]]  ;;  %v1617_v18 = vmul.f32 %v1616_v51, %v3134_v38  ;;  %v1621_v38 = vmul.f32 %v1620_v29, %v3140_v43  ;;  %v1624_v9 = vstv %s4002_s12 }
 0x2a4   : > { %s4042_s6 = sld [smem:[#allocation13 + $0x4]]  ;;  %v1555_v1 = vadd.f32 %v1554_v52, %v1551_v11  ;;  %v1558_v35 = vmul.f32 %v1557_v10, %v3200_v39  ;;  %v1492_v21 = vadd.f32 %v1491_v62, %v1488_v32  ;;  %v1498_v43 = vstv %s3889_s24 }
 0x2a5   : > { %v1602_v61 = vadd.f32 %v1601_v45, %v1598_v42  ;;  %v1637_v57 = vstv %s4012_s8  ;;  %s4047_s18 = sld [smem:[#allocation13 + $0x5]]  ;;  %v1625_v31 = vmul.f32 %v1624_v9, %v3200_v39  ;;  %v1429_v58 = vadd.f32 %v4020_v20, %v4026_v27 }
 0x2a6   : > { %v1638_v47 = vmul.f32 %v1637_v57, %v630_v5  ;;  %v1640_v56 = vstv %s4017_s2  ;;  %s4054_s15 = sld [smem:[#allocation13 + $0x6]]  ;;  %v1559_v62 = vadd.f32 %v1558_v35, %v1555_v1  ;;  %v1499_v0 = vmul.f32 %v1498_v43, %v3236_v7 }
 0x2a7   : > { %v1606_v3 = vadd.f32 %v1605_v28, %v1602_v61  ;;  %v1643_v24 = vstv %s4024_s4  ;;  %s4058_s16 = sld [smem:[#allocation13 + $0x7]]  ;;  %v1496_v61 = vadd.f32 %v1495_v15, %v1492_v21  ;;  %v1300_v51 = vmax.f32 %v3940_v53, 0.0 }
 0x2a8   : > { %s4060_s26 = sld [smem:[#allocation10 + $0x70f]]  ;;  %v1641_v50 = vadd.f32 %v1640_v56, %v1638_v47  ;;  %v1644_v25 = vmul.f32 %v1643_v24, %v697_v8  ;;  %v1647_v5 = vstv %s4033_s7  ;;  %v1433_v46 = vadd.f32 %v4029_v19, %v1429_v58 }
 0x2a9   : > { %v1610_v16 = vadd.f32 %v1609_v36, %v1606_v3  ;;  %v1648_v34 = vmul.f32 %v1647_v5, %v764_v33  ;;  %v1651_v22 = vstv %s4037_s11  ;;  %s4070_s0 = sld [smem:[#allocation13 + $0x8]]  ;;  %v1367_v55 = vmax.f32 %v4004_v59, 0.0 }
 0x2aa   : > { %s4073_s9 = sld [smem:[#allocation10 + $0x78f]]  ;;  %v1645_v4 = vadd.f32 %v1644_v25, %v1641_v50  ;;  %v1652_v26 = vmul.f32 %v1651_v22, %v831_v49  ;;  %v1655_v8 = vstv %s4042_s6  ;;  %v1561_v49 = vstv %s3971_s25 }
 0x2ab   : > { %v1614_v60 = vadd.f32 %v1613_v54, %v1610_v16  ;;  %v1659_v33 = vstv %s4047_s18  ;;  %s4081_s1 = sld [smem:[#allocation13 + $0x9]]  ;;  %v1656_v23 = vmul.f32 %v1655_v8, %v898_v63  ;;  %v1628_v63 = vstv %s4008_s22 }
 0x2ac   : > { %v1649_v45 = vadd.f32 %v1648_v34, %v1645_v4  ;;  %v1663_v41 = vstv %s4054_s15  ;;  %s4088_s21 = sld [smem:[#allocation13 + $0xa]]  ;;  %v1660_v28 = vmul.f32 %v1659_v33, %v965_v6  ;;  %v1562_v44 = vmul.f32 %v1561_v49, %v3211_v48 }
 0x2ad   : > { %v1618_v30 = vadd.f32 %v1617_v18, %v1614_v60  ;;  %v1667_v32 = vstv %s4058_s16  ;;  %s4098_s19 = sld [smem:[#allocation13 + $0xb]]  ;;  %v1664_v39 = vmul.f32 %v1663_v41, %v1032_v17  ;;  %v1629_v27 = vmul.f32 %v1628_v63, %v3211_v48 }
 0x2ae   : > { %v1653_v42 = vadd.f32 %v1652_v26, %v1649_v45  ;;  %v1565_v6 = vstv %s4060_s26  ;;  %s4106_s24 = sld [smem:[#allocation13 + $0xc]]  ;;  %v1668_v10 = vmul.f32 %v1667_v32, %v1099_v37  ;;  %v1563_v56 = vadd.f32 %v1562_v44, %v1559_v62 }
 0x2af   : > { %v1622_v13 = vadd.f32 %v1621_v38, %v1618_v30  ;;  %v1671_v36 = vstv %s4070_s0  ;;  %s4115_s29 = sld [smem:[#allocation13 + $0xd]]  ;;  %v1566_v11 = vmul.f32 %v1565_v6, %v3236_v7  ;;  %v1500_v37 = vadd.f32 %v1499_v0, %v1496_v61 }
 0x2b0   : > { %v1657_v52 = vadd.f32 %v1656_v23, %v1653_v42  ;;  %v1632_v17 = vstv %s4073_s9  ;;  %v1672_v48 = vmul.f32 %v1671_v36, %v1166_v40  ;;  %s2201_s10 = sld [smem:[#allocation13 + $0xe]]  ;;  %v1434_v14 = vmax.f32 %v1433_v46, 0.0 }
 0x2b1   : > { %v1626_v20 = vadd.f32 %v1625_v31, %v1622_v13  ;;  %v1675_v47 = vstv %s4081_s1  ;;  %v1633_v19 = vmul.f32 %v1632_v17, %v3236_v7  ;;  %s4497_s13 = sld [smem:[#allocation30_spill]]  ;;  %v1567_v25 = vadd.f32 %v1566_v11, %v1563_v56 }
 0x2b2   : > { %v1661_v57 = vadd.f32 %v1660_v28, %v1657_v52  ;;  %v1679_v54 = vstv %s4088_s21  ;;  %v1676_v29 = vmul.f32 %v1675_v47, %v1233_v12  ;;  %s2202_s14 = sld [smem:[#allocation13 + $0xf]]  ;;  %v1501_v16 = vmax.f32 %v1500_v37, 0.0 }
 0x2b3   : > { %v1630_v53 = vadd.f32 %v1629_v27, %v1626_v20  ;;  %v1683_v50 = vstv %s4098_s19  ;;  %s4498_s20 = sld [smem:[#allocation23_spill]]  ;;  %v1680_v5 = vmul.f32 %v1679_v54, %v1300_v51  ;;  %v1568_v4 = vmax.f32 %v1567_v25, 0.0 }
 0x2b4   : > { %v1665_v3 = vadd.f32 %v1664_v39, %v1661_v57  ;;  %v1687_v59 = vstv %s4106_s24  ;;  %v1684_v22 = vmul.f32 %v1683_v50, %v1367_v55  ;;  %s4499_s30 = sld [smem:[#allocation110_spill]] }
 0x2b5   : > { %v1634_v18 = vadd.f32 %v1633_v19, %v1630_v53  ;;  %v1691_v15 = vstv %s4115_s29  ;;  %v1688_v26 = vmul.f32 %v1687_v59, %v1434_v14 }
 0x2b6   : > { %v1669_v24 = vadd.f32 %v1668_v10, %v1665_v3  ;;  %v1695_v2 = vstv %s2201_s10  ;;  %v1692_v60 = vmul.f32 %v1691_v15, %v1501_v16 }
 0x2b7   : > { %s1870_s28 = sshll.u32 %s4497_s13, 1  ;;  %v1635_v12 = vmax.f32 %v1634_v18, 0.0  ;;  %v1696_v33 = vmul.f32 %v1695_v2, %v1568_v4  ;;  %s1704_s2 = scalar_lea.sflag [#allocation5], %s4497_s13 }
 0x2b8   : > { %v1673_v40 = vadd.f32 %v1672_v48, %v1669_v24  ;;  %v1699_v38 = vstv %s2202_s14  ;;  %s384_s12 = scalar_lea.vmem [#allocation14], %s1870_s28 }
 0x2b9   : > { %s2204_s17 = sshll.u32 %s4498_s20, 1  ;;  %v1700_v35 = vmul.f32 %v1699_v38, %v1635_v12  ;;  %s1717_s22 = sshll.u32 %s384_s12, 4  ;;  %s1718_s22 = int_to_ptr.vmem [resolvable:$true] %s1717_s22 }
 0x2ba   : > { %v1677_v34 = vadd.f32 %v1676_v29, %v1673_v40  ;;  %s4500_s3 = smov %s4499_s30  ;;  %s1715_s23 = scalar_lea.hbm %s4499_s30, %s2204_s17 }
 0x2bb   : > { %s1719_s8 = sshll.u32 %s1715_s23, 4  ;;  %s2450_s18 = scalar_lea.hbm %s4500_s3, 4  ;;  %s1720_s8 = int_to_ptr.hbm [resolvable:$true] %s1719_s8 }
 0x2bc   : > { %v1681_v7 = vadd.f32 %v1680_v5, %v1677_v34  ;;  %s2444_s4 = sshra.s32 %s1720_s8, 4  ;;  %s2445_s4 = int_to_ptr.hbm [resolvable:$true] %s2444_s4 }
 0x2bd   : > { %s2446_s7 = scalar_lea.hbm %s2445_s4, 2  ;;  %p2451_p10 = scmp.lt.s32.totalorder %s2445_s4, %s4500_s3 }
 0x2be   : > { %v1685_v8 = vadd.f32 %v1684_v22, %v1681_v7  ;;  %p2447_p1 = scmp.ne.s32.totalorder %s2445_s4, %s2446_s7  ;;  %p2452_p11 = scmp.lt.s32.totalorder %s2450_s18, %s2446_s7 }
 0x2c0   : > { %v1689_v9 = vadd.f32 %v1688_v26, %v1685_v8  ;;  %p2448_p3 = pnand %p2447_p1, %p2679_p5  ;;  %p2453_p12 = por %p2452_p11, %p2451_p10 }
 0x2c2   : > { %v1693_v1 = vadd.f32 %v1692_v60, %v1689_v9  ;;  %p2449_p9 = pneg %p2448_p3 }
 0x2c4   : > { %v1697_v45 = vadd.f32 %v1696_v33, %v1693_v1  ;;  %p2454_p13 = pnand %p2453_p12, %p2449_p9 }
 0x2c6   : > { %v1701_v23 = vadd.f32 %v1700_v35, %v1697_v45 }
 0x2c8   : > { %1702 = vst [vmem:[%s384_s12] sm:$0x3] %v1701_v23 }
 0x2c9   : > { %2457 = shalt.err (!%p2454_p13)
}
 0x2ca   : > { %2230 = dma.vmem_to_hbm [thread:$0]  (%p2679_p5), %s1718_s22, 32, %s1720_s8, %s1704_s2  }
 0x2cb PF: > { %s4502_s26 = sld [smem:[#allocation20_spill]]  ;;  %p2253_p0 = pnand %p1859_p4, %p2687_p7 }
 0x2cc   : > { %s4504_s9 = sld [smem:[#allocation25_spill]] }
 0x2cd   : > { %p2254_p2 = pneg %p2253_p0 }
 0x2d1   : > { %s1731_s1 = sand.u32 1, %s4502_s26  }
 0x2d2   : > { %s1732_s21 = scalar_lea.sflag [#allocation5], %s1731_s1 }
 0x2d3   : > { %2499 = dma.done.wait (%p2254_p2), %s1732_s21, 32  }
 0x2d4   : > { %2501 = vsyncadd (%p2254_p2), %s1732_s21, 4294967264  ;;  %s27_s8 = sadd.s32 1, %s4504_s9   ;;  %s4505_s26 = sld [smem:[#allocation21_spill]] }
 0x2d5   : > { %p24_p6 = scmp.ge.s32.totalorder %s27_s8, 4   ;;  %s4506_s27 = sld [smem:[#allocation22_spill]] }
 0x2d6   : > { %s4507_s28 = sld [smem:[#allocation28_spill]] }
 0x2d7   : > { %s4508_s29 = sld [smem:[#allocation24_spill]]  ;;  %26 = sbr.rel (!%p24_p6) target bundleno = 18 (0x12), region = 115 }
 0x2d8   : > { %s4509_s30 = sld [smem:[#allocation26_spill]] }
 0x2dc   :  { %1738 = vsyncpa [#allocation4], 1 }
 0x2dd   :  { %1740 = vsyncpa [#allocation4 + $0x1], 1 }
 0x2de   :  { %1741 = vsyncpa [#allocation5], 1 }
 0x2df   :  { %1743 = vsyncpa [#allocation5 + $0x1], 1 }
 0x2e0   :  { %1744 = vsyncpa [#allocation6], 1 }
 0x2e1   :  { %1746 = vsyncpa [#allocation6 + $0x1], 1 }
 0x2e2   :  { %1747 = vsyncpa [#allocation9], 1 }
 0x2e3   :  { %1748 = vsyncpa [#allocation12], 1 }

</bundles_post_ra>
